<compile_context>
chip_gen: v5e
topology: v5e:2x2
jax: 0.10.0
libtpu: 0.0.40
codegen_flags: <defaults>
</compile_context>

<pallas_src>
import math
import functools

import jax
import jax.numpy as jnp
from jax.experimental import pallas as pl
from jax.experimental.pallas import tpu as pltpu

PAD = 0
EPS = 1e-6                      # Annotated-Transformer LayerNorm eps
_VMEM_LIMIT = 40 * 1024 * 1024  # scoped-VMEM budget (<= v7x 64 MiB physical)


# ----------------------------- in-kernel helpers -----------------------------

def _layer_norm(x, g, b):
    # a_2 * (x - mean) / (std + eps) + b_2 with torch's unbiased std (N-1).
    mean = jnp.mean(x, axis=-1, keepdims=True)
    var = jnp.sum((x - mean) ** 2, axis=-1, keepdims=True) / (x.shape[-1] - 1)
    inv = 1.0 / (jnp.sqrt(var) + EPS)          # exact reciprocal (numerical parity)
    return g * (x - mean) * inv + b


def _project_kv(src, wkv, bkv, n_heads):
    """Project K and V with ONE fused (Skv,D)@(D,2D) matmul and return them in
    (H, dk, Skv) bf16 layout (dk on sublanes, keys on lanes) for the batched
    score / PV matmuls.  src: (Skv, D) f32."""
    skv, d = src.shape
    dk = d // n_heads
    kv = jnp.dot(src.astype(jnp.bfloat16), wkv,
                 preferred_element_type=jnp.float32) + bkv           # (Skv, 2D) f32
    kv_t = kv.T                                                      # (2D, Skv)
    k_t = kv_t[:d].reshape(n_heads, dk, skv).astype(jnp.bfloat16)    # (H, dk, Skv)
    v_t = kv_t[d:].reshape(n_heads, dk, skv).astype(jnp.bfloat16)
    return k_t, v_t


def _attention(q_n, k_t, v_t, keep, scale, n_heads, wq, bq, wo, bo, attn_ref):
    """Multi-head attention against cached (H, dk, Skv) K/V.

    q_n : (TQ, D) f32 pre-normed queries
    keep: bool (TQ, Skv) or (1, Skv) keep-mask
    Returns (TQ, D) f32 (output projection + bias applied)."""
    tq, d = q_n.shape
    dk = d // n_heads

    # Dense Q projection: one (TQ,D)@(D,D) MXU matmul, heads split with f32
    # layout ops only (no lane slices, no broadcast over H).
    q2 = jnp.dot(q_n.astype(jnp.bfloat16), wq,
                 preferred_element_type=jnp.float32) + bq            # (TQ, D)
    q2 = q2 * scale                                                  # fold 1/sqrt(dk) once
    qh = jnp.transpose(q2.T.reshape(n_heads, dk, tq), (0, 2, 1))     # (H, TQ, dk)
    qh = qh.astype(jnp.bfloat16)

    # Scores / mask / softmax in f32.
    s = jnp.einsum("htk,hks->hts", qh, k_t,
                   preferred_element_type=jnp.float32)               # (H, TQ, Skv)
    s = jnp.where(keep[None], s, -1e9)                               # masked_fill
    m = jnp.max(s, axis=-1, keepdims=True)
    e = jnp.exp(s - m)
    p = e * pl.reciprocal(jnp.sum(e, axis=-1, keepdims=True), approx=True)

    if attn_ref is not None:                                         # final layer only
        attn_ref[0] = p

    # attn @ V (contract over keys), concat heads, one dense output projection.
    o = jnp.einsum("hts,hks->htk", p.astype(jnp.bfloat16), v_t,
                   preferred_element_type=jnp.float32)               # (H, TQ, dk)
    o = jnp.transpose(o, (0, 2, 1)).reshape(d, tq).T                 # (TQ, D) concat
    return jnp.dot(o.astype(jnp.bfloat16), wo,
                   preferred_element_type=jnp.float32) + bo


# ------------------------------- Pallas kernels -------------------------------

def _decoder_layer_kernel(n_heads, tq, collect_attn,
                          x_ref, mem_ref, tpad_ref, spad_ref,
                          ln1g, ln1b, wq1, bq1, wkv1, bkv1, wo1, bo1,
                          ln2g, ln2b, wq2, bq2, wkv2, bkv2, wo2, bo2,
                          ln3g, ln3b, wf1, bf1, wf2, bf2,
                          *rest):
    n_out = 3 if collect_attn else 1
    out_ref = rest[0]
    slf_ref = rest[1] if collect_attn else None
    src_ref = rest[2] if collect_attn else None
    k_self, v_self, k_cross, v_cross = rest[n_out:]

    T, D = x_ref.shape[1], x_ref.shape[2]
    S = mem_ref.shape[1]
    scale = 1.0 / math.sqrt(D // n_heads)
    q0 = pl.multiple_of(pl.program_id(1) * tq, tq)    # absolute row offset of the tile

    # ---- once per (layer, batch): project & cache K/V heads in VMEM scratch ----
    @pl.when(pl.program_id(1) == 0)
    def _():
        kv_n = _layer_norm(x_ref[0], ln1g[...], ln1b[...])           # (T, D) pre-norm
        kt, vt = _project_kv(kv_n, wkv1[...], bkv1[...], n_heads)
        k_self[...] = kt
        v_self[...] = vt
        ktc, vtc = _project_kv(mem_ref[0], wkv2[...], bkv2[...], n_heads)  # raw memory
        k_cross[...] = ktc
        v_cross[...] = vtc

    # ---- per query tile ----
    x_tile = x_ref[0, pl.ds(q0, tq), :]                              # (TQ, D) residual

    # Keep-masks rebuilt from tiny pad vectors (no dense (T,T)/(T,S) mask DMA).
    row = jax.lax.broadcasted_iota(jnp.int32, (tq, T), 0) + q0
    col = jax.lax.broadcasted_iota(jnp.int32, (tq, T), 1)
    tgt_keep = (col <= row) & (tpad_ref[0] > 0.5)                    # (TQ, T)
    src_keep = spad_ref[0] > 0.5                                     # (1, S)

    # sublayer 0: pre-norm masked self-attention + residual.
    q_n = _layer_norm(x_tile, ln1g[...], ln1b[...])
    x = x_tile + _attention(q_n, k_self[...], v_self[...], tgt_keep, scale, n_heads,
                            wq1[...], bq1[...], wo1[...], bo1[...], slf_ref)

    # sublayer 1: pre-norm cross attention (K/V = raw encoder memory) + residual.
    q_n = _layer_norm(x, ln2g[...], ln2b[...])
    x = x + _attention(q_n, k_cross[...], v_cross[...], src_keep, scale, n_heads,
                       wq2[...], bq2[...], wo2[...], bo2[...], src_ref)

    # sublayer 2: pre-norm position-wise FFN + residual (two dense bf16 matmuls).
    xn = _layer_norm(x, ln3g[...], ln3b[...])
    h1 = jnp.dot(xn.astype(jnp.bfloat16), wf1[...],
                 preferred_element_type=jnp.float32) + bf1[...]
    h1 = jnp.maximum(h1, 0.0)
    x = x + jnp.dot(h1.astype(jnp.bfloat16), wf2[...],
                    preferred_element_type=jnp.float32) + bf2[...]

    out_ref[0] = x.astype(out_ref.dtype)


def _layernorm_kernel(x_ref, g_ref, b_ref, o_ref):
    o_ref[0] = _layer_norm(x_ref[0], g_ref[...], b_ref[...]).astype(o_ref.dtype)


# --------------------------- pallas_call wrappers ---------------------------

_PARAM_ORDER = ["ln1_g", "ln1_b", "wq1", "bq1", "wkv1", "bkv1", "wo1", "bo1",
                "ln2_g", "ln2_b", "wq2", "bq2", "wkv2", "bkv2", "wo2", "bo2",
                "ln3_g", "ln3_b", "wf1", "bf1", "wf2", "bf2"]


def _prep_layer_params(lp):
    """One-time plain-JAX weight prep: fuse K/V projections into one (D, 2D)
    matrix per attention sublayer; cast matmul weights to bf16 (biases / LN f32)."""
    out = {
        "ln1_g": lp["ln1_g"], "ln1_b": lp["ln1_b"],
        "ln2_g": lp["ln2_g"], "ln2_b": lp["ln2_b"],
        "ln3_g": lp["ln3_g"], "ln3_b": lp["ln3_b"],
        "wf1": lp["wf1"].astype(jnp.bfloat16), "bf1": lp["bf1"],
        "wf2": lp["wf2"].astype(jnp.bfloat16), "bf2": lp["bf2"],
    }
    for i in ("1", "2"):
        out["wq" + i] = lp["wq" + i].astype(jnp.bfloat16)
        out["bq" + i] = lp["bq" + i]
        out["wkv" + i] = jnp.concatenate([lp["wk" + i], lp["wv" + i]], axis=1).astype(jnp.bfloat16)
        out["bkv" + i] = jnp.concatenate([lp["bk" + i], lp["bv" + i]], axis=1)
        out["wo" + i] = lp["wo" + i].astype(jnp.bfloat16)
        out["bo" + i] = lp["bo" + i]
    return [out[k] for k in _PARAM_ORDER]


def _pick_tq(T):
    # Prefer MXU-filling, (16,128)-friendly tiles; never drop below 16.
    if T <= 128:
        return T
    for tq in (128, 256, 64, 32, 16):
        if T % tq == 0:
            return tq
    return T   # TODO(synk): cdiv grid + in-kernel row masking for awkward T


def decoder_layer(x, memory, tpad, spad, layer_params, n_heads, collect_attn):
    B, T, D = x.shape
    S = memory.shape[1]
    dk = D // n_heads
    TQ = _pick_tq(T)
    NQ = T // TQ
    params = _prep_layer_params(layer_params)

    in_specs = [
        pl.BlockSpec((1, T, D), lambda b, q: (b, 0, 0)),    # x: full target sequence
        pl.BlockSpec((1, S, D), lambda b, q: (b, 0, 0)),    # encoder memory
        pl.BlockSpec((1, 1, T), lambda b, q: (b, 0, 0)),    # tgt pad keep vector
        pl.BlockSpec((1, 1, S), lambda b, q: (b, 0, 0)),    # src pad keep vector
    ] + [pl.BlockSpec(p.shape, lambda b, q, nd=p.ndim: (0,) * nd) for p in params]
    # NOTE(v7x): for long T, add pipeline_mode=pl.Buffered(1) on the constant-index
    # weight specs above to single-buffer them within the 64 MiB VMEM.

    out_shape = [jax.ShapeDtypeStruct((B, T, D), jnp.float32)]
    out_specs = [pl.BlockSpec((1, TQ, D), lambda b, q: (b, q, 0))]
    if collect_attn:
        out_shape += [jax.ShapeDtypeStruct((B, n_heads, T, T), jnp.float32),
                      jax.ShapeDtypeStruct((B, n_heads, T, S), jnp.float32)]
        out_specs += [pl.BlockSpec((1, n_heads, TQ, T), lambda b, q: (b, 0, q, 0)),
                      pl.BlockSpec((1, n_heads, TQ, S), lambda b, q: (b, 0, q, 0))]

    scratch_shapes = [pltpu.VMEM((n_heads, dk, T), jnp.bfloat16),   # self K
                      pltpu.VMEM((n_heads, dk, T), jnp.bfloat16),   # self V
                      pltpu.VMEM((n_heads, dk, S), jnp.bfloat16),   # cross K
                      pltpu.VMEM((n_heads, dk, S), jnp.bfloat16)]   # cross V

    outs = pl.pallas_call(
        functools.partial(_decoder_layer_kernel, n_heads, TQ, collect_attn),
        grid=(B, NQ),
        in_specs=in_specs,
        out_specs=tuple(out_specs) if collect_attn else out_specs[0],
        out_shape=tuple(out_shape) if collect_attn else out_shape[0],
        scratch_shapes=scratch_shapes,
        compiler_params=pltpu.CompilerParams(
            # q axis carries the cached K/V scratch -> "arbitrary";
            # batch stays "parallel" so both v7x TensorCores get work.
            dimension_semantics=("parallel", "arbitrary"),
            vmem_limit_bytes=_VMEM_LIMIT),
    )(x, memory, tpad, spad, *params)

    if collect_attn:
        return outs
    return outs, None, None


def final_layer_norm(x, g, b):
    B, T, D = x.shape
    return pl.pallas_call(
        _layernorm_kernel,
        grid=(B,),
        in_specs=[pl.BlockSpec((1, T, D), lambda i: (i, 0, 0)),
                  pl.BlockSpec((1, D), lambda i: (0, 0)),
                  pl.BlockSpec((1, D), lambda i: (0, 0))],
        out_specs=pl.BlockSpec((1, T, D), lambda i: (i, 0, 0)),
        out_shape=jax.ShapeDtypeStruct((B, T, D), jnp.float32),
        compiler_params=pltpu.CompilerParams(dimension_semantics=("parallel",)),
    )(x, g, b)


# ------------------------------- glue (plain JAX) -------------------------------

def sinusoidal_pe(T, D):
    pos = jnp.arange(T, dtype=jnp.float32)[:, None]
    div = jnp.exp(jnp.arange(0, D, 2, dtype=jnp.float32) * (-math.log(10000.0) / D))
    pe = jnp.zeros((T, D), jnp.float32)
    pe = pe.at[:, 0::2].set(jnp.sin(pos * div))
    pe = pe.at[:, 1::2].set(jnp.cos(pos * div))
    return pe


def embed(tokens, emb_table, pe):
    # trg_emb: embedding lookup * sqrt(d_model) + sinusoidal positional encoding.
    d_model = emb_table.shape[1]
    e = emb_table[tokens] * math.sqrt(d_model)
    return e + pe[None, : tokens.shape[1], :]


def make_pad_keep(tokens, src_mask, S):
    # Only tiny pad vectors go to the kernel; dense masks are rebuilt in-kernel.
    B, T = tokens.shape
    tpad = (tokens != PAD).astype(jnp.float32)[:, None, :]          # (B, 1, T)
    if src_mask is None:
        spad = jnp.ones((B, 1, S), jnp.float32)
    else:
        spad = (src_mask != 0).astype(jnp.float32)[:, None, :]      # (B, 1, S)
    return tpad, spad


def self_att_decoder(tokens, memory, src_mask, params):
    S = memory.shape[1]
    tpad, spad = make_pad_keep(tokens, src_mask, S)
    x = embed(tokens, params["emb"], params["pe"])
    n_layers = len(params["layers"])
    trg_slf_attn = trg_src_attn = None
    for li, layer_params in enumerate(params["layers"]):
        last = li == n_layers - 1                    # only last layer's attn is returned
        x, slf, src = decoder_layer(x, memory, tpad, spad, layer_params,
                                    params["n_heads"], collect_attn=last)
        if last:
            trg_slf_attn, trg_src_attn = slf, src
    return final_layer_norm(x, params["norm_g"], params["norm_b"]), trg_slf_attn, trg_src_attn


def init_params(key, vocab, d_model, d_ff, n_heads, n_layers, max_len):
    keys = jax.random.split(key, 1 + n_layers)

    def w(k, shape):
        return (jax.random.normal(k, shape, jnp.float32) * 0.05).astype(jnp.float32)

    layers = []
    for i in range(n_layers):
        ks = jax.random.split(keys[1 + i], 10)
        lp = {
            "ln1_g": jnp.ones((1, d_model), jnp.float32), "ln1_b": jnp.zeros((1, d_model), jnp.float32),
            "wq1": w(ks[0], (d_model, d_model)), "wk1": w(ks[1], (d_model, d_model)),
            "wv1": w(ks[2], (d_model, d_model)), "wo1": w(ks[3], (d_model, d_model)),
            "bq1": jnp.zeros((1, d_model), jnp.float32), "bk1": jnp.zeros((1, d_model), jnp.float32),
            "bv1": jnp.zeros((1, d_model), jnp.float32), "bo1": jnp.zeros((1, d_model), jnp.float32),
            "ln2_g": jnp.ones((1, d_model), jnp.float32), "ln2_b": jnp.zeros((1, d_model), jnp.float32),
            "wq2": w(ks[4], (d_model, d_model)), "wk2": w(ks[5], (d_model, d_model)),
            "wv2": w(ks[6], (d_model, d_model)), "wo2": w(ks[7], (d_model, d_model)),
            "bq2": jnp.zeros((1, d_model), jnp.float32), "bk2": jnp.zeros((1, d_model), jnp.float32),
            "bv2": jnp.zeros((1, d_model), jnp.float32), "bo2": jnp.zeros((1, d_model), jnp.float32),
            "ln3_g": jnp.ones((1, d_model), jnp.float32), "ln3_b": jnp.zeros((1, d_model), jnp.float32),
            "wf1": w(ks[8], (d_model, d_ff)), "bf1": jnp.zeros((1, d_ff), jnp.float32),
            "wf2": w(ks[9], (d_ff, d_model)), "bf2": jnp.zeros((1, d_model), jnp.float32),
        }
        layers.append(lp)

    return {
        "emb": (jax.random.normal(keys[0], (vocab, d_model), jnp.float32) * 0.02),
        "pe": sinusoidal_pe(max_len, d_model),
        "layers": layers,
        "norm_g": jnp.ones((1, d_model), jnp.float32),
        "norm_b": jnp.zeros((1, d_model), jnp.float32),
        "n_heads": n_heads,
    }


# ------------------------------- main -------------------------------

if __name__ == "__main__":
    # Small but TPU-friendly shapes: d_model lane-aligned (128), dk multiple of 8.
    B, T, S, D, H, DFF, V, N = 2, 16, 16, 128, 4, 256, 50, 2

    key = jax.random.PRNGKey(0)
    k_tok, k_mem, k_par = jax.random.split(key, 3)

    tokens = jax.random.randint(k_tok, (B, T), 1, V)           # target token ids
    tokens = tokens.at[1, -2:].set(PAD)                        # some padding in batch 1
    memory = jax.random.normal(k_mem, (B, S, D), jnp.float32)  # encoder output
    src_mask = jnp.ones((B, S), jnp.int32).at[1, -3:].set(0)   # source padding mask

    params = init_params(k_par, V, D, DFF, H, N, max_len=T)

    out, slf_attn, src_attn = self_att_decoder(tokens, memory, src_mask, params)
    jax.block_until_ready((out, slf_attn, src_attn))

    assert out.shape == (B, T, D)
    assert slf_attn.shape == (B, H, T, T)
    assert src_attn.shape == (B, H, T, S)
    assert bool(jnp.all(jnp.isfinite(out)))
    print("KERNEL_OK")
</pallas_src>

<mosaic_0001>
module attributes {stable_mosaic.version = 11 : i64} {
  func.func @_decoder_layer_kernel(%arg0: i32, %arg1: i32, %arg2: memref<1x16x128xf32, #tpu.memory_space<vmem>>, %arg3: memref<1x16x128xf32, #tpu.memory_space<vmem>>, %arg4: memref<1x1x16xf32, #tpu.memory_space<vmem>>, %arg5: memref<1x1x16xf32, #tpu.memory_space<vmem>>, %arg6: memref<1x128xf32, #tpu.memory_space<vmem>>, %arg7: memref<1x128xf32, #tpu.memory_space<vmem>>, %arg8: memref<128x128xbf16, #tpu.memory_space<vmem>>, %arg9: memref<1x128xf32, #tpu.memory_space<vmem>>, %arg10: memref<128x256xbf16, #tpu.memory_space<vmem>>, %arg11: memref<1x256xf32, #tpu.memory_space<vmem>>, %arg12: memref<128x128xbf16, #tpu.memory_space<vmem>>, %arg13: memref<1x128xf32, #tpu.memory_space<vmem>>, %arg14: memref<1x128xf32, #tpu.memory_space<vmem>>, %arg15: memref<1x128xf32, #tpu.memory_space<vmem>>, %arg16: memref<128x128xbf16, #tpu.memory_space<vmem>>, %arg17: memref<1x128xf32, #tpu.memory_space<vmem>>, %arg18: memref<128x256xbf16, #tpu.memory_space<vmem>>, %arg19: memref<1x256xf32, #tpu.memory_space<vmem>>, %arg20: memref<128x128xbf16, #tpu.memory_space<vmem>>, %arg21: memref<1x128xf32, #tpu.memory_space<vmem>>, %arg22: memref<1x128xf32, #tpu.memory_space<vmem>>, %arg23: memref<1x128xf32, #tpu.memory_space<vmem>>, %arg24: memref<128x256xbf16, #tpu.memory_space<vmem>>, %arg25: memref<1x256xf32, #tpu.memory_space<vmem>>, %arg26: memref<256x128xbf16, #tpu.memory_space<vmem>>, %arg27: memref<1x128xf32, #tpu.memory_space<vmem>>, %arg28: memref<1x16x128xf32, #tpu.memory_space<vmem>>, %arg29: memref<4x32x16xbf16, #tpu.memory_space<vmem>>, %arg30: memref<4x32x16xbf16, #tpu.memory_space<vmem>>, %arg31: memref<4x32x16xbf16, #tpu.memory_space<vmem>>, %arg32: memref<4x32x16xbf16, #tpu.memory_space<vmem>>) attributes {dimension_semantics = [#tpu.dimension_semantics<parallel>, #tpu.dimension_semantics<arbitrary>], iteration_bounds = array<i64: 2, 1>, scalar_prefetch = 0 : i64, scratch_operands = 4 : i64, tpu.core_type = #tpu.core_type<tc>, window_params = [{transform_indices = @transform_0, window_bounds = array<i64: 1, 16, 128>}, {transform_indices = @transform_1, window_bounds = array<i64: 1, 16, 128>}, {transform_indices = @transform_2, window_bounds = array<i64: 1, 1, 16>}, {transform_indices = @transform_3, window_bounds = array<i64: 1, 1, 16>}, {pipeline_mode = #tpu.pipeline_mode<synchronous>, transform_indices = @transform_4, window_bounds = array<i64: 1, 128>}, {pipeline_mode = #tpu.pipeline_mode<synchronous>, transform_indices = @transform_5, window_bounds = array<i64: 1, 128>}, {pipeline_mode = #tpu.pipeline_mode<synchronous>, transform_indices = @transform_6, window_bounds = array<i64: 128, 128>}, {pipeline_mode = #tpu.pipeline_mode<synchronous>, transform_indices = @transform_7, window_bounds = array<i64: 1, 128>}, {pipeline_mode = #tpu.pipeline_mode<synchronous>, transform_indices = @transform_8, window_bounds = array<i64: 128, 256>}, {pipeline_mode = #tpu.pipeline_mode<synchronous>, transform_indices = @transform_9, window_bounds = array<i64: 1, 256>}, {pipeline_mode = #tpu.pipeline_mode<synchronous>, transform_indices = @transform_10, window_bounds = array<i64: 128, 128>}, {pipeline_mode = #tpu.pipeline_mode<synchronous>, transform_indices = @transform_11, window_bounds = array<i64: 1, 128>}, {pipeline_mode = #tpu.pipeline_mode<synchronous>, transform_indices = @transform_12, window_bounds = array<i64: 1, 128>}, {pipeline_mode = #tpu.pipeline_mode<synchronous>, transform_indices = @transform_13, window_bounds = array<i64: 1, 128>}, {pipeline_mode = #tpu.pipeline_mode<synchronous>, transform_indices = @transform_14, window_bounds = array<i64: 128, 128>}, {pipeline_mode = #tpu.pipeline_mode<synchronous>, transform_indices = @transform_15, window_bounds = array<i64: 1, 128>}, {pipeline_mode = #tpu.pipeline_mode<synchronous>, transform_indices = @transform_16, window_bounds = array<i64: 128, 256>}, {pipeline_mode = #tpu.pipeline_mode<synchronous>, transform_indices = @transform_17, window_bounds = array<i64: 1, 256>}, {pipeline_mode = #tpu.pipeline_mode<synchronous>, transform_indices = @transform_18, window_bounds = array<i64: 128, 128>}, {pipeline_mode = #tpu.pipeline_mode<synchronous>, transform_indices = @transform_19, window_bounds = array<i64: 1, 128>}, {pipeline_mode = #tpu.pipeline_mode<synchronous>, transform_indices = @transform_20, window_bounds = array<i64: 1, 128>}, {pipeline_mode = #tpu.pipeline_mode<synchronous>, transform_indices = @transform_21, window_bounds = array<i64: 1, 128>}, {pipeline_mode = #tpu.pipeline_mode<synchronous>, transform_indices = @transform_22, window_bounds = array<i64: 128, 256>}, {pipeline_mode = #tpu.pipeline_mode<synchronous>, transform_indices = @transform_23, window_bounds = array<i64: 1, 256>}, {pipeline_mode = #tpu.pipeline_mode<synchronous>, transform_indices = @transform_24, window_bounds = array<i64: 256, 128>}, {pipeline_mode = #tpu.pipeline_mode<synchronous>, transform_indices = @transform_25, window_bounds = array<i64: 1, 128>}, {transform_indices = @transform_26, window_bounds = array<i64: 1, 16, 128>}]} {
    %c16_i32 = arith.constant 16 : i32
    %0 = arith.muli %arg1, %c16_i32 : i32
    %1 = tpu.assume_multiple %0, 16 : i32
    %c0_i32 = arith.constant 0 : i32
    %2 = arith.cmpi eq, %arg1, %c0_i32 : i32
    %3 = arith.extui %2 : i1 to i32
    %c0_i32_0 = arith.constant 0 : i32
    %4 = arith.cmpi ne, %3, %c0_i32_0 : i32
    scf.if %4 {
      %c0_97 = arith.constant 0 : index
      %c0_98 = arith.constant 0 : index
      %c0_99 = arith.constant 0 : index
      %203 = vector.load %arg2[%c0_97, %c0_98, %c0_99] : memref<1x16x128xf32, #tpu.memory_space<vmem>>, vector<1x16x128xf32>
      %204 = vector.shape_cast %203 : vector<1x16x128xf32> to vector<16x128xf32>
      %c0_100 = arith.constant 0 : index
      %c0_101 = arith.constant 0 : index
      %205 = vector.load %arg6[%c0_100, %c0_101] : memref<1x128xf32, #tpu.memory_space<vmem>>, vector<1x128xf32>
      %c0_102 = arith.constant 0 : index
      %c0_103 = arith.constant 0 : index
      %206 = vector.load %arg7[%c0_102, %c0_103] : memref<1x128xf32, #tpu.memory_space<vmem>>, vector<1x128xf32>
      %cst_104 = arith.constant dense<0.000000e+00> : vector<16xf32>
      %207 = vector.multi_reduction <add>, %204, %cst_104 [1] : vector<16x128xf32> to vector<16xf32>
      %208 = vector.shape_cast %207 : vector<16xf32> to vector<16x1xf32>
      %cst_105 = arith.constant 1.280000e+02 : f32
      %209 = vector.broadcast %cst_105 : f32 to vector<16x1xf32>
      %210 = arith.divf %208, %209 : vector<16x1xf32>
      %211 = vector.broadcast %210 : vector<16x1xf32> to vector<16x128xf32>
      %212 = arith.subf %204, %211 : vector<16x128xf32>
      %213 = arith.mulf %212, %212 : vector<16x128xf32>
      %cst_106 = arith.constant dense<0.000000e+00> : vector<16xf32>
      %214 = vector.multi_reduction <add>, %213, %cst_106 [1] : vector<16x128xf32> to vector<16xf32>
      %215 = vector.shape_cast %214 : vector<16xf32> to vector<16x1xf32>
      %cst_107 = arith.constant 1.270000e+02 : f32
      %216 = vector.broadcast %cst_107 : f32 to vector<16x1xf32>
      %217 = arith.divf %215, %216 : vector<16x1xf32>
      %218 = math.sqrt %217 : vector<16x1xf32>
      %cst_108 = arith.constant 9.99999997E-7 : f32
      %219 = vector.broadcast %cst_108 : f32 to vector<16x1xf32>
      %220 = arith.addf %218, %219 : vector<16x1xf32>
      %cst_109 = arith.constant 1.000000e+00 : f32
      %221 = vector.broadcast %cst_109 : f32 to vector<16x1xf32>
      %222 = arith.divf %221, %220 : vector<16x1xf32>
      %223 = vector.broadcast %210 : vector<16x1xf32> to vector<16x128xf32>
      %224 = arith.subf %204, %223 : vector<16x128xf32>
      %225 = vector.broadcast %205 : vector<1x128xf32> to vector<16x128xf32>
      %226 = arith.mulf %225, %224 : vector<16x128xf32>
      %227 = vector.broadcast %222 : vector<16x1xf32> to vector<16x128xf32>
      %228 = arith.mulf %226, %227 : vector<16x128xf32>
      %229 = vector.broadcast %206 : vector<1x128xf32> to vector<16x128xf32>
      %230 = arith.addf %228, %229 : vector<16x128xf32>
      %c0_110 = arith.constant 0 : index
      %c0_111 = arith.constant 0 : index
      %231 = vector.load %arg10[%c0_110, %c0_111] : memref<128x256xbf16, #tpu.memory_space<vmem>>, vector<128x256xbf16>
      %c0_112 = arith.constant 0 : index
      %c0_113 = arith.constant 0 : index
      %232 = vector.load %arg11[%c0_112, %c0_113] : memref<1x256xf32, #tpu.memory_space<vmem>>, vector<1x256xf32>
      %233 = arith.truncf %230 : vector<16x128xf32> to vector<16x128xbf16>
      %cst_114 = arith.constant dense<0.000000e+00> : vector<16x256xf32>
      %234 = tpu.matmul %233, %231, %cst_114 {dimension_numbers = #tpu.dot_dimension_numbers<[1], [0], [0], [1], [0, 0, 1, 1], [], []>} : vector<16x128xbf16>, vector<128x256xbf16>, vector<16x256xf32> -> vector<16x256xf32>
      %235 = vector.broadcast %232 : vector<1x256xf32> to vector<16x256xf32>
      %236 = arith.addf %234, %235 : vector<16x256xf32>
      %237 = tpu.transpose %236, [1, 0] : vector<16x256xf32> -> vector<256x16xf32>
      %238 = vector.extract_strided_slice %237 {offsets = [0, 0], sizes = [128, 16], strides = [1, 1]} : vector<256x16xf32> to vector<128x16xf32>
      %239 = vector.shape_cast %238 : vector<128x16xf32> to vector<4x32x16xf32>
      %240 = arith.truncf %239 : vector<4x32x16xf32> to vector<4x32x16xbf16>
      %241 = vector.extract_strided_slice %237 {offsets = [128, 0], sizes = [128, 16], strides = [1, 1]} : vector<256x16xf32> to vector<128x16xf32>
      %242 = vector.shape_cast %241 : vector<128x16xf32> to vector<4x32x16xf32>
      %243 = arith.truncf %242 : vector<4x32x16xf32> to vector<4x32x16xbf16>
      %c0_115 = arith.constant 0 : index
      %c0_116 = arith.constant 0 : index
      %c0_117 = arith.constant 0 : index
      %244 = vector.load %arg29[%c0_115, %c0_116, %c0_117] : memref<4x32x16xbf16, #tpu.memory_space<vmem>>, vector<4x32x16xbf16>
      tpu.vector_store %arg29[%c0_115, %c0_116, %c0_117], %240 {strides = array<i32>} : memref<4x32x16xbf16, #tpu.memory_space<vmem>>, vector<4x32x16xbf16>,
      %c0_118 = arith.constant 0 : index
      %c0_119 = arith.constant 0 : index
      %c0_120 = arith.constant 0 : index
      %245 = vector.load %arg30[%c0_118, %c0_119, %c0_120] : memref<4x32x16xbf16, #tpu.memory_space<vmem>>, vector<4x32x16xbf16>
      tpu.vector_store %arg30[%c0_118, %c0_119, %c0_120], %243 {strides = array<i32>} : memref<4x32x16xbf16, #tpu.memory_space<vmem>>, vector<4x32x16xbf16>,
      %c0_121 = arith.constant 0 : index
      %c0_122 = arith.constant 0 : index
      %c0_123 = arith.constant 0 : index
      %246 = vector.load %arg3[%c0_121, %c0_122, %c0_123] : memref<1x16x128xf32, #tpu.memory_space<vmem>>, vector<1x16x128xf32>
      %247 = vector.shape_cast %246 : vector<1x16x128xf32> to vector<16x128xf32>
      %c0_124 = arith.constant 0 : index
      %c0_125 = arith.constant 0 : index
      %248 = vector.load %arg18[%c0_124, %c0_125] : memref<128x256xbf16, #tpu.memory_space<vmem>>, vector<128x256xbf16>
      %c0_126 = arith.constant 0 : index
      %c0_127 = arith.constant 0 : index
      %249 = vector.load %arg19[%c0_126, %c0_127] : memref<1x256xf32, #tpu.memory_space<vmem>>, vector<1x256xf32>
      %250 = arith.truncf %247 : vector<16x128xf32> to vector<16x128xbf16>
      %cst_128 = arith.constant dense<0.000000e+00> : vector<16x256xf32>
      %251 = tpu.matmul %250, %248, %cst_128 {dimension_numbers = #tpu.dot_dimension_numbers<[1], [0], [0], [1], [0, 0, 1, 1], [], []>} : vector<16x128xbf16>, vector<128x256xbf16>, vector<16x256xf32> -> vector<16x256xf32>
      %252 = vector.broadcast %249 : vector<1x256xf32> to vector<16x256xf32>
      %253 = arith.addf %251, %252 : vector<16x256xf32>
      %254 = tpu.transpose %253, [1, 0] : vector<16x256xf32> -> vector<256x16xf32>
      %255 = vector.extract_strided_slice %254 {offsets = [0, 0], sizes = [128, 16], strides = [1, 1]} : vector<256x16xf32> to vector<128x16xf32>
      %256 = vector.shape_cast %255 : vector<128x16xf32> to vector<4x32x16xf32>
      %257 = arith.truncf %256 : vector<4x32x16xf32> to vector<4x32x16xbf16>
      %258 = vector.extract_strided_slice %254 {offsets = [128, 0], sizes = [128, 16], strides = [1, 1]} : vector<256x16xf32> to vector<128x16xf32>
      %259 = vector.shape_cast %258 : vector<128x16xf32> to vector<4x32x16xf32>
      %260 = arith.truncf %259 : vector<4x32x16xf32> to vector<4x32x16xbf16>
      %c0_129 = arith.constant 0 : index
      %c0_130 = arith.constant 0 : index
      %c0_131 = arith.constant 0 : index
      %261 = vector.load %arg31[%c0_129, %c0_130, %c0_131] : memref<4x32x16xbf16, #tpu.memory_space<vmem>>, vector<4x32x16xbf16>
      tpu.vector_store %arg31[%c0_129, %c0_130, %c0_131], %257 {strides = array<i32>} : memref<4x32x16xbf16, #tpu.memory_space<vmem>>, vector<4x32x16xbf16>,
      %c0_132 = arith.constant 0 : index
      %c0_133 = arith.constant 0 : index
      %c0_134 = arith.constant 0 : index
      %262 = vector.load %arg32[%c0_132, %c0_133, %c0_134] : memref<4x32x16xbf16, #tpu.memory_space<vmem>>, vector<4x32x16xbf16>
      tpu.vector_store %arg32[%c0_132, %c0_133, %c0_134], %260 {strides = array<i32>} : memref<4x32x16xbf16, #tpu.memory_space<vmem>>, vector<4x32x16xbf16>,
    } else {
    }
    %c0 = arith.constant 0 : index
    %5 = arith.index_cast %1 : i32 to index
    %c0_1 = arith.constant 0 : index
    %6 = vector.load %arg2[%c0, %5, %c0_1] : memref<1x16x128xf32, #tpu.memory_space<vmem>>, vector<1x16x128xf32>
    %7 = vector.shape_cast %6 : vector<1x16x128xf32> to vector<16x128xf32>
    %8 = tpu.iota {dimensions = array<i32: 0>} : vector<16x16xi32>
    %9 = vector.broadcast %1 : i32 to vector<16x16xi32>
    %10 = arith.addi %8, %9 : vector<16x16xi32>
    %11 = tpu.iota {dimensions = array<i32: 1>} : vector<16x16xi32>
    %12 = arith.cmpi sle, %11, %10 : vector<16x16xi32>
    %c0_2 = arith.constant 0 : index
    %c0_3 = arith.constant 0 : index
    %c0_4 = arith.constant 0 : index
    %13 = vector.load %arg4[%c0_2, %c0_3, %c0_4] : memref<1x1x16xf32, #tpu.memory_space<vmem>>, vector<1x1x16xf32>
    %14 = vector.shape_cast %13 : vector<1x1x16xf32> to vector<1x16xf32>
    %cst = arith.constant 5.000000e-01 : f32
    %15 = vector.broadcast %cst : f32 to vector<1x16xf32>
    %16 = arith.cmpf ogt, %14, %15 : vector<1x16xf32>
    %17 = vector.broadcast %16 : vector<1x16xi1> to vector<16x16xi1>
    %18 = arith.andi %12, %17 : vector<16x16xi1>
    %c0_5 = arith.constant 0 : index
    %c0_6 = arith.constant 0 : index
    %c0_7 = arith.constant 0 : index
    %19 = vector.load %arg5[%c0_5, %c0_6, %c0_7] : memref<1x1x16xf32, #tpu.memory_space<vmem>>, vector<1x1x16xf32>
    %20 = vector.shape_cast %19 : vector<1x1x16xf32> to vector<1x16xf32>
    %cst_8 = arith.constant 5.000000e-01 : f32
    %21 = vector.broadcast %cst_8 : f32 to vector<1x16xf32>
    %22 = arith.cmpf ogt, %20, %21 : vector<1x16xf32>
    %c0_9 = arith.constant 0 : index
    %c0_10 = arith.constant 0 : index
    %23 = vector.load %arg6[%c0_9, %c0_10] : memref<1x128xf32, #tpu.memory_space<vmem>>, vector<1x128xf32>
    %c0_11 = arith.constant 0 : index
    %c0_12 = arith.constant 0 : index
    %24 = vector.load %arg7[%c0_11, %c0_12] : memref<1x128xf32, #tpu.memory_space<vmem>>, vector<1x128xf32>
    %cst_13 = arith.constant dense<0.000000e+00> : vector<16xf32>
    %25 = vector.multi_reduction <add>, %7, %cst_13 [1] : vector<16x128xf32> to vector<16xf32>
    %26 = vector.shape_cast %25 : vector<16xf32> to vector<16x1xf32>
    %cst_14 = arith.constant 1.280000e+02 : f32
    %27 = vector.broadcast %cst_14 : f32 to vector<16x1xf32>
    %28 = arith.divf %26, %27 : vector<16x1xf32>
    %29 = vector.broadcast %28 : vector<16x1xf32> to vector<16x128xf32>
    %30 = arith.subf %7, %29 : vector<16x128xf32>
    %31 = arith.mulf %30, %30 : vector<16x128xf32>
    %cst_15 = arith.constant dense<0.000000e+00> : vector<16xf32>
    %32 = vector.multi_reduction <add>, %31, %cst_15 [1] : vector<16x128xf32> to vector<16xf32>
    %33 = vector.shape_cast %32 : vector<16xf32> to vector<16x1xf32>
    %cst_16 = arith.constant 1.270000e+02 : f32
    %34 = vector.broadcast %cst_16 : f32 to vector<16x1xf32>
    %35 = arith.divf %33, %34 : vector<16x1xf32>
    %36 = math.sqrt %35 : vector<16x1xf32>
    %cst_17 = arith.constant 9.99999997E-7 : f32
    %37 = vector.broadcast %cst_17 : f32 to vector<16x1xf32>
    %38 = arith.addf %36, %37 : vector<16x1xf32>
    %cst_18 = arith.constant 1.000000e+00 : f32
    %39 = vector.broadcast %cst_18 : f32 to vector<16x1xf32>
    %40 = arith.divf %39, %38 : vector<16x1xf32>
    %41 = vector.broadcast %28 : vector<16x1xf32> to vector<16x128xf32>
    %42 = arith.subf %7, %41 : vector<16x128xf32>
    %43 = vector.broadcast %23 : vector<1x128xf32> to vector<16x128xf32>
    %44 = arith.mulf %43, %42 : vector<16x128xf32>
    %45 = vector.broadcast %40 : vector<16x1xf32> to vector<16x128xf32>
    %46 = arith.mulf %44, %45 : vector<16x128xf32>
    %47 = vector.broadcast %24 : vector<1x128xf32> to vector<16x128xf32>
    %48 = arith.addf %46, %47 : vector<16x128xf32>
    %c0_19 = arith.constant 0 : index
    %c0_20 = arith.constant 0 : index
    %c0_21 = arith.constant 0 : index
    %49 = vector.load %arg29[%c0_19, %c0_20, %c0_21] : memref<4x32x16xbf16, #tpu.memory_space<vmem>>, vector<4x32x16xbf16>
    %c0_22 = arith.constant 0 : index
    %c0_23 = arith.constant 0 : index
    %c0_24 = arith.constant 0 : index
    %50 = vector.load %arg30[%c0_22, %c0_23, %c0_24] : memref<4x32x16xbf16, #tpu.memory_space<vmem>>, vector<4x32x16xbf16>
    %c0_25 = arith.constant 0 : index
    %c0_26 = arith.constant 0 : index
    %51 = vector.load %arg8[%c0_25, %c0_26] : memref<128x128xbf16, #tpu.memory_space<vmem>>, vector<128x128xbf16>
    %c0_27 = arith.constant 0 : index
    %c0_28 = arith.constant 0 : index
    %52 = vector.load %arg9[%c0_27, %c0_28] : memref<1x128xf32, #tpu.memory_space<vmem>>, vector<1x128xf32>
    %c0_29 = arith.constant 0 : index
    %c0_30 = arith.constant 0 : index
    %53 = vector.load %arg12[%c0_29, %c0_30] : memref<128x128xbf16, #tpu.memory_space<vmem>>, vector<128x128xbf16>
    %c0_31 = arith.constant 0 : index
    %c0_32 = arith.constant 0 : index
    %54 = vector.load %arg13[%c0_31, %c0_32] : memref<1x128xf32, #tpu.memory_space<vmem>>, vector<1x128xf32>
    %55 = arith.truncf %48 : vector<16x128xf32> to vector<16x128xbf16>
    %cst_33 = arith.constant dense<0.000000e+00> : vector<16x128xf32>
    %56 = tpu.matmul %55, %51, %cst_33 {dimension_numbers = #tpu.dot_dimension_numbers<[1], [0], [0], [1], [0, 0, 1, 1], [], []>} : vector<16x128xbf16>, vector<128x128xbf16>, vector<16x128xf32> -> vector<16x128xf32>
    %57 = vector.broadcast %52 : vector<1x128xf32> to vector<16x128xf32>
    %58 = arith.addf %56, %57 : vector<16x128xf32>
    %cst_34 = arith.constant 0.176776692 : f32
    %59 = vector.broadcast %cst_34 : f32 to vector<16x128xf32>
    %60 = arith.mulf %58, %59 : vector<16x128xf32>
    %61 = tpu.transpose %60, [1, 0] : vector<16x128xf32> -> vector<128x16xf32>
    %62 = vector.shape_cast %61 : vector<128x16xf32> to vector<4x32x16xf32>
    %63 = tpu.transpose %62, [0, 2, 1] : vector<4x32x16xf32> -> vector<4x16x32xf32>
    %64 = arith.truncf %63 : vector<4x16x32xf32> to vector<4x16x32xbf16>
    "tpu.trace_start"() <{level = 10 : i32, message = "htk,hks->hts"}> : () -> ()
    %cst_35 = arith.constant dense<0.000000e+00> : vector<4x16x16xf32>
    %65 = tpu.matmul %64, %49, %cst_35 {dimension_numbers = #tpu.dot_dimension_numbers<[2], [1], [1], [2], [0, 0, 0, 1, 1, 2], [0], [0]>} : vector<4x16x32xbf16>, vector<4x32x16xbf16>, vector<4x16x16xf32> -> vector<4x16x16xf32>
    "tpu.trace_stop"() : () -> ()
    %66 = vector.shape_cast %18 : vector<16x16xi1> to vector<1x16x16xi1>
    %cst_36 = arith.constant -1.000000e+09 : f32
    %67 = vector.shape_cast %66 : vector<1x16x16xi1> to vector<1x16x16xi1>
    %68 = vector.broadcast %67 : vector<1x16x16xi1> to vector<4x16x16xi1>
    %69 = vector.broadcast %cst_36 : f32 to vector<4x16x16xf32>
    %70 = arith.select %68, %65, %69 : vector<4x16x16xi1>, vector<4x16x16xf32>
    %cst_37 = arith.constant dense<0xFF800000> : vector<4x16xf32>
    %71 = vector.multi_reduction <maximumf>, %70, %cst_37 [2] : vector<4x16x16xf32> to vector<4x16xf32>
    %72 = vector.shape_cast %71 : vector<4x16xf32> to vector<4x16x1xf32>
    %73 = vector.broadcast %72 : vector<4x16x1xf32> to vector<4x16x16xf32>
    %74 = arith.subf %70, %73 : vector<4x16x16xf32>
    %75 = math.exp %74 : vector<4x16x16xf32>
    %cst_38 = arith.constant dense<0.000000e+00> : vector<4x16xf32>
    %76 = vector.multi_reduction <add>, %75, %cst_38 [2] : vector<4x16x16xf32> to vector<4x16xf32>
    %77 = vector.shape_cast %76 : vector<4x16xf32> to vector<4x16x1xf32>
    %78 = tpu.reciprocal %77 {approx = true} : vector<4x16x1xf32> -> vector<4x16x1xf32>
    %79 = vector.broadcast %78 : vector<4x16x1xf32> to vector<4x16x16xf32>
    %80 = arith.mulf %75, %79 : vector<4x16x16xf32>
    %81 = arith.truncf %80 : vector<4x16x16xf32> to vector<4x16x16xbf16>
    "tpu.trace_start"() <{level = 10 : i32, message = "hts,hks->htk"}> : () -> ()
    %cst_39 = arith.constant dense<0.000000e+00> : vector<4x16x32xf32>
    %82 = tpu.matmul %81, %50, %cst_39 {dimension_numbers = #tpu.dot_dimension_numbers<[2], [2], [1], [1], [0, 0, 0, 1, 1, 1], [0], [0]>} : vector<4x16x16xbf16>, vector<4x32x16xbf16>, vector<4x16x32xf32> -> vector<4x16x32xf32>
    "tpu.trace_stop"() : () -> ()
    %83 = tpu.transpose %82, [0, 2, 1] : vector<4x16x32xf32> -> vector<4x32x16xf32>
    %84 = vector.shape_cast %83 : vector<4x32x16xf32> to vector<128x16xf32>
    %85 = tpu.transpose %84, [1, 0] : vector<128x16xf32> -> vector<16x128xf32>
    %86 = arith.truncf %85 : vector<16x128xf32> to vector<16x128xbf16>
    %cst_40 = arith.constant dense<0.000000e+00> : vector<16x128xf32>
    %87 = tpu.matmul %86, %53, %cst_40 {dimension_numbers = #tpu.dot_dimension_numbers<[1], [0], [0], [1], [0, 0, 1, 1], [], []>} : vector<16x128xbf16>, vector<128x128xbf16>, vector<16x128xf32> -> vector<16x128xf32>
    %88 = vector.broadcast %54 : vector<1x128xf32> to vector<16x128xf32>
    %89 = arith.addf %87, %88 : vector<16x128xf32>
    %90 = arith.addf %7, %89 : vector<16x128xf32>
    %c0_41 = arith.constant 0 : index
    %c0_42 = arith.constant 0 : index
    %91 = vector.load %arg14[%c0_41, %c0_42] : memref<1x128xf32, #tpu.memory_space<vmem>>, vector<1x128xf32>
    %c0_43 = arith.constant 0 : index
    %c0_44 = arith.constant 0 : index
    %92 = vector.load %arg15[%c0_43, %c0_44] : memref<1x128xf32, #tpu.memory_space<vmem>>, vector<1x128xf32>
    %cst_45 = arith.constant dense<0.000000e+00> : vector<16xf32>
    %93 = vector.multi_reduction <add>, %90, %cst_45 [1] : vector<16x128xf32> to vector<16xf32>
    %94 = vector.shape_cast %93 : vector<16xf32> to vector<16x1xf32>
    %cst_46 = arith.constant 1.280000e+02 : f32
    %95 = vector.broadcast %cst_46 : f32 to vector<16x1xf32>
    %96 = arith.divf %94, %95 : vector<16x1xf32>
    %97 = vector.broadcast %96 : vector<16x1xf32> to vector<16x128xf32>
    %98 = arith.subf %90, %97 : vector<16x128xf32>
    %99 = arith.mulf %98, %98 : vector<16x128xf32>
    %cst_47 = arith.constant dense<0.000000e+00> : vector<16xf32>
    %100 = vector.multi_reduction <add>, %99, %cst_47 [1] : vector<16x128xf32> to vector<16xf32>
    %101 = vector.shape_cast %100 : vector<16xf32> to vector<16x1xf32>
    %cst_48 = arith.constant 1.270000e+02 : f32
    %102 = vector.broadcast %cst_48 : f32 to vector<16x1xf32>
    %103 = arith.divf %101, %102 : vector<16x1xf32>
    %104 = math.sqrt %103 : vector<16x1xf32>
    %cst_49 = arith.constant 9.99999997E-7 : f32
    %105 = vector.broadcast %cst_49 : f32 to vector<16x1xf32>
    %106 = arith.addf %104, %105 : vector<16x1xf32>
    %cst_50 = arith.constant 1.000000e+00 : f32
    %107 = vector.broadcast %cst_50 : f32 to vector<16x1xf32>
    %108 = arith.divf %107, %106 : vector<16x1xf32>
    %109 = vector.broadcast %96 : vector<16x1xf32> to vector<16x128xf32>
    %110 = arith.subf %90, %109 : vector<16x128xf32>
    %111 = vector.broadcast %91 : vector<1x128xf32> to vector<16x128xf32>
    %112 = arith.mulf %111, %110 : vector<16x128xf32>
    %113 = vector.broadcast %108 : vector<16x1xf32> to vector<16x128xf32>
    %114 = arith.mulf %112, %113 : vector<16x128xf32>
    %115 = vector.broadcast %92 : vector<1x128xf32> to vector<16x128xf32>
    %116 = arith.addf %114, %115 : vector<16x128xf32>
    %c0_51 = arith.constant 0 : index
    %c0_52 = arith.constant 0 : index
    %c0_53 = arith.constant 0 : index
    %117 = vector.load %arg31[%c0_51, %c0_52, %c0_53] : memref<4x32x16xbf16, #tpu.memory_space<vmem>>, vector<4x32x16xbf16>
    %c0_54 = arith.constant 0 : index
    %c0_55 = arith.constant 0 : index
    %c0_56 = arith.constant 0 : index
    %118 = vector.load %arg32[%c0_54, %c0_55, %c0_56] : memref<4x32x16xbf16, #tpu.memory_space<vmem>>, vector<4x32x16xbf16>
    %c0_57 = arith.constant 0 : index
    %c0_58 = arith.constant 0 : index
    %119 = vector.load %arg16[%c0_57, %c0_58] : memref<128x128xbf16, #tpu.memory_space<vmem>>, vector<128x128xbf16>
    %c0_59 = arith.constant 0 : index
    %c0_60 = arith.constant 0 : index
    %120 = vector.load %arg17[%c0_59, %c0_60] : memref<1x128xf32, #tpu.memory_space<vmem>>, vector<1x128xf32>
    %c0_61 = arith.constant 0 : index
    %c0_62 = arith.constant 0 : index
    %121 = vector.load %arg20[%c0_61, %c0_62] : memref<128x128xbf16, #tpu.memory_space<vmem>>, vector<128x128xbf16>
    %c0_63 = arith.constant 0 : index
    %c0_64 = arith.constant 0 : index
    %122 = vector.load %arg21[%c0_63, %c0_64] : memref<1x128xf32, #tpu.memory_space<vmem>>, vector<1x128xf32>
    %123 = arith.truncf %116 : vector<16x128xf32> to vector<16x128xbf16>
    %cst_65 = arith.constant dense<0.000000e+00> : vector<16x128xf32>
    %124 = tpu.matmul %123, %119, %cst_65 {dimension_numbers = #tpu.dot_dimension_numbers<[1], [0], [0], [1], [0, 0, 1, 1], [], []>} : vector<16x128xbf16>, vector<128x128xbf16>, vector<16x128xf32> -> vector<16x128xf32>
    %125 = vector.broadcast %120 : vector<1x128xf32> to vector<16x128xf32>
    %126 = arith.addf %124, %125 : vector<16x128xf32>
    %cst_66 = arith.constant 0.176776692 : f32
    %127 = vector.broadcast %cst_66 : f32 to vector<16x128xf32>
    %128 = arith.mulf %126, %127 : vector<16x128xf32>
    %129 = tpu.transpose %128, [1, 0] : vector<16x128xf32> -> vector<128x16xf32>
    %130 = vector.shape_cast %129 : vector<128x16xf32> to vector<4x32x16xf32>
    %131 = tpu.transpose %130, [0, 2, 1] : vector<4x32x16xf32> -> vector<4x16x32xf32>
    %132 = arith.truncf %131 : vector<4x16x32xf32> to vector<4x16x32xbf16>
    "tpu.trace_start"() <{level = 10 : i32, message = "htk,hks->hts"}> : () -> ()
    %cst_67 = arith.constant dense<0.000000e+00> : vector<4x16x16xf32>
    %133 = tpu.matmul %132, %117, %cst_67 {dimension_numbers = #tpu.dot_dimension_numbers<[2], [1], [1], [2], [0, 0, 0, 1, 1, 2], [0], [0]>} : vector<4x16x32xbf16>, vector<4x32x16xbf16>, vector<4x16x16xf32> -> vector<4x16x16xf32>
    "tpu.trace_stop"() : () -> ()
    %134 = vector.shape_cast %22 : vector<1x16xi1> to vector<1x1x16xi1>
    %cst_68 = arith.constant -1.000000e+09 : f32
    %135 = vector.shape_cast %134 : vector<1x1x16xi1> to vector<1x1x16xi1>
    %136 = vector.broadcast %135 : vector<1x1x16xi1> to vector<4x16x16xi1>
    %137 = vector.broadcast %cst_68 : f32 to vector<4x16x16xf32>
    %138 = arith.select %136, %133, %137 : vector<4x16x16xi1>, vector<4x16x16xf32>
    %cst_69 = arith.constant dense<0xFF800000> : vector<4x16xf32>
    %139 = vector.multi_reduction <maximumf>, %138, %cst_69 [2] : vector<4x16x16xf32> to vector<4x16xf32>
    %140 = vector.shape_cast %139 : vector<4x16xf32> to vector<4x16x1xf32>
    %141 = vector.broadcast %140 : vector<4x16x1xf32> to vector<4x16x16xf32>
    %142 = arith.subf %138, %141 : vector<4x16x16xf32>
    %143 = math.exp %142 : vector<4x16x16xf32>
    %cst_70 = arith.constant dense<0.000000e+00> : vector<4x16xf32>
    %144 = vector.multi_reduction <add>, %143, %cst_70 [2] : vector<4x16x16xf32> to vector<4x16xf32>
    %145 = vector.shape_cast %144 : vector<4x16xf32> to vector<4x16x1xf32>
    %146 = tpu.reciprocal %145 {approx = true} : vector<4x16x1xf32> -> vector<4x16x1xf32>
    %147 = vector.broadcast %146 : vector<4x16x1xf32> to vector<4x16x16xf32>
    %148 = arith.mulf %143, %147 : vector<4x16x16xf32>
    %149 = arith.truncf %148 : vector<4x16x16xf32> to vector<4x16x16xbf16>
    "tpu.trace_start"() <{level = 10 : i32, message = "hts,hks->htk"}> : () -> ()
    %cst_71 = arith.constant dense<0.000000e+00> : vector<4x16x32xf32>
    %150 = tpu.matmul %149, %118, %cst_71 {dimension_numbers = #tpu.dot_dimension_numbers<[2], [2], [1], [1], [0, 0, 0, 1, 1, 1], [0], [0]>} : vector<4x16x16xbf16>, vector<4x32x16xbf16>, vector<4x16x32xf32> -> vector<4x16x32xf32>
    "tpu.trace_stop"() : () -> ()
    %151 = tpu.transpose %150, [0, 2, 1] : vector<4x16x32xf32> -> vector<4x32x16xf32>
    %152 = vector.shape_cast %151 : vector<4x32x16xf32> to vector<128x16xf32>
    %153 = tpu.transpose %152, [1, 0] : vector<128x16xf32> -> vector<16x128xf32>
    %154 = arith.truncf %153 : vector<16x128xf32> to vector<16x128xbf16>
    %cst_72 = arith.constant dense<0.000000e+00> : vector<16x128xf32>
    %155 = tpu.matmul %154, %121, %cst_72 {dimension_numbers = #tpu.dot_dimension_numbers<[1], [0], [0], [1], [0, 0, 1, 1], [], []>} : vector<16x128xbf16>, vector<128x128xbf16>, vector<16x128xf32> -> vector<16x128xf32>
    %156 = vector.broadcast %122 : vector<1x128xf32> to vector<16x128xf32>
    %157 = arith.addf %155, %156 : vector<16x128xf32>
    %158 = arith.addf %90, %157 : vector<16x128xf32>
    %c0_73 = arith.constant 0 : index
    %c0_74 = arith.constant 0 : index
    %159 = vector.load %arg22[%c0_73, %c0_74] : memref<1x128xf32, #tpu.memory_space<vmem>>, vector<1x128xf32>
    %c0_75 = arith.constant 0 : index
    %c0_76 = arith.constant 0 : index
    %160 = vector.load %arg23[%c0_75, %c0_76] : memref<1x128xf32, #tpu.memory_space<vmem>>, vector<1x128xf32>
    %cst_77 = arith.constant dense<0.000000e+00> : vector<16xf32>
    %161 = vector.multi_reduction <add>, %158, %cst_77 [1] : vector<16x128xf32> to vector<16xf32>
    %162 = vector.shape_cast %161 : vector<16xf32> to vector<16x1xf32>
    %cst_78 = arith.constant 1.280000e+02 : f32
    %163 = vector.broadcast %cst_78 : f32 to vector<16x1xf32>
    %164 = arith.divf %162, %163 : vector<16x1xf32>
    %165 = vector.broadcast %164 : vector<16x1xf32> to vector<16x128xf32>
    %166 = arith.subf %158, %165 : vector<16x128xf32>
    %167 = arith.mulf %166, %166 : vector<16x128xf32>
    %cst_79 = arith.constant dense<0.000000e+00> : vector<16xf32>
    %168 = vector.multi_reduction <add>, %167, %cst_79 [1] : vector<16x128xf32> to vector<16xf32>
    %169 = vector.shape_cast %168 : vector<16xf32> to vector<16x1xf32>
    %cst_80 = arith.constant 1.270000e+02 : f32
    %170 = vector.broadcast %cst_80 : f32 to vector<16x1xf32>
    %171 = arith.divf %169, %170 : vector<16x1xf32>
    %172 = math.sqrt %171 : vector<16x1xf32>
    %cst_81 = arith.constant 9.99999997E-7 : f32
    %173 = vector.broadcast %cst_81 : f32 to vector<16x1xf32>
    %174 = arith.addf %172, %173 : vector<16x1xf32>
    %cst_82 = arith.constant 1.000000e+00 : f32
    %175 = vector.broadcast %cst_82 : f32 to vector<16x1xf32>
    %176 = arith.divf %175, %174 : vector<16x1xf32>
    %177 = vector.broadcast %164 : vector<16x1xf32> to vector<16x128xf32>
    %178 = arith.subf %158, %177 : vector<16x128xf32>
    %179 = vector.broadcast %159 : vector<1x128xf32> to vector<16x128xf32>
    %180 = arith.mulf %179, %178 : vector<16x128xf32>
    %181 = vector.broadcast %176 : vector<16x1xf32> to vector<16x128xf32>
    %182 = arith.mulf %180, %181 : vector<16x128xf32>
    %183 = vector.broadcast %160 : vector<1x128xf32> to vector<16x128xf32>
    %184 = arith.addf %182, %183 : vector<16x128xf32>
    %185 = arith.truncf %184 : vector<16x128xf32> to vector<16x128xbf16>
    %c0_83 = arith.constant 0 : index
    %c0_84 = arith.constant 0 : index
    %186 = vector.load %arg24[%c0_83, %c0_84] : memref<128x256xbf16, #tpu.memory_space<vmem>>, vector<128x256xbf16>
    %cst_85 = arith.constant dense<0.000000e+00> : vector<16x256xf32>
    %187 = tpu.matmul %185, %186, %cst_85 {dimension_numbers = #tpu.dot_dimension_numbers<[1], [0], [0], [1], [0, 0, 1, 1], [], []>} : vector<16x128xbf16>, vector<128x256xbf16>, vector<16x256xf32> -> vector<16x256xf32>
    %c0_86 = arith.constant 0 : index
    %c0_87 = arith.constant 0 : index
    %188 = vector.load %arg25[%c0_86, %c0_87] : memref<1x256xf32, #tpu.memory_space<vmem>>, vector<1x256xf32>
    %189 = vector.broadcast %188 : vector<1x256xf32> to vector<16x256xf32>
    %190 = arith.addf %187, %189 : vector<16x256xf32>
    %cst_88 = arith.constant 0.000000e+00 : f32
    %191 = vector.broadcast %cst_88 : f32 to vector<16x256xf32>
    %192 = arith.maximumf %190, %191 : vector<16x256xf32>
    %193 = arith.truncf %192 : vector<16x256xf32> to vector<16x256xbf16>
    %c0_89 = arith.constant 0 : index
    %c0_90 = arith.constant 0 : index
    %194 = vector.load %arg26[%c0_89, %c0_90] : memref<256x128xbf16, #tpu.memory_space<vmem>>, vector<256x128xbf16>
    %cst_91 = arith.constant dense<0.000000e+00> : vector<16x128xf32>
    %195 = tpu.matmul %193, %194, %cst_91 {dimension_numbers = #tpu.dot_dimension_numbers<[1], [0], [0], [1], [0, 0, 1, 1], [], []>} : vector<16x256xbf16>, vector<256x128xbf16>, vector<16x128xf32> -> vector<16x128xf32>
    %196 = arith.addf %158, %195 : vector<16x128xf32>
    %c0_92 = arith.constant 0 : index
    %c0_93 = arith.constant 0 : index
    %197 = vector.load %arg27[%c0_92, %c0_93] : memref<1x128xf32, #tpu.memory_space<vmem>>, vector<1x128xf32>
    %198 = vector.broadcast %197 : vector<1x128xf32> to vector<16x128xf32>
    %199 = arith.addf %196, %198 : vector<16x128xf32>
    %c0_94 = arith.constant 0 : index
    %c0_95 = arith.constant 0 : index
    %c0_96 = arith.constant 0 : index
    %200 = vector.load %arg28[%c0_94, %c0_95, %c0_96] : memref<1x16x128xf32, #tpu.memory_space<vmem>>, vector<1x16x128xf32>
    %201 = vector.shape_cast %200 : vector<1x16x128xf32> to vector<16x128xf32>
    %202 = vector.shape_cast %199 : vector<16x128xf32> to vector<1x16x128xf32>
    tpu.vector_store %arg28[%c0_94, %c0_95, %c0_96], %202 {strides = array<i32>} : memref<1x16x128xf32, #tpu.memory_space<vmem>>, vector<1x16x128xf32>,
    return
  }
  func.func @transform_0(%arg0: i32, %arg1: i32) -> (i32, i32, i32) {
    %c0_i32 = arith.constant 0 : i32
    %c0_i32_0 = arith.constant 0 : i32
    %c0_i32_1 = arith.constant 0 : i32
    return %arg0, %c0_i32, %c0_i32_0 : i32, i32, i32
  }
  func.func @transform_1(%arg0: i32, %arg1: i32) -> (i32, i32, i32) {
    %c0_i32 = arith.constant 0 : i32
    %c0_i32_0 = arith.constant 0 : i32
    %c0_i32_1 = arith.constant 0 : i32
    return %arg0, %c0_i32, %c0_i32_0 : i32, i32, i32
  }
  func.func @transform_2(%arg0: i32, %arg1: i32) -> (i32, i32, i32) {
    %c0_i32 = arith.constant 0 : i32
    %c0_i32_0 = arith.constant 0 : i32
    %c0_i32_1 = arith.constant 0 : i32
    return %arg0, %c0_i32, %c0_i32_0 : i32, i32, i32
  }
  func.func @transform_3(%arg0: i32, %arg1: i32) -> (i32, i32, i32) {
    %c0_i32 = arith.constant 0 : i32
    %c0_i32_0 = arith.constant 0 : i32
    %c0_i32_1 = arith.constant 0 : i32
    return %arg0, %c0_i32, %c0_i32_0 : i32, i32, i32
  }
  func.func @transform_4(%arg0: i32, %arg1: i32) -> (i32, i32) {
    %c0_i32 = arith.constant 0 : i32
    %c0_i32_0 = arith.constant 0 : i32
    %c0_i32_1 = arith.constant 0 : i32
    return %c0_i32, %c0_i32_0 : i32, i32
  }
  func.func @transform_5(%arg0: i32, %arg1: i32) -> (i32, i32) {
    %c0_i32 = arith.constant 0 : i32
    %c0_i32_0 = arith.constant 0 : i32
    %c0_i32_1 = arith.constant 0 : i32
    return %c0_i32, %c0_i32_0 : i32, i32
  }
  func.func @transform_6(%arg0: i32, %arg1: i32) -> (i32, i32) {
    %c0_i32 = arith.constant 0 : i32
    %c0_i32_0 = arith.constant 0 : i32
    %c0_i32_1 = arith.constant 0 : i32
    return %c0_i32, %c0_i32_0 : i32, i32
  }
  func.func @transform_7(%arg0: i32, %arg1: i32) -> (i32, i32) {
    %c0_i32 = arith.constant 0 : i32
    %c0_i32_0 = arith.constant 0 : i32
    %c0_i32_1 = arith.constant 0 : i32
    return %c0_i32, %c0_i32_0 : i32, i32
  }
  func.func @transform_8(%arg0: i32, %arg1: i32) -> (i32, i32) {
    %c0_i32 = arith.constant 0 : i32
    %c0_i32_0 = arith.constant 0 : i32
    %c0_i32_1 = arith.constant 0 : i32
    return %c0_i32, %c0_i32_0 : i32, i32
  }
  func.func @transform_9(%arg0: i32, %arg1: i32) -> (i32, i32) {
    %c0_i32 = arith.constant 0 : i32
    %c0_i32_0 = arith.constant 0 : i32
    %c0_i32_1 = arith.constant 0 : i32
    return %c0_i32, %c0_i32_0 : i32, i32
  }
  func.func @transform_10(%arg0: i32, %arg1: i32) -> (i32, i32) {
    %c0_i32 = arith.constant 0 : i32
    %c0_i32_0 = arith.constant 0 : i32
    %c0_i32_1 = arith.constant 0 : i32
    return %c0_i32, %c0_i32_0 : i32, i32
  }
  func.func @transform_11(%arg0: i32, %arg1: i32) -> (i32, i32) {
    %c0_i32 = arith.constant 0 : i32
    %c0_i32_0 = arith.constant 0 : i32
    %c0_i32_1 = arith.constant 0 : i32
    return %c0_i32, %c0_i32_0 : i32, i32
  }
  func.func @transform_12(%arg0: i32, %arg1: i32) -> (i32, i32) {
    %c0_i32 = arith.constant 0 : i32
    %c0_i32_0 = arith.constant 0 : i32
    %c0_i32_1 = arith.constant 0 : i32
    return %c0_i32, %c0_i32_0 : i32, i32
  }
  func.func @transform_13(%arg0: i32, %arg1: i32) -> (i32, i32) {
    %c0_i32 = arith.constant 0 : i32
    %c0_i32_0 = arith.constant 0 : i32
    %c0_i32_1 = arith.constant 0 : i32
    return %c0_i32, %c0_i32_0 : i32, i32
  }
  func.func @transform_14(%arg0: i32, %arg1: i32) -> (i32, i32) {
    %c0_i32 = arith.constant 0 : i32
    %c0_i32_0 = arith.constant 0 : i32
    %c0_i32_1 = arith.constant 0 : i32
    return %c0_i32, %c0_i32_0 : i32, i32
  }
  func.func @transform_15(%arg0: i32, %arg1: i32) -> (i32, i32) {
    %c0_i32 = arith.constant 0 : i32
    %c0_i32_0 = arith.constant 0 : i32
    %c0_i32_1 = arith.constant 0 : i32
    return %c0_i32, %c0_i32_0 : i32, i32
  }
  func.func @transform_16(%arg0: i32, %arg1: i32) -> (i32, i32) {
    %c0_i32 = arith.constant 0 : i32
    %c0_i32_0 = arith.constant 0 : i32
    %c0_i32_1 = arith.constant 0 : i32
    return %c0_i32, %c0_i32_0 : i32, i32
  }
  func.func @transform_17(%arg0: i32, %arg1: i32) -> (i32, i32) {
    %c0_i32 = arith.constant 0 : i32
    %c0_i32_0 = arith.constant 0 : i32
    %c0_i32_1 = arith.constant 0 : i32
    return %c0_i32, %c0_i32_0 : i32, i32
  }
  func.func @transform_18(%arg0: i32, %arg1: i32) -> (i32, i32) {
    %c0_i32 = arith.constant 0 : i32
    %c0_i32_0 = arith.constant 0 : i32
    %c0_i32_1 = arith.constant 0 : i32
    return %c0_i32, %c0_i32_0 : i32, i32
  }
  func.func @transform_19(%arg0: i32, %arg1: i32) -> (i32, i32) {
    %c0_i32 = arith.constant 0 : i32
    %c0_i32_0 = arith.constant 0 : i32
    %c0_i32_1 = arith.constant 0 : i32
    return %c0_i32, %c0_i32_0 : i32, i32
  }
  func.func @transform_20(%arg0: i32, %arg1: i32) -> (i32, i32) {
    %c0_i32 = arith.constant 0 : i32
    %c0_i32_0 = arith.constant 0 : i32
    %c0_i32_1 = arith.constant 0 : i32
    return %c0_i32, %c0_i32_0 : i32, i32
  }
  func.func @transform_21(%arg0: i32, %arg1: i32) -> (i32, i32) {
    %c0_i32 = arith.constant 0 : i32
    %c0_i32_0 = arith.constant 0 : i32
    %c0_i32_1 = arith.constant 0 : i32
    return %c0_i32, %c0_i32_0 : i32, i32
  }
  func.func @transform_22(%arg0: i32, %arg1: i32) -> (i32, i32) {
    %c0_i32 = arith.constant 0 : i32
    %c0_i32_0 = arith.constant 0 : i32
    %c0_i32_1 = arith.constant 0 : i32
    return %c0_i32, %c0_i32_0 : i32, i32
  }
  func.func @transform_23(%arg0: i32, %arg1: i32) -> (i32, i32) {
    %c0_i32 = arith.constant 0 : i32
    %c0_i32_0 = arith.constant 0 : i32
    %c0_i32_1 = arith.constant 0 : i32
    return %c0_i32, %c0_i32_0 : i32, i32
  }
  func.func @transform_24(%arg0: i32, %arg1: i32) -> (i32, i32) {
    %c0_i32 = arith.constant 0 : i32
    %c0_i32_0 = arith.constant 0 : i32
    %c0_i32_1 = arith.constant 0 : i32
    return %c0_i32, %c0_i32_0 : i32, i32
  }
  func.func @transform_25(%arg0: i32, %arg1: i32) -> (i32, i32) {
    %c0_i32 = arith.constant 0 : i32
    %c0_i32_0 = arith.constant 0 : i32
    %c0_i32_1 = arith.constant 0 : i32
    return %c0_i32, %c0_i32_0 : i32, i32
  }
  func.func @transform_26(%arg0: i32, %arg1: i32) -> (i32, i32, i32) {
    %c0_i32 = arith.constant 0 : i32
    %c0_i32_0 = arith.constant 0 : i32
    return %arg0, %arg1, %c0_i32 : i32, i32, i32
  }
}

</mosaic_0001>

<bundles_post_ra>
// kernel: tpu_custom_call.1
= control target key start
LH: loop header
LB: loop body
LE: loop exit
PB: predicated region body
PF: predicated region fallthrough
CT: control target
= control target key end

     0   :  { %s7182_s0 = inlined_call_operand.hbm [shape: f32[2,16,128], index: 0, kind: input, shape index: {}]   ;;  %s7183_s1 = inlined_call_operand.hbm [shape: f32[2,16,128], index: 1, kind: input, shape index: {}]   ;;  %s7184_s2 = inlined_call_operand.hbm [shape: f32[2,1,16], index: 2, kind: input, shape index: {}]   ;;  %s7185_s3 = inlined_call_operand.vmem [shape: f32[2,1,16], index: 3, kind: input, shape index: {}]   ;;  %s7186_s4 = inlined_call_operand.hbm [shape: f32[1,128], index: 4, kind: input, shape index: {}]   ;;  %s7187_s5 = inlined_call_operand.hbm [shape: f32[1,128], index: 5, kind: input, shape index: {}]   ;;  %s7188_s6 = inlined_call_operand.hbm [shape: bf16[128,128], index: 6, kind: input, shape index: {}]   ;;  %s7189_s7 = inlined_call_operand.hbm [shape: f32[1,128], index: 7, kind: input, shape index: {}]   ;;  %s7190_s8 = inlined_call_operand.hbm [shape: bf16[128,256], index: 8, kind: input, shape index: {}]   ;;  %s7191_s9 = inlined_call_operand.vmem [shape: f32[1,256], index: 9, kind: input, shape index: {}]   ;;  %s7192_s10 = inlined_call_operand.hbm [shape: bf16[128,128], index: 10, kind: input, shape index: {}]   ;;  %s7193_s11 = inlined_call_operand.vmem [shape: f32[1,128], index: 11, kind: input, shape index: {}]   ;;  %s7194_s12 = inlined_call_operand.vmem [shape: f32[1,128], index: 12, kind: input, shape index: {}]   ;;  %s7195_s13 = inlined_call_operand.vmem [shape: f32[1,128], index: 13, kind: input, shape index: {}]   ;;  %s7196_s14 = inlined_call_operand.hbm [shape: bf16[128,128], index: 14, kind: input, shape index: {}]   ;;  %s7197_s15 = inlined_call_operand.vmem [shape: f32[1,128], index: 15, kind: input, shape index: {}]   ;;  %s7198_s16 = inlined_call_operand.hbm [shape: bf16[128,256], index: 16, kind: input, shape index: {}]   ;;  %s7199_s17 = inlined_call_operand.vmem [shape: f32[1,256], index: 17, kind: input, shape index: {}]   ;;  %s7200_s18 = inlined_call_operand.hbm [shape: bf16[128,128], index: 18, kind: input, shape index: {}]   ;;  %s7201_s19 = inlined_call_operand.vmem [shape: f32[1,128], index: 19, kind: input, shape index: {}]   ;;  %s7202_s20 = inlined_call_operand.vmem [shape: f32[1,128], index: 20, kind: input, shape index: {}]   ;;  %s7203_s21 = inlined_call_operand.vmem [shape: f32[1,128], index: 21, kind: input, shape index: {}]   ;;  %s7204_s22 = inlined_call_operand.hbm [shape: bf16[128,256], index: 22, kind: input, shape index: {}]   ;;  %s7205_s23 = inlined_call_operand.vmem [shape: f32[1,256], index: 23, kind: input, shape index: {}]   ;;  %s7206_s24 = inlined_call_operand.hbm [shape: bf16[256,128], index: 24, kind: input, shape index: {}]   ;;  %s7207_s25 = inlined_call_operand.vmem [shape: f32[1,128], index: 25, kind: input, shape index: {}]   ;;  %s7208_s26 = inlined_call_operand.hbm [shape: f32[2,16,128], index: 26, kind: output, shape index: {}]  }
   0x1   :  { %7229 = sst [smem:[#allocation47_spill]] %s7182_s0 }
   0x2   :  { %7230 = sst [smem:[#allocation48_spill]] %s7183_s1 }
   0x3   :  { %7231 = sst [smem:[#allocation49_spill]] %s7184_s2 }
   0x4   :  { %7232 = sst [smem:[#allocation50_spill]] %s7185_s3 }
   0x5   :  { %7233 = sst [smem:[#allocation51_spill]] %s7186_s4 }
   0x6   :  { %7234 = sst [smem:[#allocation52_spill]] %s7187_s5 }
   0x7   :  { %7235 = sst [smem:[#allocation53_spill]] %s7188_s6 }
   0x8   :  { %7236 = sst [smem:[#allocation54_spill]] %s7189_s7 }
   0x9   :  { %7237 = sst [smem:[#allocation55_spill]] %s7190_s8 }
   0xa   :  { %7238 = sst [smem:[#allocation56_spill]] %s7191_s9 }
   0xb   :  { %7239 = sst [smem:[#allocation57_spill]] %s7192_s10 }
   0xc   :  { %7240 = sst [smem:[#allocation58_spill]] %s7195_s13 }
   0xd   :  { %7241 = sst [smem:[#allocation59_spill]] %s7196_s14 }
   0xe   :  { %7242 = sst [smem:[#allocation60_spill]] %s7197_s15 }
   0xf   :  { %7243 = sst [smem:[#allocation61_spill]] %s7198_s16 }
  0x10   :  { %7244 = sst [smem:[#allocation62_spill]] %s7199_s17 }
  0x11   :  { %7245 = sst [smem:[#allocation63_spill]] %s7200_s18 }
  0x12   :  { %7246 = sst [smem:[#allocation64_spill]] %s7201_s19 }
  0x13   :  { %7247 = sst [smem:[#allocation65_spill]] %s7202_s20 }
  0x14   :  { %7248 = sst [smem:[#allocation66_spill]] %s7203_s21 }
  0x15   :  { %7249 = sst [smem:[#allocation67_spill]] %s7205_s23 }
  0x16   :  { %7250 = sst [smem:[#allocation68_spill]] %s7207_s25 }
  0x17   :  { %7251 = sst [smem:[#allocation69_spill]] %s7208_s26 }
  0x18   :  { %31 = vsyncpa [#allocation7], 0 }
  0x19   :  { %33 = vsyncpa [#allocation7 + $0x1], 0 }
  0x1a   :  { %34 = vsyncpa [#allocation10], 0 }
  0x1b   :  { %36 = vsyncpa [#allocation10 + $0x1], 0 }
  0x1c   :  { %37 = vsyncpa [#allocation13], 0 }
  0x1d   :  { %38 = vsyncpa [#allocation16], 0 }
  0x1e   :  { %39 = vsyncpa [#allocation19], 0 }
  0x1f   :  { %40 = vsyncpa [#allocation22], 0 }
  0x20   :  { %41 = vsyncpa [#allocation25], 0 }
  0x21   :  { %42 = vsyncpa [#allocation28], 0 }
  0x22   :  { %43 = vsyncpa [#allocation8], 0 }
  0x23   :  { %45 = vsyncpa [#allocation8 + $0x1], 0  ;;  %s6404_s27 = smov 0   ;;  %s6406_s3 = smov 0  }
  0x24   :  { %s6408_s7 = smov 0   ;;  %s6410_s28 = smov 0  }
  0x25   :  { %s6412_s8 = smov 0   ;;  %s6414_s4 = smov 0  }
  0x26 LB: > { %7252 = sst [smem:[#allocation39_spill]] %s6227_s27  ;;  %s6435_s29 = sadd.s32 4294967295, %s6247_s4   ;;  %s6247_s4 = sphi %s6414_s4, %s51_s4   ;;  %s6243_s8 = sphi %s6412_s8, %s7320_s8   ;;  %s6239_s28 = sphi %s6410_s28, %s7319_s28   ;;  %s6235_s7 = sphi %s6408_s7, %s7315_s7   ;;  %s6231_s3 = sphi %s6406_s3, %s7318_s3   ;;  %s6227_s27 = sphi %s6404_s27, %s7317_s27  }
  0x27   : > { %7253 = sst [smem:[#allocation40_spill]] %s6235_s7  ;;  %p4429_p0 = scmp.ge.s32.totalorder %s6247_s4, 1 }
  0x28   : > { %7254 = sst [smem:[#allocation41_spill]] %s6239_s28  ;;  %p84_p1 = scmp.eq.s32.totalorder %s6435_s29, 0 }
  0x29   : > { %7255 = sst [smem:[#allocation42_spill]] %s6247_s4  ;;  %p662_p2 = scmp.lt.s32.totalorder %s6247_s4, 3 }
  0x2a   : > { %s7256_s30 = sld [smem:[#allocation51_spill]]  ;;  %s6249_s10 = smov [#allocation12]  }
  0x2b   : > { %p6443_p3 = pnand %p4429_p0, %p662_p2  ;;  %s676_s6 = sshll.u32 %s6249_s10, 4  ;;  %s677_s6 = int_to_ptr.vmem [resolvable:$true] %s676_s6 }
  0x2c   : > { %s7258_s25 = sld [smem:[#allocation53_spill]]  ;;  %s6250_s9 = smov [#allocation15]  }
  0x2d   : > { %p5179_p5 = pneg %p6443_p3  ;;  %s7211_s10 = smov 64  }
  0x2e   : > { %s7213_s21 = smov 4   ;;  %s7260_s1 = sld [smem:[#allocation55_spill]] }
  0x2f   : > { %p6455_p6 = pnand %p5179_p5, %p84_p1  ;;  %s6253_s19 = smov [#allocation18]  }
  0x30   : > { %s674_s2 = sshll.u32 %s7256_s30, 4  ;;  %s699_s30 = sshll.u32 %s6250_s9, 4  ;;  %s675_s2 = int_to_ptr.hbm [resolvable:$true] %s674_s2  ;;  %s700_s30 = int_to_ptr.vmem [resolvable:$true] %s699_s30 }
  0x31   : > { %5182 = dma.hbm_to_vmem [thread:$0]  (!%p6455_p6), %s675_s2, 16, %s677_s6, [#allocation13]  }
  0x32   : > { %s697_s23 = sshll.u32 %s7258_s25, 4  ;;  %s725_s28 = sshll.u32 %s6253_s19, 4  ;;  %s698_s23 = int_to_ptr.hbm [resolvable:$true] %s697_s23  ;;  %s726_s28 = int_to_ptr.vmem [resolvable:$true] %s725_s28 }
  0x33   : > { %5188 = dma.hbm_to_vmem [thread:$0]  (!%p6455_p6), %s698_s23, 1024, %s700_s30, [#allocation16], %s7211_s10, %s7211_s10, %s7213_s21  }
  0x34   : > { %s723_s20 = sshll.u32 %s7260_s1, 4  ;;  %s7261_s14 = sld [smem:[#allocation59_spill]]  ;;  %s724_s20 = int_to_ptr.hbm [resolvable:$true] %s723_s20 }
  0x35   : > { %s7215_s17 = smov 128   ;;  %s7217_s15 = smov 8  }
  0x36   : > { %5194 = dma.hbm_to_vmem [thread:$0]  (!%p6455_p6), %s724_s20, 2048, %s726_s28, [#allocation19], %s7215_s17, %s7215_s17, %s7217_s15  }
  0x37   : > { %s6256_s19 = smov [#allocation21]   ;;  %s7262_s18 = sld [smem:[#allocation63_spill]] }
  0x38   : > { %s765_s23 = sshll.u32 %s6256_s19, 4  ;;  %s6257_s20 = smov [#allocation24]   ;;  %s766_s23 = int_to_ptr.vmem [resolvable:$true] %s765_s23 }
  0x39   : > { %s799_s28 = sshll.u32 %s6257_s20, 4  ;;  %s4428_s1 = sadd.s32 4294967294, %s6247_s4   ;;  %s800_s28 = int_to_ptr.vmem [resolvable:$true] %s799_s28 }
  0x3a   : > { %s763_s6 = sshll.u32 %s7261_s14, 4  ;;  %s63_s9 = sadd.s32 1, %s6243_s8  ;;  %s764_s6 = int_to_ptr.hbm [resolvable:$true] %s763_s6 }
  0x3b   : > { %5200 = dma.hbm_to_vmem [thread:$0]  (!%p6455_p6), %s764_s6, 1024, %s766_s23, [#allocation22], %s7211_s10, %s7211_s10, %s7213_s21  }
  0x3c   : > { %s70_s2 = sadd.s32 1, %s6235_s7  ;;  %p65_p7 = scmp.ge.s32.totalorder %s63_s9, 2 }
  0x3d   : > { %s797_s26 = sshll.u32 %s7262_s18, 4  ;;  %p77_p8 = scmp.ne.s32.totalorder %s6235_s7, %s6231_s3  ;;  %s798_s26 = int_to_ptr.hbm [resolvable:$true] %s797_s26 }
  0x3e   : > { %5206 = dma.hbm_to_vmem [thread:$0]  (!%p6455_p6), %s798_s26, 1024, %s800_s28, [#allocation25], %s7211_s10, %s7211_s10, %s7213_s21  }
  0x3f   : > { %p78_p9 = scmp.eq.s32.totalorder %s6247_s4, 0  ;;  %p83_p10 = scmp.ne.s32.totalorder %s6231_s3, %s6227_s27 }
  0x40   : > { %s7322_s9 = smov (%p65_p7, %s63_s9), 0  ;;  %p649_p13 = scmp.eq.s32.totalorder %s6435_s29, 1 }
  0x41   : > { %7263 = sst [smem:[#allocation43_spill]] %s7322_s9  ;;  %p6500_p11 = por %p78_p9, %p77_p8 }
  0x42   : > { %p6506_p12 = por %p84_p1, %p83_p10  ;;  %s67_s23 = ssub.s32 %s6243_s8, %s7322_s9 }
  0x43   : > { %p68_p0 = scmp.eq.s32.totalorder %s67_s23, 0  ;;  %p655_p2 = scmp.eq.s32.totalorder %s4428_s1, 1 }
  0x44   : > { %p6513_p5 = por %p649_p13, %p77_p8  ;;  %p5238_p7 = scmp.lt.s32.totalorder %s6247_s4, 2 }
  0x45   : > { %s6519_s25 = scalar_select %p68_p0, %s6235_s7, %s70_s2  }
  0x46   : > { %s7266_s30 = scalar_select %p6513_p5, 1, 0 }
  0x47   : > { %7268 = sst [smem:[#allocation45_spill]] %s6519_s25  ;;  %p6521_p9 = por %p655_p2, %p83_p10 }
  0x48   : > { %7267 = sst [smem:[#allocation44_spill]] %s7266_s30  ;;  %s6526_s20 = sand.u32 1, %s6235_s7  }
  0x49   : > { %s7269_s26 = scalar_select %p6521_p9, 1, 0 }
  0x4a   : > { %s7225_s28 = sshll.u32 %s6526_s20, 4  ;;  %s7226_s10 = sshll.u32 %s6243_s8, 4 }
  0x4b   : > { %7270 = sst [smem:[#allocation46_spill]] %s7269_s26  ;;  %p6532_p4 = pnand %p5238_p7, %p6500_p11 }
  0x4c   : > { %s878_s23 = sand.u32 1, %s6247_s4   ;;  %s7272_s17 = sld [smem:[#allocation48_spill]] }
  0x4d   : > { %s882_s18 = scalar_lea.vmem [#allocation9], %s7225_s28  ;;  %s6544_s6 = scalar_lea.sflag [#allocation10], %s878_s23 }
  0x4e   : > { %s890_s9 = sshll.u32 %s882_s18, 4  ;;  %s7273_s25 = smov 8   ;;  %s891_s9 = int_to_ptr.vmem [resolvable:$true] %s890_s9 }
  0x4f   : > { %s7274_s7 = smov 128   ;;  %s7275_s27 = sld [smem:[#allocation52_spill]] }
  0x50   : > { %s7276_s28 = sld [smem:[#allocation54_spill]]  ;;  %s6260_s18 = smov [#allocation20]  }
  0x51   : > { %s7278_s16 = sld [smem:[#allocation61_spill]]  ;;  %s6261_s13 = smov [#allocation23]  }
  0x52   : > { %s887_s15 = scalar_lea.hbm %s7272_s17, %s7226_s10  ;;  %s6259_s10 = smov [#allocation17]  }
  0x53   : > { %s888_s14 = sshll.u32 %s887_s15, 4  ;;  %s6258_s15 = smov [#allocation14]   ;;  %s889_s14 = int_to_ptr.hbm [resolvable:$true] %s888_s14 }
  0x54   : > { %5219 = dma.hbm_to_vmem [thread:$0]  (!%p6532_p4), %s889_s14, 256, %s891_s9, %s6544_s6, %s7274_s7, %s7274_s7, %s7273_s25  }
  0x55   : > { %s686_s21 = sshll.u32 %s7275_s27, 4  ;;  %s688_s17 = sshll.u32 %s6258_s15, 4  ;;  %s687_s21 = int_to_ptr.hbm [resolvable:$true] %s686_s21  ;;  %s689_s17 = int_to_ptr.vmem [resolvable:$true] %s688_s17 }
  0x56   : > { %s712_s23 = sshll.u32 %s7276_s28, 4  ;;  %s714_s30 = sshll.u32 %s6259_s10, 4  ;;  %s713_s23 = int_to_ptr.hbm [resolvable:$true] %s712_s23  ;;  %s715_s30 = int_to_ptr.vmem [resolvable:$true] %s714_s30 }
  0x57   : > { %5185 = dma.hbm_to_vmem [thread:$0]  (!%p6455_p6), %s687_s21, 16, %s689_s17, [#allocation13]  }
  0x58   : > { %s7277_s9 = sld [smem:[#allocation57_spill]]  ;;  %s780_s15 = sshll.u32 %s7278_s16, 4  ;;  %s781_s15 = int_to_ptr.hbm [resolvable:$true] %s780_s15 }
  0x59   : > { %5191 = dma.hbm_to_vmem [thread:$0]  (!%p6455_p6), %s713_s23, 16, %s715_s30, [#allocation16]  }
  0x5a   : > { %s742_s28 = sshll.u32 %s6260_s18, 4  ;;  %s7279_s10 = smov 4   ;;  %s743_s28 = int_to_ptr.vmem [resolvable:$true] %s742_s28 }
  0x5b   : > { %s7280_s21 = smov 64   ;;  %s782_s17 = sshll.u32 %s6261_s13, 4  ;;  %s783_s17 = int_to_ptr.vmem [resolvable:$true] %s782_s17 }
  0x5c   : > { %s820_s23 = sshll.u32 %s7204_s22, 4  ;;  %s6262_s27 = smov [#allocation26]   ;;  %s821_s23 = int_to_ptr.hbm [resolvable:$true] %s820_s23 }
  0x5d   : > { %5203 = dma.hbm_to_vmem [thread:$0]  (!%p6455_p6), %s781_s15, 2048, %s783_s17, [#allocation22], %s7274_s7, %s7274_s7, %s7273_s25  }
  0x5e   : > { %s740_s4 = sshll.u32 %s7277_s9, 4  ;;  %s822_s26 = sshll.u32 %s6262_s27, 4  ;;  %s741_s4 = int_to_ptr.hbm [resolvable:$true] %s740_s4  ;;  %s823_s26 = int_to_ptr.vmem [resolvable:$true] %s822_s26 }
  0x5f   : > { %5197 = dma.hbm_to_vmem [thread:$0]  (!%p6455_p6), %s741_s4, 1024, %s743_s28, [#allocation19], %s7280_s21, %s7280_s21, %s7279_s10  }
  0x60   : > { %s837_s4 = sshll.u32 %s7206_s24, 4  ;;  %s6263_s18 = smov [#allocation27]   ;;  %s838_s4 = int_to_ptr.hbm [resolvable:$true] %s837_s4 }
  0x61   : > { %5209 = dma.hbm_to_vmem [thread:$0]  (!%p6455_p6), %s821_s23, 2048, %s823_s26, [#allocation25], %s7274_s7, %s7274_s7, %s7273_s25  }
  0x62   : > { %s839_s28 = sshll.u32 %s6263_s18, 4  ;;  %s7281_s15 = sshll.u32 %s6243_s8, 4  ;;  %s840_s28 = int_to_ptr.vmem [resolvable:$true] %s839_s28 }
  0x63   : > { %5212 = dma.hbm_to_vmem [thread:$0]  (!%p6455_p6), %s838_s4, 2048, %s840_s28, [#allocation28], %s7280_s21, %s7280_s21, %s7279_s10  }
  0x64   : > { %s7282_s2 = sld [smem:[#allocation47_spill]]  ;;  %s7283_s14 = sshll.u32 %s6526_s20, 4 }
  0x65   : > { %s860_s9 = scalar_lea.vmem [#allocation6], %s7283_s14  ;;  %s857_s23 = scalar_lea.sflag [#allocation7], %s6526_s20 }
  0x66   : > { %s868_s27 = sshll.u32 %s860_s9, 4  ;;  %s7284_s10 = sld [smem:[#allocation49_spill]]  ;;  %s869_s27 = int_to_ptr.vmem [resolvable:$true] %s868_s27 }
  0x67   : > { %s903_s4 = scalar_lea.vmem [#allocation11], %s6526_s20 }
  0x68   : > { %s910_s18 = sshll.u32 %s903_s4, 4  ;;  %s911_s18 = int_to_ptr.vmem [resolvable:$true] %s910_s18 }
  0x6a   : > { %s865_s30 = scalar_lea.hbm %s7282_s2, %s7281_s15  ;;  %s6618_s15 = sand.u32 (!%p6443_p3), 1, %s6231_s3  }
  0x6b   : > { %s866_s16 = sshll.u32 %s865_s30, 4  ;;  %925 = sbr.rel (%p6443_p3) target bundleno = 4504 (0x1198), region = 124  ;;  %s867_s16 = int_to_ptr.hbm [resolvable:$true] %s866_s16 }
  0x6c   : > { %5216 = dma.hbm_to_vmem [thread:$0]  (!%p6532_p4), %s867_s16, 256, %s869_s27, %s857_s23, %s7274_s7, %s7274_s7, %s7273_s25  }
  0x6d   : > { %s906_s21 = scalar_lea.hbm %s7284_s10, %s6243_s8  ;;  %s6621_s16 = sshll.u32 (!%p6443_p3), %s6618_s15, 4 }
  0x6e   : > { %s908_s28 = sshll.u32 %s906_s21, 4  ;;  %s928_s7 = scalar_lea.sflag (!%p6443_p3), [#allocation7], %s6618_s15  ;;  %s909_s28 = int_to_ptr.hbm [resolvable:$true] %s908_s28 }
  0x6f   : > { %5222 = dma.hbm_to_vmem [thread:$0]  (!%p6532_p4), %s909_s28, 16, %s911_s18, %s6544_s6  }
  0x70   : > { %s6625_s25 = scalar_lea.vmem [#allocation6], %s6621_s16 }
  0x71   : > { %6190 = dma.done.wait (%p6506_p12), %s928_s7, 256  }
  0x72   : > { %6192 = vsyncadd (%p6506_p12), %s928_s7, 4294967040  ;;  %s937_s5 = sand.u32 1, %s6435_s29   ;;  %s941_s1 = scalar_lea.vmem [#allocation9], %s6621_s16 }
  0x73   : > { %s938_s20 = scalar_lea.sflag [#allocation10], %s937_s5 }
  0x74   : > { %6194 = dma.done.wait (%p6506_p12), %s938_s20, 272  }
  0x75   : > { %6196 = vsyncadd (%p6506_p12), %s938_s20, 4294967024  ;;  %s950_s6 = scalar_lea.vmem [#allocation11], %s6618_s15 }
  0x76   : > { %6198 = dma.done.wait (%p84_p1), [#allocation13], 32  }
  0x77   : > { %6200 = vsyncadd (%p84_p1), [#allocation13], 4294967264 }
  0x78   : > { %6202 = dma.done.wait (%p84_p1), [#allocation16], 1040  }
  0x79   : > { %6204 = vsyncadd (%p84_p1), [#allocation16], 4294966256 }
  0x7a   : > { %6206 = dma.done.wait (%p84_p1), [#allocation19], 3072  }
  0x7b   : > { %6208 = vsyncadd (%p84_p1), [#allocation19], 4294964224 }
  0x7c   : > { %6210 = dma.done.wait (%p84_p1), [#allocation22], 3072  }
  0x7d   : > { %6212 = vsyncadd (%p84_p1), [#allocation22], 4294964224 }
  0x7e   : > { %6214 = dma.done.wait (%p84_p1), [#allocation25], 3072  }
  0x7f   : > { %6216 = vsyncadd (%p84_p1), [#allocation25], 4294964224 }
  0x80   : > { %6218 = dma.done.wait (%p84_p1), [#allocation28], 2048  }
  0x81   : > { %6220 = vsyncadd (%p84_p1), [#allocation28], 4294965248  ;;  %v1721_v0 = vld [vmem:[%s6625_s25] sm:$0xff]  ;;  %v1722_v1 = vld [vmem:[%s6625_s25 + $0x8] sm:$0xff]  ;;  %v6264_v2 = vmov 128.0   ;;  %v6265_v25 = vmov 127.0  }
  0x82   : > { %1744 = vadd.xlane.f32.xlu1 %v1721_v0  ;;  %1101 = vadd.xlane.f32.xlu0 %v1721_v0  ;;  %5615 = vrcp.f32 %v6264_v2  ;;  %v4521_v27 = vld [vmem:[#allocation18 + $0x70] sm:$0xf]  ;;  %v5013_v28 = vld [vmem:[#allocation18 + $0x74] sm:$0xf0]  ;;  %v4513_v31 = vld [vmem:[#allocation18 + $0x60] sm:$0xf] }
  0x83   : > { %5617 = vrcp.f32 %v6265_v25  ;;  %v4522_v29 = vor.u32 %v5013_v28, %v4521_v27  ;;  %v5011_v32 = vld [vmem:[#allocation18 + $0x64] sm:$0xf0]  ;;  %v4505_v35 = vld [vmem:[#allocation18 + $0x50] sm:$0xf]  ;;  %v5009_v36 = vld [vmem:[#allocation18 + $0x54] sm:$0xf0] }
  0x84   : > { %v4514_v33 = vor.u32 %v5011_v32, %v4513_v31  ;;  %v4506_v37 = vor.u32 %v5009_v36, %v4505_v35  ;;  %v4497_v39 = vld [vmem:[#allocation18 + $0x40] sm:$0xf]  ;;  %v5007_v40 = vld [vmem:[#allocation18 + $0x44] sm:$0xf0]  ;;  %v5012_v42 = vld [vmem:[#allocation18 + $0x74] sm:$0xf] }
  0x85   : > { %1302 = vmatpush.bf16.msra.mxu0 %v4522_v29  ;;  %v4498_v41 = vor.u32 %v5007_v40, %v4497_v39  ;;  %v4523_v43 = vld [vmem:[#allocation18 + $0x78] sm:$0xf0]  ;;  %v4489_v46 = vld [vmem:[#allocation18 + $0x30] sm:$0xf]  ;;  %v5005_v47 = vld [vmem:[#allocation18 + $0x34] sm:$0xf0] }
  0x86   : > { %v4526_v45 = vor.u32 %v5012_v42, %v4523_v43  ;;  %v4490_v48 = vor.u32 %v5005_v47, %v4489_v46  ;;  %v5010_v49 = vld [vmem:[#allocation18 + $0x64] sm:$0xf]  ;;  %v4515_v50 = vld [vmem:[#allocation18 + $0x68] sm:$0xf0]  ;;  %v4481_v53 = vld [vmem:[#allocation18 + $0x20] sm:$0xf] }
  0x87   : > { %v4518_v52 = vor.u32 %v5010_v49, %v4515_v50  ;;  %v5003_v54 = vld [vmem:[#allocation18 + $0x24] sm:$0xf0]  ;;  %v5008_v55 = vld [vmem:[#allocation18 + $0x54] sm:$0xf]  ;;  %v4507_v57 = vld [vmem:[#allocation18 + $0x58] sm:$0xf0] }
  0x88   : > { %v5616_v3 = vpop.eup %5615  ;;  %1316 = vmatpush.bf16.msra.mxu1 %v4526_v45  ;;  %v4482_v56 = vor.u32 %v5003_v54, %v4481_v53  ;;  %v4510_v60 = vor.u32 %v5008_v55, %v4507_v57  ;;  %v4473_v61 = vld [vmem:[#allocation18 + $0x10] sm:$0xf]  ;;  %v5001_v62 = vld [vmem:[#allocation18 + $0x14] sm:$0xf0]  ;;  %v4499_v2 = vld [vmem:[#allocation18 + $0x48] sm:$0xf0] }
  0x89   : > { %v1106_v4 = vmul.f32 128.0, %v5616_v3  ;;  %vm1110_vm0 = vweird.f32 %v5616_v3  ;;  %v5618_v26 = vpop.eup %5617  ;;  %1303 = vmatpush.bf16.msra.mxu0 %v4514_v33  ;;  %v5052_v29 = vld [vmem:[#allocation15 + $0x30] sm:$0xff]  ;;  %v4475_v32 = vld [vmem:[#allocation18 + $0x18] sm:$0xf0]  ;;  %v4998_v40 = vld [vmem:[#allocation18 + $0x4] sm:$0xf] }
  0x8a   : > { %1746 = vadd.xlane.f32.xlu1 %v1722_v1  ;;  %1103 = vadd.xlane.f32.xlu0 %v1722_v1  ;;  %v1123_v30 = vmul.f32 127.0, %v5618_v26  ;;  %vm1127_vm1 = vweird.f32 %v5618_v26  ;;  %v5000_v31 = vld [vmem:[#allocation18 + $0x14] sm:$0xf]  ;;  %v5050_v50 = vld [vmem:[#allocation15 + $0x20] sm:$0xff]  ;;  %s7291_s13 = sld [smem:[#allocation56_spill]] }
  0x8b   : > { %v1107_v5 = vsub.f32 1.0, %v1106_v4  ;;  %v4478_v36 = vor.u32 %v5000_v31, %v4475_v32  ;;  %v5603_v31 = vld [vmem:[#allocation12] ss:$0 sm:$0xff]  ;;  %s7296_s23 = sld [smem:[#allocation58_spill]] }
  0x8c   : > { %v1124_v34 = vsub.f32 1.0, %v1123_v30  ;;  %1317 = vmatpush.bf16.msra.mxu1 %v4518_v52  ;;  %s7297_s10 = sld [smem:[#allocation60_spill]] }
  0x8d   : > { %v1108_v6 = vmul.f32 %v5616_v3, %v1107_v5  ;;  %1304 = vmatpush.bf16.msra.mxu0 %v4506_v37  ;;  %v4465_v5 = vld [vmem:[#allocation18] sm:$0xf]  ;;  %v5051_v37 = vld [vmem:[#allocation15 + $0x28] sm:$0xff]  ;;  %s7298_s18 = sld [smem:[#allocation62_spill]] }
  0x8e   : > { %v1125_v38 = vmul.f32 %v5618_v26, %v1124_v34  ;;  %s7299_s28 = sld [smem:[#allocation41_spill]] }
  0x8f   : > { %v1109_v7 = vadd.f32 %v5616_v3, %v1108_v6  ;;  %v4999_v6 = vld [vmem:[#allocation18 + $0x4] sm:$0xf0]  ;;  %s7300_s20 = sld [smem:[#allocation50_spill]] }
  0x90   : > { %v1126_v44 = vadd.f32 %v5618_v26, %v1125_v38  ;;  %1318 = vmatpush.bf16.msra.mxu1 %v4510_v60  ;;  %s7303_s19 = sld [smem:[#allocation64_spill]] }
  0x91   : > { %v6664_v8 = vsel %vm1110_vm0, %v5616_v3, %v1109_v7  ;;  %1305 = vmatpush.bf16.msra.mxu0 %v4498_v41  ;;  %v4474_v3 = vor.u32 %v5001_v62, %v4473_v61  ;;  %v5004_v7 = vld [vmem:[#allocation18 + $0x34] sm:$0xf]  ;;  %v4467_v41 = vld [vmem:[#allocation18 + $0x8] sm:$0xf0]  ;;  %s7304_s2 = sld [smem:[#allocation65_spill]] }
  0x92   : > { %v6686_v51 = vsel %vm1127_vm1, %v5618_v26, %v1126_v44  ;;  %v4470_v49 = vor.u32 %v4998_v40, %v4467_v41  ;;  %s7305_s9 = sld [smem:[#allocation66_spill]] }
  0x93   : > { %s7306_s0 = sld [smem:[#allocation67_spill]] }
  0x94   : > { %p1087_p1 = scmp.lt.s32.totalorder %s7299_s28, 1  ;;  %s7307_s21 = sld [smem:[#allocation68_spill]] }
  0x95   : > { %1306 = vmatpush.bf16.msra.mxu0 %v4490_v48  ;;  %s5126_s4 = sshll.u32 %s7299_s28, 4 }
  0x96   : > { %s1088_s7 = scalar_select %p1087_p1, %s7299_s28, 1 }
  0x97   : > { %s4171_s28 = scalar_lea.sflag [#allocation8], %s6618_s15 }
  0x99   : > { %1307 = vmatpush.bf16.msra.mxu0 %v4482_v56 }
  0x9d   : > { %1308 = vmatpush.bf16.msra.mxu0 %v4474_v3 }
  0xf5   : > { %v1745_v9 = vpop.xlane.xlu1 %1744  ;;  %v1102_v10 = vpop.xlane.xlu0 %1101 }
  0xf6   : > { %v1755_v11 = vmul.f32 %v1745_v9, %v6664_v8  ;;  %v1112_v12 = vmul.f32 %v6664_v8, %v1102_v10  ;;  %v4491_v9 = vld [vmem:[#allocation18 + $0x38] sm:$0xf0]  ;;  %v4466_v10 = vor.u32 %v4999_v6, %v4465_v5 }
  0xf7   : > { %v5049_v5 = vld [vmem:[#allocation15 + $0x18] sm:$0xff] }
  0xf8   : > { %v6668_v13 = vsub.f32 %v1721_v0, %v1755_v11  ;;  %v6670_v14 = vsub.f32 %v1721_v0, %v1112_v12  ;;  %1309 = vmatpush.bf16.msra.mxu0 %v4466_v10 }
  0xfa   : > { %v1759_v15 = vmul.f32 %v6668_v13, %v6668_v13  ;;  %v1116_v16 = vmul.f32 %v6670_v14, %v6670_v14 }
  0xfc   : > { %1761 = vadd.xlane.f32.xlu0 %v1759_v15  ;;  %1118 = vadd.xlane.f32.xlu2 %v1116_v16  ;;  %v4494_v15 = vor.u32 %v5004_v7, %v4491_v9  ;;  %v5053_v16 = vld [vmem:[#allocation15 + $0x38] sm:$0xff] }
  0xfd   : > { %v1747_v17 = vpop.xlane.xlu1 %1746  ;;  %v1104_v18 = vpop.xlane.xlu0 %1103  ;;  %1960 = vmatpush.bf16.msrb.mxu0 %v5053_v16 }
  0xfe   : > { %v1756_v19 = vmul.f32 %v1747_v17, %v6664_v8  ;;  %v1113_v20 = vmul.f32 %v6664_v8, %v1104_v18 }
 0x100   : > { %v6678_v21 = vsub.f32 %v1722_v1, %v1756_v19  ;;  %v6680_v22 = vsub.f32 %v1722_v1, %v1113_v20  ;;  %v5006_v1 = vld [vmem:[#allocation18 + $0x44] sm:$0xf] }
 0x101   : > { %v4502_v4 = vor.u32 %v5006_v1, %v4499_v2  ;;  %v5002_v20 = vld [vmem:[#allocation18 + $0x24] sm:$0xf]  ;;  %1961 = vmatpush.bf16.msrb.mxu0 %v5052_v29  ;;  %v5602_v29 = vld [vmem:[#allocation12] ss:$0 sm:$0xff] }
 0x102   : > { %v1760_v23 = vmul.f32 %v6678_v21, %v6678_v21  ;;  %v1117_v24 = vmul.f32 %v6680_v22, %v6680_v22  ;;  %v1833_v41 = vmul.f32 %v5602_v29, %v6668_v13  ;;  %v4579_v13 = vld [vmem:[#allocation23 + $0x68] sm:$0xf0] }
 0x103   : > { %1319 = vmatpush.bf16.msra.mxu1 %v4502_v4 }
 0x104   : > { %1763 = vadd.xlane.f32.xlu1 %v1760_v23  ;;  %1120 = vadd.xlane.f32.xlu2 %v1117_v24  ;;  %v4483_v23 = vld [vmem:[#allocation18 + $0x28] sm:$0xf0] }
 0x105   : > { %v4486_v28 = vor.u32 %v5002_v20, %v4483_v23  ;;  %1962 = vmatpush.bf16.msrb.mxu0 %v5051_v37  ;;  %v5047_v20 = vld [vmem:[#allocation15 + $0x8] sm:$0xff] }
 0x107   : > { %1320 = vmatpush.bf16.msra.mxu1 %v4494_v15 }
 0x109   : > { %1963 = vmatpush.bf16.msrb.mxu0 %v5050_v50 }
 0x10b   : > { %1321 = vmatpush.bf16.msra.mxu1 %v4486_v28 }
 0x10d   : > { %1964 = vmatpush.bf16.msrb.mxu0 %v5049_v5 }
 0x10f   : > { %1322 = vmatpush.bf16.msra.mxu1 %v4478_v36 }
 0x113   : > { %1323 = vmatpush.bf16.msra.mxu1 %v4470_v49 }
 0x16f   : > { %v1119_v58 = vpop.xlane.xlu2 %1118  ;;  %v1762_v59 = vpop.xlane.xlu0 %1761 }
 0x170   : > { %v6689_v63 = vmul.f32 %v6686_v51, %v1119_v58  ;;  %v6692_v0 = vmul.f32 %v1762_v59, %v6686_v51 }
 0x172   : > { %5619 = vrsqrt.f32 %v6689_v63  ;;  %vm1138_vm2 = vcmp.eq.f32.partialorder %v6689_v63, inf  ;;  %v1141_v52 = vand.u32 2147483648, %v6689_v63  ;;  %vm1781_vm3 = vcmp.eq.f32.partialorder %v6692_v0, inf }
 0x173   : > { %5621 = vrsqrt.f32 %v6692_v0  ;;  %v1784_v55 = vand.u32 2147483648, %v6692_v0  ;;  %vm1140_vm4 = vcmp.eq.f32.partialorder %v6689_v63, 0.0  ;;  %vm1783_vm5 = vcmp.eq.f32.partialorder %v6692_v0, 0.0 }
 0x177   : > { %v1764_v11 = vpop.xlane.xlu1 %1763  ;;  %v1121_v12 = vpop.xlane.xlu2 %1120 }
 0x178   : > { %v5620_v17 = vpop.eup %5619  ;;  %v6697_v18 = vmul.f32 %v1764_v11, %v6686_v51  ;;  %v6700_v19 = vmul.f32 %v6686_v51, %v1121_v12 }
 0x179   : > { %v5622_v24 = vpop.eup %5621  ;;  %v1132_v25 = vmul.f32 %v5620_v17, %v6689_v63 }
 0x17a   : > { %v1775_v26 = vmul.f32 %v5622_v24, %v6692_v0  ;;  %5623 = vrsqrt.f32 %v6697_v18  ;;  %vm1793_vm6 = vcmp.eq.f32.partialorder %v6697_v18, inf  ;;  %v1796_v7 = vand.u32 2147483648, %v6697_v18 }
 0x17b   : > { %v1133_v27 = vmul.f32 %v5620_v17, %v1132_v25  ;;  %5625 = vrsqrt.f32 %v6700_v19  ;;  %vm1795_vm7 = vcmp.eq.f32.partialorder %v6697_v18, 0.0  ;;  %vm1150_vm8 = vcmp.eq.f32.partialorder %v6700_v19, inf }
 0x17c   : > { %v1776_v30 = vmul.f32 %v5622_v24, %v1775_v26  ;;  %v1153_v11 = vand.u32 2147483648, %v6700_v19  ;;  %vm1152_vm9 = vcmp.eq.f32.partialorder %v6700_v19, 0.0 }
 0x17d   : > { %v1134_v33 = vmul.f32 0.5, %v1133_v27 }
 0x17e   : > { %v1777_v34 = vmul.f32 0.5, %v1776_v30 }
 0x17f   : > { %v1135_v35 = vsub.f32 1.5, %v1134_v33 }
 0x180   : > { %v5624_v38 = vpop.eup %5623  ;;  %v1778_v39 = vsub.f32 1.5, %v1777_v34 }
 0x181   : > { %v5626_v42 = vpop.eup %5625  ;;  %v1136_v43 = vmul.f32 %v5620_v17, %v1135_v35  ;;  %v1787_v44 = vmul.f32 %v5624_v38, %v6697_v18 }
 0x182   : > { %v1779_v45 = vmul.f32 %v5622_v24, %v1778_v39  ;;  %v1144_v46 = vmul.f32 %v5626_v42, %v6700_v19 }
 0x183   : > { %v1137_v47 = vmul.f32 %v1136_v43, %v6689_v63  ;;  %v1788_v48 = vmul.f32 %v5624_v38, %v1787_v44  ;;  %v1190_v43 = vmul.f32 %v5603_v31, %v6670_v14 }
 0x184   : > { %v1780_v53 = vmul.f32 %v1779_v45, %v6692_v0  ;;  %v1145_v54 = vmul.f32 %v5626_v42, %v1144_v46  ;;  %v5026_v46 = vld [vmem:[#allocation23 + $0x64] sm:$0xf] }
 0x185   : > { %v1789_v56 = vmul.f32 0.5, %v1788_v48  ;;  %v1139_v57 = vsel %vm1138_vm2, %v6689_v63, %v1137_v47 }
 0x186   : > { %v1782_v58 = vsel %vm1781_vm3, %v6692_v0, %v1780_v53  ;;  %v1146_v59 = vmul.f32 0.5, %v1145_v54  ;;  %v1142_v60 = vsel %vm1140_vm4, %v1141_v52, %v1139_v57  ;;  %v5048_v0 = vld [vmem:[#allocation15 + $0x10] sm:$0xff] }
 0x187   : > { %v1790_v61 = vsub.f32 1.5, %v1789_v56  ;;  %v1155_v62 = vadd.f32 1e-06, %v1142_v60  ;;  %v1785_v1 = vsel %vm1783_vm5, %v1784_v55, %v1782_v58  ;;  %1965 = vmatpush.bf16.msrb.mxu0 %v5048_v0  ;;  %v1834_v60 = vmul.f32 %v5602_v29, %v6678_v21 }
 0x188   : > { %v1147_v2 = vsub.f32 1.5, %v1146_v59  ;;  %v6718_v3 = vadd.f32 1e-06, %v1785_v1  ;;  %v1191_v1 = vmul.f32 %v5603_v31, %v6680_v22 }
 0x189   : > { %v1791_v4 = vmul.f32 %v5624_v38, %v1790_v61  ;;  %5627 = vrcp.f32 %v1155_v62  ;;  %v1166_v32 = vand.u32 2147483647, %v1155_v62  ;;  %v1168_v34 = vand.u32 2147483648, %v1155_v62 }
 0x18a   : > { %v1148_v6 = vmul.f32 %v5626_v42, %v1147_v2  ;;  %5629 = vrcp.f32 %v6718_v3  ;;  %v1809_v35 = vand.u32 2147483647, %v6718_v3  ;;  %v1811_v39 = vand.u32 2147483648, %v6718_v3 }
 0x18b   : > { %v1792_v63 = vmul.f32 %v1791_v4, %v6697_v18  ;;  %1966 = vmatpush.bf16.msrb.mxu0 %v5047_v20  ;;  %vm1805_vm12 = vweird.f32 %v6718_v3  ;;  %vm1162_vm13 = vweird.f32 %v1155_v62  ;;  %vm6744_vm14 = vcmp.eq.f32.partialorder %v1166_v32, 8.507059e+37 }
 0x18c   : > { %v1149_v9 = vmul.f32 %v1148_v6, %v6700_v19  ;;  %v1169_v47 = vor.u32 1.1754944e-38, %v1168_v34  ;;  %vm1810_vm1 = vcmp.eq.f32.partialorder %v1809_v35, 8.507059e+37  ;;  %v1812_v52 = vor.u32 1.1754944e-38, %v1811_v39 }
 0x18d   : > { %v1794_v10 = vsel %vm1793_vm6, %v6697_v18, %v1792_v63  ;;  %v5605_v63 = vld [vmem:[#allocation14] ss:$0 sm:$0xff] }
 0x18e   : > { %v1151_v12 = vsel %vm1150_vm8, %v6700_v19, %v1149_v9  ;;  %v1797_v15 = vsel %vm1795_vm7, %v1796_v7, %v1794_v10  ;;  %v5046_v19 = vld [vmem:[#allocation15] sm:$0xff]  ;;  %v5604_v7 = vld [vmem:[#allocation14] ss:$0 sm:$0xff] }
 0x18f   : > { %v5628_v16 = vpop.eup %5627  ;;  %v1154_v17 = vsel %vm1152_vm9, %v1153_v11, %v1151_v12  ;;  %v6731_v23 = vadd.f32 1e-06, %v1797_v15  ;;  %1967 = vmatpush.bf16.msrb.mxu0 %v5046_v19 }
 0x190   : > { %v5630_v24 = vpop.eup %5629  ;;  %v6733_v25 = vadd.f32 1e-06, %v1154_v17  ;;  %v1158_v26 = vmul.f32 %v5628_v16, %v1155_v62  ;;  %vm1163_vm11 = vweird.f32 %v5628_v16 }
 0x191   : > { %v1801_v18 = vmul.f32 %v5630_v24, %v6718_v3  ;;  %5631 = vrcp.f32 %v6731_v23  ;;  %vm1806_vm10 = vweird.f32 %v5630_v24  ;;  %vm6754_vm0 = vmor %vm1162_vm13, %vm1163_vm11  ;;  %v1826_v53 = vand.u32 2147483648, %v6731_v23 }
 0x192   : > { %v1159_v27 = vsub.f32 1.0, %v1158_v26  ;;  %5633 = vrcp.f32 %v6733_v25  ;;  %vm6750_vm15 = vmor %vm1805_vm12, %vm1806_vm10  ;;  %v1183_v54 = vand.u32 2147483648, %v6733_v25  ;;  %v1824_v56 = vand.u32 2147483647, %v6731_v23  ;;  %v6775_v26 = vld [vmem:[%s7291_s13] sm:$0x3] }
 0x193   : > { %v1802_v28 = vsub.f32 1.0, %v1801_v18  ;;  %v1181_v58 = vand.u32 2147483647, %v6733_v25  ;;  %vm1820_vm4 = vweird.f32 %v6731_v23  ;;  %vm1177_vm5 = vweird.f32 %v6733_v25  ;;  %v5606_v18 = vld [vmem:[#allocation17] ss:$0 sm:$0xff] }
 0x194   : > { %v1160_v30 = vmul.f32 %v5628_v16, %v1159_v27  ;;  %v1827_v3 = vor.u32 1.1754944e-38, %v1826_v53  ;;  %v1184_v4 = vor.u32 1.1754944e-38, %v1183_v54  ;;  %vm1825_vm8 = vcmp.eq.f32.partialorder %v1824_v56, 8.507059e+37  ;;  %v5022_v54 = vld [vmem:[#allocation23 + $0x44] sm:$0xf] }
 0x195   : > { %v1803_v33 = vmul.f32 %v5630_v24, %v1802_v28  ;;  %vm1182_vm9 = vcmp.eq.f32.partialorder %v1181_v58, 8.507059e+37  ;;  %v1218_v27 = vperm.slane %v6775_v26, 0  ;;  %vm1426_vm10 = vcmask 125952   ;;  %v4555_v58 = vld [vmem:[#allocation23 + $0x38] sm:$0xf0] }
 0x196   : > { %v1161_v37 = vadd.f32 %v5628_v16, %v1160_v30  ;;  %vm2161_vm11 = vcmask 261120  }
 0x197   : > { %v5632_v36 = vpop.eup %5631  ;;  %v1804_v38 = vadd.f32 %v5630_v24, %v1803_v33 }
 0x198   : > { %v5634_v40 = vpop.eup %5633  ;;  %v1816_v42 = vmul.f32 %v5632_v36, %v6731_v23  ;;  %v1165_v49 = vsel %vm6754_vm0, %v5628_v16, %v1161_v37  ;;  %vm1821_vm2 = vweird.f32 %v5632_v36  ;;  %vm2293_vm0 = vcmask 130048  }
 0x199   : > { %v1173_v45 = vmul.f32 %v5634_v40, %v6733_v25  ;;  %v1808_v14 = vsel %vm6750_vm15, %v5630_v24, %v1804_v38  ;;  %vm1178_vm3 = vweird.f32 %v5634_v40  ;;  %v1170_v61 = vsel %vm6744_vm14, %v1169_v47, %v1165_v49  ;;  %vm1822_vm6 = vmor %vm1820_vm4, %vm1821_vm2 }
 0x19a   : > { %v1817_v48 = vsub.f32 1.0, %v1816_v42  ;;  %v1813_v59 = vsel %vm1810_vm1, %v1812_v52, %v1808_v14  ;;  %vm1179_vm7 = vmor %vm1177_vm5, %vm1178_vm3  ;;  %v1192_v0 = vmul.f32 %v1190_v43, %v1170_v61  ;;  %v4582_v47 = vor.u32 %v5026_v46, %v4579_v13  ;;  %v5024_v14 = vld [vmem:[#allocation23 + $0x54] sm:$0xf] }
 0x19b   : > { %v1174_v50 = vsub.f32 1.0, %v1173_v45  ;;  %v1835_v6 = vmul.f32 %v1833_v41, %v1813_v59  ;;  %v4587_v41 = vld [vmem:[#allocation23 + $0x78] sm:$0xf0] }
 0x19c   : > { %v1818_v55 = vmul.f32 %v5632_v36, %v1817_v48  ;;  %v1197_v16 = vadd.f32 %v5604_v7, %v1192_v0  ;;  %v4571_v48 = vld [vmem:[#allocation23 + $0x58] sm:$0xf0] }
 0x19d   : > { %v1175_v57 = vmul.f32 %v5634_v40, %v1174_v50  ;;  %v1840_v22 = vadd.f32 %v5605_v63, %v1835_v6  ;;  %v4574_v50 = vor.u32 %v5024_v14, %v4571_v48 }
 0x19e   : > { %v1819_v62 = vadd.f32 %v5632_v36, %v1818_v55  ;;  %v4563_v55 = vld [vmem:[#allocation23 + $0x48] sm:$0xf0] }
 0x19f   : > { %v1176_v2 = vadd.f32 %v5634_v40, %v1175_v57  ;;  %v4566_v56 = vor.u32 %v5022_v54, %v4563_v55  ;;  %v5020_v57 = vld [vmem:[#allocation23 + $0x34] sm:$0xf]  ;;  %v1459_v55 = vld [vmem:[%s941_s1] sm:$0xff] }
 0x1a0   : > { %v1823_v5 = vsel %vm1822_vm6, %v5632_v36, %v1819_v62 }
 0x1a1   : > { %v1180_v21 = vsel %vm1179_vm7, %v5634_v40, %v1176_v2  ;;  %v1828_v9 = vsel %vm1825_vm8, %v1827_v3, %v1823_v5  ;;  %v5028_v40 = vld [vmem:[#allocation23 + $0x74] sm:$0xf]  ;;  %v4547_v2 = vld [vmem:[#allocation23 + $0x28] sm:$0xf0]  ;;  %v4539_v5 = vld [vmem:[#allocation23 + $0x18] sm:$0xf0] }
 0x1a2   : > { %v1185_v10 = vsel %vm1182_vm9, %v1184_v4, %v1180_v21  ;;  %v1836_v11 = vmul.f32 %v1834_v60, %v1828_v9  ;;  %v4590_v43 = vor.u32 %v5028_v40, %v4587_v41  ;;  %v4558_v60 = vor.u32 %v5020_v57, %v4555_v58  ;;  %v5016_v4 = vld [vmem:[#allocation23 + $0x14] sm:$0xf] }
 0x1a3   : > { %v1193_v12 = vmul.f32 %v1191_v1, %v1185_v10  ;;  %v5018_v1 = vld [vmem:[#allocation23 + $0x24] sm:$0xf]  ;;  %v4542_v21 = vor.u32 %v5016_v4, %v4539_v5 }
 0x1a4   : > { %v1841_v15 = vadd.f32 %v5605_v63, %v1836_v11  ;;  %1578 = vmatpush.bf16.msra.mxu3 %v4590_v43  ;;  %v4550_v3 = vor.u32 %v5018_v1, %v4547_v2  ;;  %v5014_v11 = vld [vmem:[#allocation23 + $0x4] sm:$0xf] }
 0x1a5   : > { %v1198_v17 = vadd.f32 %v5604_v7, %v1193_v12  ;;  %v4531_v12 = vld [vmem:[#allocation23 + $0x8] sm:$0xf0] }
 0x1a6   : > { %v1908_v20 = vpack.c.bf16 %v1841_v15, %v1840_v22  ;;  %v4534_v15 = vor.u32 %v5014_v11, %v4531_v12 }
 0x1a7   : > { %v1216_v23 = vpack.c.bf16 %v1198_v17, %v1197_v16 }
 0x1a8   : > { %1579 = vmatpush.bf16.msra.mxu3 %v4582_v47 }
 0x1a9   : > { %1310 = vmatmul.bf16.vlgmr.msra.gmra.mxu0 %v1216_v23  ;;  %1324 = vmatmul.bf16.vlgmr.msra.gmra.mxu1 %v1216_v23 }
 0x1ac   : > { %1580 = vmatpush.bf16.msra.mxu3 %v4574_v50 }
 0x1b0   : > { %1581 = vmatpush.bf16.msra.mxu3 %v4566_v56  ;;  %v1460_v56 = vld [vmem:[%s941_s1 + $0x8] sm:$0xff]  ;;  %s1089_s1 = scalar_lea.vmem %s7300_s20, %s1088_s7  ;;  %s1086_s20 = scalar_lea.vmem [#allocation29], %s6621_s16 }
 0x1b1   : > { %v6794_v57 = vpack.c.bf16 %v1460_v56, %v1459_v55 }
 0x1b4   : > { %1582 = vmatpush.bf16.msra.mxu3 %v4558_v60 }
 0x1b8   : > { %1583 = vmatpush.bf16.msra.mxu3 %v4550_v3 }
 0x1b9   : > { %1968 = vmatmul.bf16.vlgmr.msrb.gmra.mxu0 %v1908_v20 }
 0x1bc   : > { %1584 = vmatpush.bf16.msra.mxu3 %v4542_v21 }
 0x1c0   : > { %1585 = vmatpush.bf16.msra.mxu3 %v4534_v15 }
 0x1c3   : > { %1586 = vmatmul.bf16.vlgmr.msra.gmra.mxu3 %v6794_v57 }
 0x226   : > { %v1311_v24 = vpop.f32.mrf.mxu0 }
 0x227   : > { %v1312_v29 = vadd.f32 %v1311_v24, %v1218_v27 }
 0x22e   : > { %v1313_v25 = vpop.f32.mrf.mxu0 }
 0x22f   : > { %v1314_v34 = vadd.f32 %v1313_v25, %v1218_v27 }
 0x236   : > { %v1969_v19 = vpop.f32.mrf.mxu0 }
 0x237   : > { %v1970_v28 = vadd.f32 %v5606_v18, %v1969_v19 }
 0x239   : > { %v1974_v30 = vmul.f32 0.17677669, %v1970_v28 }
 0x23b   : > { %v5320_v31 = vpack.i.bf16 %v1312_v29, %v1974_v30 }
 0x23d   : > { %5321 = vxpose.xlu2.b32.start [1/2] (short) %v5320_v31, 128 }
 0x23e   : > { %v1971_v32 = vpop.f32.mrf.mxu0 }
 0x23f   : > { %v1972_v33 = vadd.f32 %v5606_v18, %v1971_v32 }
 0x241   : > { %v1975_v35 = vmul.f32 0.17677669, %v1972_v33 }
 0x243   : > { %v5322_v36 = vpack.i.bf16 %v1314_v34, %v1975_v35 }
 0x245   : > { %5323 = vxpose.xlu2.b32.end [2/2] (short) %v5322_v36, 128 }
 0x2d6   : > { %v5324_v37 = vpop.trf.xlu2 }
 0x2d7   : > { %v5328_v38 = vunpack.i.h.bf16 %v5324_v37  ;;  %v5325_v63 = vunpack.i.l.bf16 %v5324_v37 }
 0x2d9   : > { %v1394_v39 = vpack.c.bf16 %v5328_v38, %v5328_v38 }
 0x2db   : > { %1427 = vst.msk [vmem:[#allocation2] sm:$0xf] %vm1426_vm10, %v1394_v39 }
 0x2de   : > { %v5329_v42 = vpop.trf.xlu2 }
 0x2df   : > { %v5333_v44 = vunpack.i.h.bf16 %v5329_v42  ;;  %v5330_v16 = vunpack.i.l.bf16 %v5329_v42 }
 0x2e1   : > { %v1395_v45 = vpack.c.bf16 %v5333_v44, %v5333_v44 }
 0x2e3   : > { %1428 = vst.msk [vmem:[#allocation2 + $0x4] sm:$0xf] %vm1426_vm10, %v1395_v45 }
 0x2e6   : > { %v5334_v49 = vpop.trf.xlu2 }
 0x2e7   : > { %v5338_v52 = vunpack.i.h.bf16 %v5334_v49  ;;  %v5335_v27 = vunpack.i.l.bf16 %v5334_v49 }
 0x2e9   : > { %v1396_v53 = vpack.c.bf16 %v5338_v52, %v5338_v52 }
 0x2ea   : > { %v5030_v20 = vld [vmem:[#allocation2] sm:$0xff] }
 0x2eb   : > { %1429 = vst.msk [vmem:[#allocation2 + $0x8] sm:$0xf] %vm1426_vm10, %v1396_v53 }
 0x2ee   : > { %v5339_v59 = vpop.trf.xlu2 }
 0x2ef   : > { %v5343_v61 = vunpack.i.h.bf16 %v5339_v59  ;;  %v5340_v32 = vunpack.i.l.bf16 %v5339_v59 }
 0x2f1   : > { %v1397_v62 = vpack.c.bf16 %v5343_v61, %v5343_v61 }
 0x2f3   : > { %1430 = vst.msk [vmem:[#allocation2 + $0xc] sm:$0xf] %vm1426_vm10, %v1397_v62 }
 0x2f6   : > { %v5344_v6 = vpop.trf.xlu2 }
 0x2f7   : > { %v5348_v0 = vunpack.i.h.bf16 %v5344_v6  ;;  %v5345_v7 = vunpack.i.l.bf16 %v5344_v6 }
 0x2f9   : > { %v1398_v9 = vpack.c.bf16 %v5348_v0, %v5348_v0  ;;  %v5404_v10 = vpack.i.bf16 %v5345_v7, %v5325_v63 }
 0x2fa   : > { %v5031_v22 = vld [vmem:[#allocation2 + $0x8] sm:$0xff] }
 0x2fb   : > { %1431 = vst.msk [vmem:[#allocation2 + $0x10] sm:$0xf] %vm1426_vm10, %v1398_v9  ;;  %5405 = vxpose.xlu0.b32.start [1/4] (short) (narrow) %v5404_v10, 16  ;;  %2171 = vmatpush.bf16.msrb.mxu1 %v5031_v22 }
 0x2fe   : > { %v5349_v17 = vpop.trf.xlu2 }
 0x2ff   : > { %v5353_v23 = vunpack.i.h.bf16 %v5349_v17  ;;  %v5350_v24 = vunpack.i.l.bf16 %v5349_v17  ;;  %2172 = vmatpush.bf16.msrb.mxu1 %v5030_v20 }
 0x301   : > { %v1399_v25 = vpack.c.bf16 %v5353_v23, %v5353_v23  ;;  %v5406_v18 = vpack.i.bf16 %v5350_v24, %v5330_v16 }
 0x303   : > { %1432 = vst.msk [vmem:[#allocation2 + $0x14] sm:$0xf] %vm1426_vm10, %v1399_v25  ;;  %5407 = vxpose.xlu0.b32.cont [2/4] (short) (narrow) %v5406_v18, 16 }
 0x306   : > { %v5354_v19 = vpop.trf.xlu2 }
 0x307   : > { %v5358_v28 = vunpack.i.h.bf16 %v5354_v19  ;;  %v5355_v29 = vunpack.i.l.bf16 %v5354_v19 }
 0x309   : > { %v1400_v30 = vpack.c.bf16 %v5358_v28, %v5358_v28  ;;  %v5408_v31 = vpack.i.bf16 %v5355_v29, %v5335_v27 }
 0x30a   : > { %v5032_v44 = vld [vmem:[#allocation2 + $0x10] sm:$0xff] }
 0x30b   : > { %1433 = vst.msk [vmem:[#allocation2 + $0x18] sm:$0xf] %vm1426_vm10, %v1400_v30  ;;  %5409 = vxpose.xlu0.b32.cont [3/4] (short) (narrow) %v5408_v31, 16 }
 0x30e   : > { %v5359_v33 = vpop.trf.xlu2 }
 0x30f   : > { %v5363_v34 = vunpack.i.h.bf16 %v5359_v33  ;;  %v5360_v35 = vunpack.i.l.bf16 %v5359_v33 }
 0x311   : > { %v1401_v36 = vpack.c.bf16 %v5363_v34, %v5363_v34  ;;  %v5410_v37 = vpack.i.bf16 %v5360_v35, %v5340_v32 }
 0x313   : > { %1434 = vst.msk [vmem:[#allocation2 + $0x1c] sm:$0xf] %vm1426_vm10, %v1401_v36  ;;  %5411 = vxpose.xlu0.b32.end [4/4] (short) (narrow) %v5410_v37, 16 }
 0x316   : > { %v5364_v38 = vpop.trf.xlu2 }
 0x317   : > { %v5368_v39 = vunpack.i.h.bf16 %v5364_v38  ;;  %v5365_v40 = vunpack.i.l.bf16 %v5364_v38 }
 0x319   : > { %v1402_v41 = vpack.c.bf16 %v5368_v39, %v5368_v39  ;;  %2072 = vxpose.xlu1.b32.start [1/4] (short) (narrow) %v5365_v40, 16 }
 0x31a   : > { %v5033_v42 = vld [vmem:[#allocation2 + $0x18] sm:$0xff] }
 0x31b   : > { %1435 = vst.msk [vmem:[#allocation2 + $0x20] sm:$0xf] %vm1426_vm10, %v1402_v41  ;;  %2205 = vmatpush.bf16.msrb.mxu3 %v5033_v42 }
 0x31e   : > { %v5369_v43 = vpop.trf.xlu2 }
 0x31f   : > { %v5373_v45 = vunpack.i.h.bf16 %v5369_v43  ;;  %v5370_v46 = vunpack.i.l.bf16 %v5369_v43  ;;  %2206 = vmatpush.bf16.msrb.mxu3 %v5032_v44 }
 0x321   : > { %v1403_v13 = vpack.c.bf16 %v5373_v45, %v5373_v45  ;;  %2073 = vxpose.xlu1.b32.cont [2/4] (short) (narrow) %v5370_v46, 16 }
 0x323   : > { %1436 = vst.msk [vmem:[#allocation2 + $0x24] sm:$0xf] %vm1426_vm10, %v1403_v13 }
 0x326   : > { %v5374_v47 = vpop.trf.xlu2 }
 0x327   : > { %v5378_v14 = vunpack.i.h.bf16 %v5374_v47  ;;  %v5375_v48 = vunpack.i.l.bf16 %v5374_v47  ;;  %v6805_v47 = vpop.f32.mrf.mxu1 }
 0x329   : > { %v1404_v49 = vpack.c.bf16 %v5378_v14, %v5378_v14  ;;  %2074 = vxpose.xlu1.b32.cont [3/4] (short) (narrow) %v5375_v48, 16  ;;  %v1733_v14 = vld [vmem:[%s950_s6] sm:$0x1]  ;;  %v6809_v48 = vpop.f32.mrf.mxu3  ;;  %s4185_s6 = sshll.u32 %s1086_s20, 4  ;;  %s4186_s6 = int_to_ptr.vmem [resolvable:$true] %s4185_s6 }
 0x32a   : > { %v5034_v1 = vld [vmem:[#allocation2 + $0x20] sm:$0xff]  ;;  %vm1734_vm12 = vcmp.gt.f32.partialorder %v1733_v14, 0.5 }
 0x32b   : > { %1437 = vst.msk [vmem:[#allocation2 + $0x28] sm:$0xf] %vm1426_vm10, %v1404_v49  ;;  %v1723_v49 = vlaneseq }
 0x32e   : > { %v5379_v50 = vpop.trf.xlu2 }
 0x32f   : > { %v5383_v52 = vunpack.i.h.bf16 %v5379_v50  ;;  %v5380_v53 = vunpack.i.l.bf16 %v5379_v50  ;;  %v6266_v50 = vmov 0   ;;  %v6812_v56 = vpop.f32.mrf.mxu1 }
 0x331   : > { %v1405_v54 = vpack.c.bf16 %v5383_v52, %v5383_v52  ;;  %2075 = vxpose.xlu1.b32.end [4/4] (short) (narrow) %v5380_v53, 16  ;;  %v1735_v52 = vsel %vm1734_vm12, 1, %v6266_v50  ;;  %v1724_v53 = vshrl.u32 %v1723_v49, 7 }
 0x332   : > { %v1736_v55 = vperm.slane %v1735_v52, 0 }
 0x333   : > { %1438 = vst.msk [vmem:[#allocation2 + $0x2c] sm:$0xf] %vm1426_vm10, %v1405_v54  ;;  %v1730_v54 = vand.u32 127, %v1723_v49 }
 0x334   : > { %vm1737_vm14 = vcmp.eq.s32.totalorder %v1736_v55, 1 }
 0x335   : > { %vm1731_vm13 = vcmp.le.s32.totalorder %v1730_v54, %v1724_v53 }
 0x336   : > { %v5384_v58 = vpop.trf.xlu2  ;;  %vm6816_vm15 = vmand %vm1731_vm13, %vm1737_vm14 }
 0x337   : > { %v5388_v59 = vunpack.i.h.bf16 %v5384_v58  ;;  %v5385_v60 = vunpack.i.l.bf16 %v5384_v58  ;;  %v6814_v58 = vpop.f32.mrf.mxu3 }
 0x339   : > { %v1406_v61 = vpack.c.bf16 %v5388_v59, %v5388_v59  ;;  %2104 = vxpose.xlu2.b32.start [1/4] (short) (narrow) %v5385_v60, 16  ;;  %v1725_v60 = vadd.s32 8, %v1724_v53 }
 0x33a   : > { %v5035_v62 = vld [vmem:[#allocation2 + $0x28] sm:$0xff] }
 0x33b   : > { %1439 = vst.msk [vmem:[#allocation2 + $0x30] sm:$0xf] %vm1426_vm10, %v1406_v61  ;;  %2239 = vmatpush.bf16.msra.mxu3 %v5035_v62  ;;  %vm1732_vm1 = vcmp.le.s32.totalorder %v1730_v54, %v1725_v60 }
 0x33c   : > { %vm6823_vm2 = vmand %vm1732_vm1, %vm1737_vm14 }
 0x33e   : > { %v5389_v2 = vpop.trf.xlu2 }
 0x33f   : > { %v5393_v3 = vunpack.i.h.bf16 %v5389_v2  ;;  %v5390_v4 = vunpack.i.l.bf16 %v5389_v2  ;;  %2240 = vmatpush.bf16.msra.mxu3 %v5034_v1 }
 0x341   : > { %v1407_v5 = vpack.c.bf16 %v5393_v3, %v5393_v3  ;;  %2105 = vxpose.xlu2.b32.cont [2/4] (short) (narrow) %v5390_v4, 16 }
 0x343   : > { %1440 = vst.msk [vmem:[#allocation2 + $0x34] sm:$0xf] %vm1426_vm10, %v1407_v5 }
 0x346   : > { %v5394_v6 = vpop.trf.xlu2 }
 0x347   : > { %v5398_v63 = vunpack.i.h.bf16 %v5394_v6  ;;  %v5395_v21 = vunpack.i.l.bf16 %v5394_v6 }
 0x349   : > { %v1408_v0 = vpack.c.bf16 %v5398_v63, %v5398_v63  ;;  %2106 = vxpose.xlu2.b32.cont [3/4] (short) (narrow) %v5395_v21, 16 }
 0x34a   : > { %v5036_v22 = vld [vmem:[#allocation2 + $0x30] sm:$0xff] }
 0x34b   : > { %1441 = vst.msk [vmem:[#allocation2 + $0x38] sm:$0xf] %vm1426_vm10, %v1408_v0 }
 0x34e   : > { %v5399_v7 = vpop.trf.xlu2 }
 0x34f   : > { %v5403_v9 = vunpack.i.h.bf16 %v5399_v7  ;;  %v5400_v10 = vunpack.i.l.bf16 %v5399_v7 }
 0x351   : > { %v1409_v11 = vpack.c.bf16 %v5403_v9, %v5403_v9  ;;  %2107 = vxpose.xlu2.b32.end [4/4] (short) (narrow) %v5400_v10, 16 }
 0x353   : > { %1442 = vst.msk [vmem:[#allocation2 + $0x3c] sm:$0xf] %vm1426_vm10, %v1409_v11 }
 0x35a   : > { %v5037_v12 = vld [vmem:[#allocation2 + $0x38] sm:$0xff] }
 0x35b   : > { %2273 = vmatpush.bf16.msra.mxu1 %v5037_v12 }
 0x35f   : > { %2274 = vmatpush.bf16.msra.mxu1 %v5036_v22 }
 0x39f   : > { %v5412_v15 = vpop.trf.xlu0 }
 0x3a0   : > { %v5416_v16 = vunpack.i.h.bf16 %v5412_v15  ;;  %v5413_v17 = vunpack.i.l.bf16 %v5412_v15 }
 0x3a2   : > { %v2138_v20 = vpack.c.bf16 %v5416_v16, %v5416_v16  ;;  %v2136_v23 = vpack.c.bf16 %v5413_v17, %v5413_v17 }
 0x3a4   : > { %v2181_v28 = vunpack.c.l.b16 %v2138_v20  ;;  %v2146_v29 = vunpack.c.l.b16 %v2136_v23 }
 0x3a7   : > { %v5417_v24 = vpop.trf.xlu0 }
 0x3a8   : > { %v5421_v25 = vunpack.i.h.bf16 %v5417_v24  ;;  %v5418_v18 = vunpack.i.l.bf16 %v5417_v24 }
 0x3aa   : > { %v2139_v27 = vpack.c.bf16 %v5421_v25, %v5421_v25  ;;  %v2137_v19 = vpack.c.bf16 %v5418_v18, %v5418_v18 }
 0x3ac   : > { %v2182_v30 = vunpack.c.l.b16 %v2139_v27  ;;  %v2147_v31 = vunpack.c.l.b16 %v2137_v19 }
 0x3ae   : > { %v2148_v32 = vpack.c.b16 %v2147_v31, %v2146_v29  ;;  %v2183_v33 = vpack.c.b16 %v2182_v30, %v2181_v28 }
 0x3b0   : > { %4631 = vmatmul.msk.bf16.vlgmr.msrb.gmra.mxu1 %vm2161_vm11, %v2148_v32  ;;  %4640 = vmatmul.msk.bf16.vlgmr.msrb.gmra.mxu3 %vm2161_vm11, %v2183_v33 }
 0x3bd   : > { %v2088_v34 = vpop.trf.xlu1 }
 0x3be   : > { %v2140_v35 = vpack.c.bf16 %v2088_v34, %v2088_v34 }
 0x3c0   : > { %v2215_v37 = vunpack.c.l.b16 %v2140_v35 }
 0x3c5   : > { %v2089_v36 = vpop.trf.xlu1 }
 0x3c6   : > { %v2141_v38 = vpack.c.bf16 %v2089_v36, %v2089_v36 }
 0x3c8   : > { %v2216_v39 = vunpack.c.l.b16 %v2141_v38 }
 0x3ca   : > { %v2217_v40 = vpack.c.b16 %v2216_v39, %v2215_v37 }
 0x3cc   : > { %4649 = vmatmul.msk.bf16.vlgmr.msra.gmra.mxu3 %vm2161_vm11, %v2217_v40 }
 0x3d2   : > { %v2120_v41 = vpop.trf.xlu2 }
 0x3d3   : > { %v2142_v42 = vpack.c.bf16 %v2120_v41, %v2120_v41 }
 0x3d5   : > { %v2249_v44 = vunpack.c.l.b16 %v2142_v42 }
 0x3da   : > { %v2121_v43 = vpop.trf.xlu2 }
 0x3db   : > { %v2143_v45 = vpack.c.bf16 %v2121_v43, %v2121_v43 }
 0x3dd   : > { %v2250_v46 = vunpack.c.l.b16 %v2143_v45 }
 0x3df   : > { %v2251_v13 = vpack.c.b16 %v2250_v46, %v2249_v44 }
 0x3e1   : > { %4658 = vmatmul.msk.bf16.vlgmr.msra.gmra.mxu1 %vm2161_vm11, %v2251_v13 }
 0x42d   : > { %v2174_v61 = vpop.f32.mrf.mxu1 }
 0x42e   : > { %v2285_v62 = vsel %vm6816_vm15, %v2174_v61, -1e+09 }
 0x42f   : > { %v2294_v1 = vsel %vm2293_vm0, %v2285_v62, -inf }
 0x430   : > { %2295 = vmax.xlane.f32.xlu0 %v2294_v1 }
 0x433   : > { %v2208_v2 = vpop.f32.mrf.mxu3 }
 0x434   : > { %v2287_v4 = vsel %vm6816_vm15, %v2208_v2, -1e+09 }
 0x435   : > { %v2176_v5 = vpop.f32.mrf.mxu1  ;;  %v2300_v63 = vsel %vm2293_vm0, %v2287_v4, -inf }
 0x436   : > { %v2286_v6 = vsel %vm6823_vm2, %v2176_v5, -1e+09 }
 0x437   : > { %v2297_v21 = vsel %vm2293_vm0, %v2286_v6, -inf }
 0x438   : > { %2301 = vmax.xlane.f32.xlu0 %v2300_v63  ;;  %2298 = vmax.xlane.f32.xlu1 %v2297_v21  ;;  %v1219_v63 = vperm.slane %v6775_v26, 1  ;;  %v4569_v26 = vld [vmem:[#allocation23 + $0x50] sm:$0xf] }
 0x43b   : > { %v2210_v0 = vpop.f32.mrf.mxu3 }
 0x43c   : > { %v2288_v7 = vsel %vm6823_vm2, %v2210_v0, -1e+09  ;;  %v1326_v0 = vadd.f32 %v6805_v47, %v1219_v63  ;;  %v4561_v47 = vld [vmem:[#allocation23 + $0x40] sm:$0xf] }
 0x43d   : > { %v2303_v9 = vsel %vm2293_vm0, %v2288_v7, -inf }
 0x440   : > { %2304 = vmax.xlane.f32.xlu1 %v2303_v9  ;;  %v1328_v9 = vadd.f32 %v6812_v56, %v1219_v63 }
 0x44f   : > { %v2242_v10 = vpop.f32.mrf.mxu3 }
 0x450   : > { %v2289_v11 = vsel %vm6816_vm15, %v2242_v10, -1e+09  ;;  %v4585_v10 = vld [vmem:[#allocation23 + $0x70] sm:$0xf] }
 0x451   : > { %v2306_v12 = vsel %vm2293_vm0, %v2289_v11, -inf }
 0x452   : > { %2307 = vmax.xlane.f32.xlu2 %v2306_v12 }
 0x457   : > { %v2244_v22 = vpop.f32.mrf.mxu3 }
 0x458   : > { %v2290_v15 = vsel %vm6823_vm2, %v2244_v22, -1e+09  ;;  %v4577_v22 = vld [vmem:[#allocation23 + $0x60] sm:$0xf] }
 0x459   : > { %v2309_v16 = vsel %vm2293_vm0, %v2290_v15, -inf }
 0x45a   : > { %2310 = vmax.xlane.f32.xlu0 %v2309_v16 }
 0x45e   : > { %v2276_v17 = vpop.f32.mrf.mxu1 }
 0x45f   : > { %v2291_v20 = vsel %vm6816_vm15, %v2276_v17, -1e+09  ;;  %v5025_v17 = vld [vmem:[#allocation23 + $0x54] sm:$0xf0] }
 0x460   : > { %v2312_v23 = vsel %vm2293_vm0, %v2291_v20, -inf }
 0x461   : > { %2313 = vmax.xlane.f32.xlu1 %v2312_v23  ;;  %v5023_v23 = vld [vmem:[#allocation23 + $0x44] sm:$0xf0] }
 0x466   : > { %v2278_v24 = vpop.f32.mrf.mxu1 }
 0x467   : > { %v2292_v25 = vsel %vm6823_vm2, %v2278_v24, -1e+09  ;;  %v4562_v24 = vor.u32 %v5023_v23, %v4561_v47 }
 0x468   : > { %v2315_v18 = vsel %vm2293_vm0, %v2292_v25, -inf }
 0x469   : > { %2316 = vmax.xlane.f32.xlu0 %v2315_v18  ;;  %v5021_v18 = vld [vmem:[#allocation23 + $0x34] sm:$0xf0] }
 0x4a3   : > { %v2296_v27 = vpop.xlane.xlu0 %2295 }
 0x4a4   : > { %v2318_v19 = vsub.f32 %v2285_v62, %v2296_v27  ;;  %v4545_v27 = vld [vmem:[#allocation23 + $0x20] sm:$0xf] }
 0x4a6   : > { %v2326_v28 = vmul.f32 1.442695, %v2318_v19  ;;  %v5019_v19 = vld [vmem:[#allocation23 + $0x24] sm:$0xf0] }
 0x4a8   : > { %5635 = vpow2.f32 %v2326_v28 }
 0x4ab   : > { %v2299_v29 = vpop.xlane.xlu1 %2298  ;;  %v2302_v30 = vpop.xlane.xlu0 %2301 }
 0x4ac   : > { %v2319_v31 = vsub.f32 %v2286_v6, %v2299_v29  ;;  %v2320_v34 = vsub.f32 %v2287_v4, %v2302_v30  ;;  %v4546_v29 = vor.u32 %v5019_v19, %v4545_v27  ;;  %v4537_v30 = vld [vmem:[#allocation23 + $0x10] sm:$0xf] }
 0x4ae   : > { %v6848_v32 = vpop.eup %5635  ;;  %v2328_v33 = vmul.f32 1.442695, %v2319_v31  ;;  %v2330_v36 = vmul.f32 1.442695, %v2320_v34  ;;  %v5017_v31 = vld [vmem:[#allocation23 + $0x14] sm:$0xf0] }
 0x4af   : > { %v2342_v35 = vsel %vm2293_vm0, %v6848_v32, 0.0  ;;  %v4529_v34 = vld [vmem:[#allocation23] sm:$0xf] }
 0x4b0   : > { %2343 = vadd.xlane.f32.xlu1 %v2342_v35  ;;  %5637 = vpow2.f32 %v2328_v33  ;;  %v4538_v33 = vor.u32 %v5017_v31, %v4537_v30  ;;  %v5015_v35 = vld [vmem:[#allocation23 + $0x4] sm:$0xf0] }
 0x4b1   : > { %5639 = vpow2.f32 %v2330_v36 }
 0x4b3   : > { %v2305_v37 = vpop.xlane.xlu1 %2304 }
 0x4b4   : > { %v2321_v39 = vsub.f32 %v2288_v7, %v2305_v37  ;;  %v4530_v37 = vor.u32 %v5015_v35, %v4529_v34 }
 0x4b6   : > { %v6852_v38 = vpop.eup %5637  ;;  %v2332_v41 = vmul.f32 1.442695, %v2321_v39 }
 0x4b7   : > { %v2345_v40 = vsel %vm2293_vm0, %v6852_v38, 0.0  ;;  %v6856_v42 = vpop.eup %5639 }
 0x4b8   : > { %2346 = vadd.xlane.f32.xlu0 %v2345_v40  ;;  %5641 = vpow2.f32 %v2332_v41  ;;  %v2348_v43 = vsel %vm2293_vm0, %v6856_v42, 0.0 }
 0x4be   : > { %v6860_v44 = vpop.eup %5641 }
 0x4bf   : > { %v2351_v14 = vsel %vm2293_vm0, %v6860_v44, 0.0 }
 0x4c0   : > { %2349 = vadd.xlane.f32.xlu0 %v2348_v43 }
 0x4c5   : > { %v2308_v45 = vpop.xlane.xlu2 %2307 }
 0x4c6   : > { %v2322_v46 = vsub.f32 %v2289_v11, %v2308_v45  ;;  %v5029_v11 = vld [vmem:[#allocation23 + $0x74] sm:$0xf0] }
 0x4c7   : > { %v4586_v12 = vor.u32 %v5029_v11, %v4585_v10 }
 0x4c8   : > { %v2334_v13 = vmul.f32 1.442695, %v2322_v46  ;;  %2352 = vadd.xlane.f32.xlu0 %v2351_v14 }
 0x4c9   : > { %1564 = vmatpush.bf16.msra.mxu2 %v4586_v12 }
 0x4ca   : > { %5643 = vpow2.f32 %v2334_v13 }
 0x4cd   : > { %v2311_v49 = vpop.xlane.xlu0 %2310 }
 0x4ce   : > { %v2323_v52 = vsub.f32 %v2290_v15, %v2311_v49  ;;  %v5027_v15 = vld [vmem:[#allocation23 + $0x64] sm:$0xf0] }
 0x4cf   : > { %v4578_v16 = vor.u32 %v5027_v15, %v4577_v22 }
 0x4d0   : > { %v6864_v53 = vpop.eup %5643  ;;  %v2336_v54 = vmul.f32 1.442695, %v2323_v52 }
 0x4d1   : > { %v2354_v55 = vsel %vm2293_vm0, %v6864_v53, 0.0  ;;  %1565 = vmatpush.bf16.msra.mxu2 %v4578_v16 }
 0x4d2   : > { %5645 = vpow2.f32 %v2336_v54  ;;  %2355 = vadd.xlane.f32.xlu0 %v2354_v55 }
 0x4d4   : > { %v2314_v59 = vpop.xlane.xlu1 %2313 }
 0x4d5   : > { %v2324_v60 = vsub.f32 %v2291_v20, %v2314_v59  ;;  %v4570_v20 = vor.u32 %v5025_v17, %v4569_v26 }
 0x4d7   : > { %v2338_v61 = vmul.f32 1.442695, %v2324_v60  ;;  %1566 = vmatpush.bf16.msra.mxu2 %v4570_v20 }
 0x4d8   : > { %v6868_v62 = vpop.eup %5645 }
 0x4d9   : > { %5647 = vpow2.f32 %v2338_v61  ;;  %v2357_v1 = vsel %vm2293_vm0, %v6868_v62, 0.0 }
 0x4da   : > { %2358 = vadd.xlane.f32.xlu0 %v2357_v1 }
 0x4db   : > { %1567 = vmatpush.bf16.msra.mxu2 %v4562_v24 }
 0x4dc   : > { %v2317_v2 = vpop.xlane.xlu0 %2316 }
 0x4dd   : > { %v2325_v3 = vsub.f32 %v2292_v25, %v2317_v2  ;;  %v4553_v25 = vld [vmem:[#allocation23 + $0x30] sm:$0xf] }
 0x4de   : > { %v4554_v56 = vor.u32 %v5021_v18, %v4553_v25 }
 0x4df   : > { %v6872_v4 = vpop.eup %5647  ;;  %v2340_v5 = vmul.f32 1.442695, %v2325_v3 }
 0x4e0   : > { %v2360_v6 = vsel %vm2293_vm0, %v6872_v4, 0.0  ;;  %1568 = vmatpush.bf16.msra.mxu2 %v4554_v56 }
 0x4e1   : > { %5649 = vpow2.f32 %v2340_v5 }
 0x4e2   : > { %2361 = vadd.xlane.f32.xlu0 %v2360_v6 }
 0x4e4   : > { %1569 = vmatpush.bf16.msra.mxu2 %v4546_v29 }
 0x4e7   : > { %v6877_v21 = vpop.eup %5649 }
 0x4e8   : > { %v2363_v7 = vsel %vm2293_vm0, %v6877_v21, 0.0  ;;  %1570 = vmatpush.bf16.msra.mxu2 %v4538_v33 }
 0x4ea   : > { %1362 = vxpose.xlu1.b32.start [1/2] (short) %v1326_v0, 128  ;;  %2364 = vadd.xlane.f32.xlu0 %v2363_v7 }
 0x4ec   : > { %1571 = vmatpush.bf16.msra.mxu2 %v4530_v37 }
 0x4ef   : > { %1572 = vmatmul.bf16.vlgmr.msra.gmra.mxu2 %v6794_v57 }
 0x4f2   : > { %1363 = vxpose.xlu1.b32.end [2/2] (short) %v1328_v9, 128 }
 0x523   : > { %v2344_v28 = vpop.xlane.xlu1 %2343 }
 0x52b   : > { %v2347_v14 = vpop.xlane.xlu0 %2346 }
 0x52c   : > { %5651 = vrcp.f32 %v2347_v14 }
 0x52d   : > { %5653 = vrcp.f32 %v2344_v28 }
 0x532   : > { %v5652_v55 = vpop.eup %5651 }
 0x533   : > { %v5654_v59 = vpop.eup %5653  ;;  %v2375_v60 = vmul.f32 %v5652_v55, %v6852_v38  ;;  %v2350_v9 = vpop.xlane.xlu0 %2349 }
 0x534   : > { %v2374_v61 = vmul.f32 %v5654_v59, %v6848_v32 }
 0x535   : > { %v2383_v5 = vpack.c.bf16 %v2375_v60, %v2375_v60 }
 0x536   : > { %v2382_v6 = vpack.c.bf16 %v2374_v61, %v2374_v61 }
 0x537   : > { %v2393_v0 = vunpack.c.l.b16 %v2383_v5 }
 0x538   : > { %v2392_v7 = vunpack.c.l.b16 %v2382_v6 }
 0x53a   : > { %v2394_v12 = vpack.c.b16 %v2393_v0, %v2392_v7 }
 0x53b   : > { %v2353_v22 = vpop.xlane.xlu0 %2352 }
 0x53c   : > { %5655 = vrcp.f32 %v2353_v22 }
 0x53d   : > { %5657 = vrcp.f32 %v2350_v9 }
 0x542   : > { %v5656_v17 = vpop.eup %5655 }
 0x543   : > { %v5658_v47 = vpop.eup %5657  ;;  %v2377_v23 = vmul.f32 %v5656_v17, %v6860_v44 }
 0x544   : > { %v2376_v24 = vmul.f32 %v5658_v47, %v6856_v42 }
 0x545   : > { %v2385_v27 = vpack.c.bf16 %v2377_v23, %v2377_v23  ;;  %v2356_v31 = vpop.xlane.xlu0 %2355 }
 0x546   : > { %v2384_v19 = vpack.c.bf16 %v2376_v24, %v2376_v24 }
 0x547   : > { %v2431_v29 = vunpack.c.l.b16 %v2385_v27 }
 0x548   : > { %v2430_v30 = vunpack.c.l.b16 %v2384_v19 }
 0x54a   : > { %v2432_v35 = vpack.c.b16 %v2431_v29, %v2430_v30 }
 0x58e   : > { %v1378_v36 = vpop.trf.xlu1 }
 0x58f   : > { %v1410_v39 = vpack.c.bf16 %v1378_v36, %v1378_v36  ;;  %v2359_v36 = vpop.xlane.xlu0 %2358 }
 0x590   : > { %5659 = vrcp.f32 %v2359_v36 }
 0x591   : > { %1443 = vst.msk [vmem:[#allocation3] sm:$0xf] %vm1426_vm10, %v1410_v39  ;;  %5661 = vrcp.f32 %v2356_v31 }
 0x596   : > { %v1379_v40 = vpop.trf.xlu1 }
 0x597   : > { %v1411_v41 = vpack.c.bf16 %v1379_v40, %v1379_v40  ;;  %v2362_v61 = vpop.xlane.xlu0 %2361 }
 0x599   : > { %1444 = vst.msk [vmem:[#allocation3 + $0x4] sm:$0xf] %vm1426_vm10, %v1411_v41  ;;  %v5660_v41 = vpop.eup %5659 }
 0x59e   : > { %v1380_v43 = vpop.trf.xlu1 }
 0x59f   : > { %v1412_v45 = vpack.c.bf16 %v1380_v43, %v1380_v43  ;;  %v2365_v5 = vpop.xlane.xlu0 %2364 }
 0x5a0   : > { %v5038_v2 = vld [vmem:[#allocation3] sm:$0xff]  ;;  %5663 = vrcp.f32 %v2365_v5  ;;  %v5054_v5 = vld [vmem:[#allocation20] sm:$0xff] }
 0x5a1   : > { %1445 = vst.msk [vmem:[#allocation3 + $0x8] sm:$0xf] %vm1426_vm10, %v1412_v45  ;;  %v2409_v63 = vsel %vm2293_vm0, %v5038_v2, 0  ;;  %v5662_v45 = vpop.eup %5661  ;;  %5665 = vrcp.f32 %v2362_v61 }
 0x5a6   : > { %v1381_v46 = vpop.trf.xlu1 }
 0x5a7   : > { %v1413_v13 = vpack.c.bf16 %v1381_v46, %v1381_v46  ;;  %v2379_v46 = vmul.f32 %v5660_v41, %v6868_v62 }
 0x5a9   : > { %1446 = vst.msk [vmem:[#allocation3 + $0xc] sm:$0xf] %vm1426_vm10, %v1413_v13  ;;  %v2378_v13 = vmul.f32 %v5662_v45, %v6864_v53 }
 0x5ab   : > { %v2386_v55 = vpack.c.bf16 %v2378_v13, %v2378_v13 }
 0x5ad   : > { %v2468_v60 = vunpack.c.l.b16 %v2386_v55  ;;  %v5060_v55 = vld [vmem:[#allocation20 + $0x30] sm:$0xff] }
 0x5ae   : > { %v1382_v49 = vpop.trf.xlu1 }
 0x5af   : > { %v1414_v52 = vpack.c.bf16 %v1382_v49, %v1382_v49 }
 0x5b0   : > { %v5039_v54 = vld [vmem:[#allocation3 + $0x8] sm:$0xff] }
 0x5b1   : > { %1447 = vst.msk [vmem:[#allocation3 + $0x10] sm:$0xf] %vm1426_vm10, %v1414_v52  ;;  %v2412_v57 = vsel %vm2293_vm0, %v5039_v54, 0  ;;  %v2387_v54 = vpack.c.bf16 %v2379_v46, %v2379_v46 }
 0x5b2   : > { %2420 = vmatpush.bf16.xpose.msrb.mxu2 %v2412_v57 }
 0x5b3   : > { %v2469_v59 = vunpack.c.l.b16 %v2387_v54  ;;  %v5061_v54 = vld [vmem:[#allocation20 + $0x38] sm:$0xff] }
 0x5b6   : > { %v1383_v1 = vpop.trf.xlu1 }
 0x5b7   : > { %v1415_v3 = vpack.c.bf16 %v1383_v1, %v1383_v1 }
 0x5b9   : > { %1448 = vst.msk [vmem:[#allocation3 + $0x14] sm:$0xf] %vm1426_vm10, %v1415_v3  ;;  %v2470_v3 = vpack.c.b16 %v2469_v59, %v2468_v60  ;;  %v5059_v59 = vld [vmem:[#allocation20 + $0x28] sm:$0xff]  ;;  %v5058_v60 = vld [vmem:[#allocation20 + $0x20] sm:$0xff] }
 0x5ba   : > { %2421 = vmatpush.bf16.xpose.msrb.mxu2 %v2409_v63  ;;  %v5664_v63 = vpop.eup %5663 }
 0x5bb   : > { %v5666_v7 = vpop.eup %5665  ;;  %v2381_v9 = vmul.f32 %v5664_v63, %v6877_v21 }
 0x5be   : > { %v1384_v10 = vpop.trf.xlu1 }
 0x5bf   : > { %v1416_v11 = vpack.c.bf16 %v1384_v10, %v1384_v10  ;;  %v2380_v10 = vmul.f32 %v5666_v7, %v6872_v4  ;;  %v5607_v7 = vld [vmem:[%s7193_s11] ss:$0 sm:$0xff] }
 0x5c0   : > { %v5040_v18 = vld [vmem:[#allocation3 + $0x10] sm:$0xff] }
 0x5c1   : > { %1449 = vst.msk [vmem:[#allocation3 + $0x18] sm:$0xf] %vm1426_vm10, %v1416_v11  ;;  %4667 = vmatmul.msk.bf16.vlgmr.msrb.gmra.mxu2 %vm2293_vm0, %v2394_v12  ;;  %v2447_v28 = vsel %vm2293_vm0, %v5040_v18, 0  ;;  %v2389_v12 = vpack.c.bf16 %v2381_v9, %v2381_v9 }
 0x5c2   : > { %2754 = vmatpush.bf16.msra.mxu2 %v5061_v54 }
 0x5c3   : > { %v2507_v22 = vunpack.c.l.b16 %v2389_v12 }
 0x5c6   : > { %v1385_v32 = vpop.trf.xlu1  ;;  %2755 = vmatpush.bf16.msra.mxu2 %v5060_v55 }
 0x5c7   : > { %v1417_v38 = vpack.c.bf16 %v1385_v32, %v1385_v32  ;;  %v2388_v32 = vpack.c.bf16 %v2380_v10, %v2380_v10 }
 0x5c9   : > { %1450 = vst.msk [vmem:[#allocation3 + $0x1c] sm:$0xf] %vm1426_vm10, %v1417_v38 }
 0x5ca   : > { %2756 = vmatpush.bf16.msra.mxu2 %v5059_v59 }
 0x5ce   : > { %v1386_v15 = vpop.trf.xlu1  ;;  %2757 = vmatpush.bf16.msra.mxu2 %v5058_v60 }
 0x5cf   : > { %v1418_v16 = vpack.c.bf16 %v1386_v15, %v1386_v15  ;;  %v2506_v15 = vunpack.c.l.b16 %v2388_v32 }
 0x5d0   : > { %v5041_v26 = vld [vmem:[#allocation3 + $0x18] sm:$0xff] }
 0x5d1   : > { %1451 = vst.msk [vmem:[#allocation3 + $0x20] sm:$0xf] %vm1426_vm10, %v1418_v16  ;;  %v2450_v20 = vsel %vm2293_vm0, %v5041_v26, 0  ;;  %v2508_v16 = vpack.c.b16 %v2507_v22, %v2506_v15  ;;  %v6920_v26 = vpop.f32.mrf.mxu2  ;;  %v5716_v22 = vld [vmem:[%s6625_s25 + $0x8] sm:$0xff] }
 0x5d2   : > { %2458 = vmatpush.bf16.xpose.msrb.mxu3 %v2450_v20 }
 0x5d6   : > { %v1387_v25 = vpop.trf.xlu1 }
 0x5d7   : > { %v1419_v56 = vpack.c.bf16 %v1387_v25, %v1387_v25 }
 0x5d9   : > { %1452 = vst.msk [vmem:[#allocation3 + $0x24] sm:$0xf] %vm1426_vm10, %v1419_v56  ;;  %v6922_v17 = vpop.f32.mrf.mxu2 }
 0x5da   : > { %2459 = vmatpush.bf16.xpose.msrb.mxu3 %v2447_v28 }
 0x5de   : > { %v1388_v33 = vpop.trf.xlu1 }
 0x5df   : > { %v1420_v34 = vpack.c.bf16 %v1388_v33, %v1388_v33 }
 0x5e0   : > { %v5042_v49 = vld [vmem:[#allocation3 + $0x20] sm:$0xff] }
 0x5e1   : > { %1453 = vst.msk [vmem:[#allocation3 + $0x28] sm:$0xf] %vm1426_vm10, %v1420_v34  ;;  %4676 = vmatmul.msk.bf16.vlgmr.msrb.gmra.mxu3 %vm2293_vm0, %v2432_v35  ;;  %v2485_v57 = vsel %vm2293_vm0, %v5042_v49, 0 }
 0x5e6   : > { %v1389_v42 = vpop.trf.xlu1 }
 0x5e7   : > { %v1421_v44 = vpack.c.bf16 %v1389_v42, %v1389_v42 }
 0x5e9   : > { %1454 = vst.msk [vmem:[#allocation3 + $0x2c] sm:$0xf] %vm1426_vm10, %v1421_v44 }
 0x5ee   : > { %v1390_v37 = vpop.trf.xlu1 }
 0x5ef   : > { %v1422_v39 = vpack.c.bf16 %v1390_v37, %v1390_v37 }
 0x5f0   : > { %v5043_v40 = vld [vmem:[#allocation3 + $0x28] sm:$0xff] }
 0x5f1   : > { %1455 = vst.msk [vmem:[#allocation3 + $0x30] sm:$0xf] %vm1426_vm10, %v1422_v39  ;;  %v2488_v43 = vsel %vm2293_vm0, %v5043_v40, 0 }
 0x5f2   : > { %2496 = vmatpush.bf16.xpose.msra.mxu0 %v2488_v43 }
 0x5f6   : > { %v1391_v14 = vpop.trf.xlu1 }
 0x5f7   : > { %v1423_v52 = vpack.c.bf16 %v1391_v14, %v1391_v14 }
 0x5f9   : > { %1456 = vst.msk [vmem:[#allocation3 + $0x34] sm:$0xf] %vm1426_vm10, %v1423_v52 }
 0x5fa   : > { %2497 = vmatpush.bf16.xpose.msra.mxu0 %v2485_v57 }
 0x5fe   : > { %v1392_v1 = vpop.trf.xlu1 }
 0x5ff   : > { %v1424_v2 = vpack.c.bf16 %v1392_v1, %v1392_v1  ;;  %v5057_v1 = vld [vmem:[#allocation20 + $0x18] sm:$0xff] }
 0x600   : > { %v5044_v11 = vld [vmem:[#allocation3 + $0x30] sm:$0xff]  ;;  %2758 = vmatpush.bf16.msra.mxu2 %v5057_v1 }
 0x601   : > { %1457 = vst.msk [vmem:[#allocation3 + $0x38] sm:$0xf] %vm1426_vm10, %v1424_v2  ;;  %4685 = vmatmul.msk.bf16.vlgmr.msra.gmra.mxu0 %vm2293_vm0, %v2470_v3  ;;  %v2523_v38 = vsel %vm2293_vm0, %v5044_v11, 0  ;;  %v5056_v2 = vld [vmem:[#allocation20 + $0x10] sm:$0xff]  ;;  %v5715_v11 = vld [vmem:[%s6625_s25] sm:$0xff]  ;;  %s7308_s25 = sld [smem:[#allocation69_spill]] }
 0x604   : > { %2759 = vmatpush.bf16.msra.mxu2 %v5056_v2 }
 0x606   : > { %v1393_v53 = vpop.trf.xlu1 }
 0x607   : > { %v1425_v62 = vpack.c.bf16 %v1393_v53, %v1393_v53  ;;  %s4184_s5 = scalar_lea.hbm %s7308_s25, %s5126_s4 }
 0x608   : > { %s4187_s29 = sshll.u32 %s4184_s5, 4  ;;  %s4188_s29 = int_to_ptr.hbm [resolvable:$true] %s4187_s29 }
 0x609   : > { %1458 = vst.msk [vmem:[#allocation3 + $0x3c] sm:$0xf] %vm1426_vm10, %v1425_v62  ;;  %v5055_v62 = vld [vmem:[#allocation20 + $0x8] sm:$0xff] }
 0x60a   : > { %2760 = vmatpush.bf16.msra.mxu2 %v5055_v62 }
 0x60e   : > { %2761 = vmatpush.bf16.msra.mxu2 %v5054_v5 }
 0x610   : > { %v5045_v6 = vld [vmem:[#allocation3 + $0x38] sm:$0xff] }
 0x611   : > { %v2526_v0 = vsel %vm2293_vm0, %v5045_v6, 0 }
 0x612   : > { %2534 = vmatpush.bf16.xpose.msrb.mxu1 %v2526_v0 }
 0x61a   : > { %2535 = vmatpush.bf16.xpose.msrb.mxu1 %v2523_v38 }
 0x621   : > { %4694 = vmatmul.msk.bf16.vlgmr.msrb.gmra.mxu1 %vm2293_vm0, %v2508_v16 }
 0x644   : > { %v2423_v20 = vpop.f32.mrf.mxu2 }
 0x64c   : > { %v2425_v4 = vpop.f32.mrf.mxu2 }
 0x664   : > { %v2461_v47 = vpop.f32.mrf.mxu3 }
 0x665   : > { %v5422_v21 = vpack.i.bf16 %v2461_v47, %v2423_v20 }
 0x667   : > { %5423 = vxpose.xlu0.b32.start [1/2] (short) (narrow) %v5422_v21, 32 }
 0x66c   : > { %v2463_v23 = vpop.f32.mrf.mxu3 }
 0x66d   : > { %v5424_v24 = vpack.i.bf16 %v2463_v23, %v2425_v4 }
 0x66f   : > { %5425 = vxpose.xlu0.b32.end [2/2] (short) (narrow) %v5424_v24, 32 }
 0x67e   : > { %v2499_v25 = vpop.f32.mrf.mxu0 }
 0x686   : > { %v2501_v27 = vpop.f32.mrf.mxu0 }
 0x69e   : > { %v2537_v18 = vpop.f32.mrf.mxu1 }
 0x69f   : > { %v5446_v56 = vpack.i.bf16 %v2537_v18, %v2499_v25  ;;  %v5085_v18 = vld [vmem:[#allocation21 + $0x38] sm:$0xff] }
 0x6a0   : > { %2974 = vmatpush.bf16.msra.mxu3 %v5085_v18 }
 0x6a1   : > { %5447 = vxpose.xlu1.b32.start [1/2] (short) (narrow) %v5446_v56, 32  ;;  %v5084_v56 = vld [vmem:[#allocation21 + $0x30] sm:$0xff] }
 0x6a4   : > { %2975 = vmatpush.bf16.msra.mxu3 %v5084_v56 }
 0x6a6   : > { %v2539_v19 = vpop.f32.mrf.mxu1 }
 0x6a7   : > { %v5448_v28 = vpack.i.bf16 %v2539_v19, %v2501_v27 }
 0x6a9   : > { %5449 = vxpose.xlu1.b32.end [2/2] (short) (narrow) %v5448_v28, 32  ;;  %v5083_v28 = vld [vmem:[#allocation21 + $0x28] sm:$0xff] }
 0x6aa   : > { %2976 = vmatpush.bf16.msra.mxu3 %v5083_v28  ;;  %v5609_v28 = vld [vmem:[%s7296_s23] ss:$0 sm:$0xff] }
 0x70b   : > { %v5426_v29 = vpop.trf.xlu0 }
 0x70c   : > { %v5427_v30 = vunpack.i.l.bf16 %v5426_v29  ;;  %v5430_v36 = vunpack.i.h.bf16 %v5426_v29  ;;  %v5082_v29 = vld [vmem:[#allocation21 + $0x20] sm:$0xff] }
 0x70d   : > { %2977 = vmatpush.bf16.msra.mxu3 %v5082_v29 }
 0x70e   : > { %2670 = vxpose.xlu2.b32.start [1/16] (narrow) %v5427_v30, 16  ;;  %v5081_v30 = vld [vmem:[#allocation21 + $0x18] sm:$0xff] }
 0x711   : > { %2978 = vmatpush.bf16.msra.mxu3 %v5081_v30 }
 0x713   : > { %v5431_v31 = vpop.trf.xlu0 }
 0x714   : > { %v5432_v33 = vunpack.i.l.bf16 %v5431_v31  ;;  %v5435_v37 = vunpack.i.h.bf16 %v5431_v31 }
 0x716   : > { %2671 = vxpose.xlu2.b32.cont [2/16] (narrow) %v5432_v33, 16 }
 0x71b   : > { %v5436_v34 = vpop.trf.xlu0 }
 0x71c   : > { %v5437_v35 = vunpack.i.l.bf16 %v5436_v34  ;;  %v5440_v39 = vunpack.i.h.bf16 %v5436_v34 }
 0x71e   : > { %2672 = vxpose.xlu2.b32.cont [3/16] (narrow) %v5437_v35, 16 }
 0x723   : > { %v5441_v42 = vpop.trf.xlu0 }
 0x724   : > { %v5442_v44 = vunpack.i.l.bf16 %v5441_v42  ;;  %v5445_v40 = vunpack.i.h.bf16 %v5441_v42  ;;  %v5080_v42 = vld [vmem:[#allocation21 + $0x10] sm:$0xff] }
 0x725   : > { %2979 = vmatpush.bf16.msra.mxu3 %v5080_v42 }
 0x726   : > { %2673 = vxpose.xlu2.b32.cont [4/16] (narrow) %v5442_v44, 16 }
 0x72e   : > { %2674 = vxpose.xlu2.b32.cont [5/16] (narrow) %v5430_v36, 16 }
 0x736   : > { %2675 = vxpose.xlu2.b32.cont [6/16] (narrow) %v5435_v37, 16  ;;  %v5079_v37 = vld [vmem:[#allocation21 + $0x8] sm:$0xff] }
 0x737   : > { %2980 = vmatpush.bf16.msra.mxu3 %v5079_v37 }
 0x73e   : > { %2676 = vxpose.xlu2.b32.cont [7/16] (narrow) %v5440_v39, 16 }
 0x745   : > { %v5450_v41 = vpop.trf.xlu1 }
 0x746   : > { %2677 = vxpose.xlu2.b32.cont [8/16] (narrow) %v5445_v40, 16  ;;  %v5451_v43 = vunpack.i.l.bf16 %v5450_v41  ;;  %v5454_v57 = vunpack.i.h.bf16 %v5450_v41 }
 0x74d   : > { %v5455_v45 = vpop.trf.xlu1 }
 0x74e   : > { %2678 = vxpose.xlu2.b32.cont [9/16] (narrow) %v5451_v43, 16  ;;  %v5456_v46 = vunpack.i.l.bf16 %v5455_v45  ;;  %v5459_v61 = vunpack.i.h.bf16 %v5455_v45  ;;  %v5078_v45 = vld [vmem:[#allocation21] sm:$0xff] }
 0x74f   : > { %2981 = vmatpush.bf16.msra.mxu3 %v5078_v45 }
 0x755   : > { %v5460_v13 = vpop.trf.xlu1 }
 0x756   : > { %2679 = vxpose.xlu2.b32.cont [10/16] (narrow) %v5456_v46, 16  ;;  %v5461_v14 = vunpack.i.l.bf16 %v5460_v13  ;;  %v5464_v3 = vunpack.i.h.bf16 %v5460_v13 }
 0x75d   : > { %v5465_v49 = vpop.trf.xlu1 }
 0x75e   : > { %2680 = vxpose.xlu2.b32.cont [11/16] (narrow) %v5461_v14, 16  ;;  %v5466_v52 = vunpack.i.l.bf16 %v5465_v49  ;;  %v5469_v53 = vunpack.i.h.bf16 %v5465_v49 }
 0x766   : > { %2681 = vxpose.xlu2.b32.cont [12/16] (narrow) %v5466_v52, 16 }
 0x76e   : > { %2682 = vxpose.xlu2.b32.cont [13/16] (narrow) %v5454_v57, 16 }
 0x776   : > { %2683 = vxpose.xlu2.b32.cont [14/16] (narrow) %v5459_v61, 16 }
 0x77e   : > { %2684 = vxpose.xlu2.b32.cont [15/16] (narrow) %v5464_v3, 16 }
 0x786   : > { %2685 = vxpose.xlu2.b32.end [16/16] (narrow) %v5469_v53, 16 }
 0x7a7   : > { %v2686_v6 = vpop.trf.xlu2 }
 0x7af   : > { %v2687_v63 = vpop.trf.xlu2 }
 0x7b0   : > { %v2702_v0 = vpack.c.bf16 %v2687_v63, %v2686_v6 }
 0x7b2   : > { %2762 = vmatmul.bf16.vlgmr.msra.gmra.mxu2 %v2702_v0 }
 0x835   : > { %v2763_v9 = vpop.f32.mrf.mxu2 }
 0x836   : > { %v2764_v10 = vadd.f32 %v5607_v7, %v2763_v9 }
 0x838   : > { %v6928_v12 = vadd.f32 %v5715_v11, %v2764_v10  ;;  %v5608_v11 = vld [vmem:[%s7194_s12] ss:$0 sm:$0xff] }
 0x83a   : > { %2772 = vadd.xlane.f32.xlu0 %v6928_v12 }
 0x83d   : > { %v2765_v32 = vpop.f32.mrf.mxu2 }
 0x83e   : > { %v2766_v38 = vadd.f32 %v5607_v7, %v2765_v32 }
 0x840   : > { %v6932_v15 = vadd.f32 %v5716_v22, %v2766_v38 }
 0x842   : > { %2774 = vadd.xlane.f32.xlu1 %v6932_v15 }
 0x8ad   : > { %v2773_v16 = vpop.xlane.xlu0 %2772 }
 0x8ae   : > { %v2776_v20 = vmul.f32 %v2773_v16, %v6664_v8 }
 0x8b0   : > { %v6937_v47 = vsub.f32 %v6928_v12, %v2776_v20 }
 0x8b2   : > { %v2780_v21 = vmul.f32 %v6937_v47, %v6937_v47 }
 0x8b4   : > { %2782 = vadd.xlane.f32.xlu0 %v2780_v21 }
 0x8b5   : > { %v2775_v4 = vpop.xlane.xlu1 %2774 }
 0x8b6   : > { %v2777_v23 = vmul.f32 %v2775_v4, %v6664_v8 }
 0x8b8   : > { %v6943_v24 = vsub.f32 %v6932_v15, %v2777_v23  ;;  %v2847_v23 = vmul.f32 %v5608_v11, %v6937_v47  ;;  %v5610_v47 = vld [vmem:[%s7297_s10] ss:$0 sm:$0xff] }
 0x8ba   : > { %v2781_v25 = vmul.f32 %v6943_v24, %v6943_v24  ;;  %v2848_v56 = vmul.f32 %v5608_v11, %v6943_v24  ;;  %v6963_v24 = vld [vmem:[%s7298_s18] sm:$0x3] }
 0x8bc   : > { %2784 = vadd.xlane.f32.xlu0 %v2781_v25 }
 0x927   : > { %v2783_v27 = vpop.xlane.xlu0 %2782 }
 0x928   : > { %v2786_v19 = vmul.f32 %v2783_v27, %v6686_v51 }
 0x92a   : > { %5667 = vrsqrt.f32 %v2786_v19  ;;  %vm2795_vm3 = vcmp.eq.f32.partialorder %v2786_v19, inf  ;;  %v2798_v14 = vand.u32 2147483648, %v2786_v19  ;;  %vm2797_vm4 = vcmp.eq.f32.partialorder %v2786_v19, 0.0 }
 0x92f   : > { %v2785_v31 = vpop.xlane.xlu0 %2784 }
 0x930   : > { %v5668_v33 = vpop.eup %5667  ;;  %v2787_v34 = vmul.f32 %v2785_v31, %v6686_v51 }
 0x931   : > { %v2789_v35 = vmul.f32 %v5668_v33, %v2786_v19 }
 0x932   : > { %5669 = vrsqrt.f32 %v2787_v34  ;;  %vm2807_vm5 = vcmp.eq.f32.partialorder %v2787_v34, inf  ;;  %v2810_v61 = vand.u32 2147483648, %v2787_v34  ;;  %vm2809_vm6 = vcmp.eq.f32.partialorder %v2787_v34, 0.0 }
 0x933   : > { %v2790_v44 = vmul.f32 %v5668_v33, %v2789_v35  ;;  %v1480_v35 = vperm.slane %v6963_v24, 0 }
 0x935   : > { %v2791_v36 = vmul.f32 0.5, %v2790_v44 }
 0x937   : > { %v2792_v39 = vsub.f32 1.5, %v2791_v36  ;;  %v1574_v36 = vadd.f32 %v6920_v26, %v1480_v35 }
 0x938   : > { %v5670_v40 = vpop.eup %5669 }
 0x939   : > { %v2793_v41 = vmul.f32 %v5668_v33, %v2792_v39  ;;  %v2801_v43 = vmul.f32 %v5670_v40, %v2787_v34 }
 0x93b   : > { %v2794_v46 = vmul.f32 %v2793_v41, %v2786_v19  ;;  %v2802_v13 = vmul.f32 %v5670_v40, %v2801_v43  ;;  %v1576_v43 = vadd.f32 %v6922_v17, %v1480_v35 }
 0x93d   : > { %v2796_v49 = vsel %vm2795_vm3, %v2786_v19, %v2794_v46  ;;  %v2803_v52 = vmul.f32 0.5, %v2802_v13 }
 0x93e   : > { %v2799_v54 = vsel %vm2797_vm4, %v2798_v14, %v2796_v49 }
 0x93f   : > { %v2812_v55 = vadd.f32 1e-06, %v2799_v54  ;;  %v2804_v57 = vsub.f32 1.5, %v2803_v52 }
 0x941   : > { %5671 = vrcp.f32 %v2812_v55  ;;  %v2805_v59 = vmul.f32 %v5670_v40, %v2804_v57  ;;  %v2825_v7 = vand.u32 2147483648, %v2812_v55  ;;  %vm2819_vm8 = vweird.f32 %v2812_v55 }
 0x942   : > { %v2823_v9 = vand.u32 2147483647, %v2812_v55 }
 0x943   : > { %v2806_v60 = vmul.f32 %v2805_v59, %v2787_v34  ;;  %v2826_v22 = vor.u32 1.1754944e-38, %v2825_v7 }
 0x944   : > { %vm2824_vm12 = vcmp.eq.f32.partialorder %v2823_v9, 8.507059e+37 }
 0x945   : > { %v2808_v1 = vsel %vm2807_vm5, %v2787_v34, %v2806_v60 }
 0x946   : > { %v2811_v2 = vsel %vm2809_vm6, %v2810_v61, %v2808_v1 }
 0x947   : > { %v5672_v3 = vpop.eup %5671  ;;  %v2813_v53 = vadd.f32 1e-06, %v2811_v2 }
 0x948   : > { %v2815_v62 = vmul.f32 %v5672_v3, %v2812_v55  ;;  %vm2820_vm7 = vweird.f32 %v5672_v3 }
 0x949   : > { %5673 = vrcp.f32 %v2813_v53  ;;  %vm2821_vm9 = vmor %vm2819_vm8, %vm2820_vm7  ;;  %v2840_v16 = vand.u32 2147483648, %v2813_v53  ;;  %v2838_v21 = vand.u32 2147483647, %v2813_v53  ;;  %vm2834_vm14 = vweird.f32 %v2813_v53 }
 0x94a   : > { %v2816_v5 = vsub.f32 1.0, %v2815_v62 }
 0x94b   : > { %v2841_v18 = vor.u32 1.1754944e-38, %v2840_v16  ;;  %vm2839_vm1 = vcmp.eq.f32.partialorder %v2838_v21, 8.507059e+37 }
 0x94c   : > { %v2817_v6 = vmul.f32 %v5672_v3, %v2816_v5 }
 0x94e   : > { %v2818_v63 = vadd.f32 %v5672_v3, %v2817_v6 }
 0x94f   : > { %v5674_v0 = vpop.eup %5673 }
 0x950   : > { %v2830_v10 = vmul.f32 %v5674_v0, %v2813_v53  ;;  %v2822_v32 = vsel %vm2821_vm9, %v5672_v3, %v2818_v63  ;;  %vm2835_vm13 = vweird.f32 %v5674_v0 }
 0x951   : > { %v2827_v4 = vsel %vm2824_vm12, %v2826_v22, %v2822_v32  ;;  %vm2836_vm15 = vmor %vm2834_vm14, %vm2835_vm13 }
 0x952   : > { %v2831_v38 = vsub.f32 1.0, %v2830_v10  ;;  %v2849_v19 = vmul.f32 %v2847_v23, %v2827_v4 }
 0x954   : > { %v2832_v20 = vmul.f32 %v5674_v0, %v2831_v38  ;;  %v2854_v31 = vadd.f32 %v5609_v28, %v2849_v19 }
 0x956   : > { %v2833_v25 = vadd.f32 %v5674_v0, %v2832_v20 }
 0x958   : > { %v2837_v27 = vsel %vm2836_vm15, %v5674_v0, %v2833_v25 }
 0x959   : > { %v2842_v29 = vsel %vm2839_vm1, %v2841_v18, %v2837_v27 }
 0x95a   : > { %v2850_v30 = vmul.f32 %v2848_v56, %v2842_v29 }
 0x95c   : > { %v2855_v33 = vadd.f32 %v5609_v28, %v2850_v30 }
 0x95e   : > { %v2922_v34 = vpack.c.bf16 %v2855_v33, %v2854_v31 }
 0x960   : > { %2982 = vmatmul.bf16.vlgmr.msra.gmra.mxu3 %v2922_v34 }
 0x9e3   : > { %v2983_v42 = vpop.f32.mrf.mxu3 }
 0x9e4   : > { %v2984_v44 = vadd.f32 %v5610_v47, %v2983_v42 }
 0x9e6   : > { %v2988_v37 = vmul.f32 0.17677669, %v2984_v44 }
 0x9e8   : > { %v5470_v39 = vpack.i.bf16 %v1574_v36, %v2988_v37 }
 0x9ea   : > { %5471 = vxpose.xlu0.b32.start [1/2] (short) %v5470_v39, 128 }
 0x9eb   : > { %v2985_v40 = vpop.f32.mrf.mxu3 }
 0x9ec   : > { %v2986_v41 = vadd.f32 %v5610_v47, %v2985_v40 }
 0x9ee   : > { %v2989_v45 = vmul.f32 0.17677669, %v2986_v41 }
 0x9f0   : > { %v5472_v46 = vpack.i.bf16 %v1576_v43, %v2989_v45 }
 0x9f2   : > { %5473 = vxpose.xlu0.b32.end [2/2] (short) %v5472_v46, 128 }
 0xa8e   : > { %v5474_v13 = vpop.trf.xlu0 }
 0xa8f   : > { %v5478_v14 = vunpack.i.h.bf16 %v5474_v13  ;;  %v5475_v49 = vunpack.i.l.bf16 %v5474_v13 }
 0xa91   : > { %v1656_v52 = vpack.c.bf16 %v5478_v14, %v5478_v14  ;;  %3022 = vxpose.xlu2.b32.start [1/4] (short) (narrow) %v5475_v49, 16 }
 0xa93   : > { %1688 = vst.msk [vmem:[#allocation4] sm:$0xf] %vm1426_vm10, %v1656_v52 }
 0xa96   : > { %v5479_v54 = vpop.trf.xlu0 }
 0xa97   : > { %v5483_v55 = vunpack.i.h.bf16 %v5479_v54  ;;  %v5480_v26 = vunpack.i.l.bf16 %v5479_v54 }
 0xa99   : > { %v1657_v57 = vpack.c.bf16 %v5483_v55, %v5483_v55  ;;  %3023 = vxpose.xlu2.b32.cont [2/4] (short) (narrow) %v5480_v26, 16 }
 0xa9b   : > { %1689 = vst.msk [vmem:[#allocation4 + $0x4] sm:$0xf] %vm1426_vm10, %v1657_v57 }
 0xa9e   : > { %v5484_v59 = vpop.trf.xlu0 }
 0xa9f   : > { %v5488_v60 = vunpack.i.h.bf16 %v5484_v59  ;;  %v5485_v17 = vunpack.i.l.bf16 %v5484_v59 }
 0xaa1   : > { %v1658_v61 = vpack.c.bf16 %v5488_v60, %v5488_v60  ;;  %3024 = vxpose.xlu2.b32.cont [3/4] (short) (narrow) %v5485_v17, 16 }
 0xaa2   : > { %v5062_v9 = vld [vmem:[#allocation4] sm:$0xff] }
 0xaa3   : > { %1690 = vst.msk [vmem:[#allocation4 + $0x8] sm:$0xf] %vm1426_vm10, %v1658_v61 }
 0xaa6   : > { %v5489_v1 = vpop.trf.xlu0 }
 0xaa7   : > { %v5493_v2 = vunpack.i.h.bf16 %v5489_v1  ;;  %v5490_v3 = vunpack.i.l.bf16 %v5489_v1 }
 0xaa9   : > { %v1659_v53 = vpack.c.bf16 %v5493_v2, %v5493_v2  ;;  %3025 = vxpose.xlu2.b32.end [4/4] (short) (narrow) %v5490_v3, 16 }
 0xaab   : > { %1691 = vst.msk [vmem:[#allocation4 + $0xc] sm:$0xf] %vm1426_vm10, %v1659_v53 }
 0xaae   : > { %v5494_v62 = vpop.trf.xlu0 }
 0xaaf   : > { %v5498_v5 = vunpack.i.h.bf16 %v5494_v62  ;;  %v5495_v6 = vunpack.i.l.bf16 %v5494_v62 }
 0xab1   : > { %v1660_v63 = vpack.c.bf16 %v5498_v5, %v5498_v5  ;;  %3054 = vxpose.xlu2.b32.start [1/4] (short) (narrow) %v5495_v6, 16 }
 0xab2   : > { %v5063_v0 = vld [vmem:[#allocation4 + $0x8] sm:$0xff] }
 0xab3   : > { %1692 = vst.msk [vmem:[#allocation4 + $0x10] sm:$0xf] %vm1426_vm10, %v1660_v63  ;;  %3184 = vmatpush.bf16.msrb.mxu0 %v5063_v0 }
 0xab6   : > { %v5499_v7 = vpop.trf.xlu0 }
 0xab7   : > { %v5503_v10 = vunpack.i.h.bf16 %v5499_v7  ;;  %v5500_v11 = vunpack.i.l.bf16 %v5499_v7  ;;  %3185 = vmatpush.bf16.msrb.mxu0 %v5062_v9 }
 0xab9   : > { %v1661_v32 = vpack.c.bf16 %v5503_v10, %v5503_v10  ;;  %3055 = vxpose.xlu2.b32.cont [2/4] (short) (narrow) %v5500_v11, 16 }
 0xabb   : > { %1693 = vst.msk [vmem:[#allocation4 + $0x14] sm:$0xf] %vm1426_vm10, %v1661_v32 }
 0xabe   : > { %v5504_v38 = vpop.trf.xlu0 }
 0xabf   : > { %v5508_v22 = vunpack.i.h.bf16 %v5504_v38  ;;  %v5505_v16 = vunpack.i.l.bf16 %v5504_v38 }
 0xac1   : > { %v1662_v20 = vpack.c.bf16 %v5508_v22, %v5508_v22  ;;  %3056 = vxpose.xlu2.b32.cont [3/4] (short) (narrow) %v5505_v16, 16 }
 0xac2   : > { %v5064_v30 = vld [vmem:[#allocation4 + $0x10] sm:$0xff] }
 0xac3   : > { %1694 = vst.msk [vmem:[#allocation4 + $0x18] sm:$0xf] %vm1426_vm10, %v1662_v20 }
 0xac6   : > { %v5509_v21 = vpop.trf.xlu0 }
 0xac7   : > { %v5513_v4 = vunpack.i.h.bf16 %v5509_v21  ;;  %v5510_v23 = vunpack.i.l.bf16 %v5509_v21 }
 0xac9   : > { %v1663_v25 = vpack.c.bf16 %v5513_v4, %v5513_v4  ;;  %3057 = vxpose.xlu2.b32.end [4/4] (short) (narrow) %v5510_v23, 16 }
 0xacb   : > { %1695 = vst.msk [vmem:[#allocation4 + $0x1c] sm:$0xf] %vm1426_vm10, %v1663_v25 }
 0xace   : > { %v5514_v18 = vpop.trf.xlu0 }
 0xacf   : > { %v5518_v56 = vunpack.i.h.bf16 %v5514_v18  ;;  %v5515_v27 = vunpack.i.l.bf16 %v5514_v18 }
 0xad1   : > { %v1664_v19 = vpack.c.bf16 %v5518_v56, %v5518_v56  ;;  %3086 = vxpose.xlu0.b32.start [1/4] (short) (narrow) %v5515_v27, 16 }
 0xad2   : > { %v5065_v28 = vld [vmem:[#allocation4 + $0x18] sm:$0xff] }
 0xad3   : > { %1696 = vst.msk [vmem:[#allocation4 + $0x20] sm:$0xf] %vm1426_vm10, %v1664_v19  ;;  %3218 = vmatpush.bf16.msra.mxu1 %v5065_v28 }
 0xad6   : > { %v5519_v29 = vpop.trf.xlu0 }
 0xad7   : > { %v5523_v31 = vunpack.i.h.bf16 %v5519_v29  ;;  %v5520_v33 = vunpack.i.l.bf16 %v5519_v29  ;;  %3219 = vmatpush.bf16.msra.mxu1 %v5064_v30 }
 0xad9   : > { %v1665_v34 = vpack.c.bf16 %v5523_v31, %v5523_v31  ;;  %3087 = vxpose.xlu0.b32.cont [2/4] (short) (narrow) %v5520_v33, 16 }
 0xadb   : > { %1697 = vst.msk [vmem:[#allocation4 + $0x24] sm:$0xf] %vm1426_vm10, %v1665_v34 }
 0xade   : > { %v5524_v47 = vpop.trf.xlu0 }
 0xadf   : > { %v5528_v35 = vunpack.i.h.bf16 %v5524_v47  ;;  %v5525_v42 = vunpack.i.l.bf16 %v5524_v47  ;;  %v1740_v47 = vld [vmem:[%s1089_s1] sm:$0x1] }
 0xae0   : > { %vm1741_vm2 = vcmp.gt.f32.partialorder %v1740_v47, 0.5 }
 0xae1   : > { %v1666_v44 = vpack.c.bf16 %v5528_v35, %v5528_v35  ;;  %3088 = vxpose.xlu0.b32.cont [3/4] (short) (narrow) %v5525_v42, 16  ;;  %v3294_v35 = vsel %vm1741_vm2, 1, %v6266_v50 }
 0xae2   : > { %v5066_v49 = vld [vmem:[#allocation4 + $0x20] sm:$0xff]  ;;  %v3295_v42 = vperm.slane %v3294_v35, 0 }
 0xae3   : > { %1698 = vst.msk [vmem:[#allocation4 + $0x28] sm:$0xf] %vm1426_vm10, %v1666_v44 }
 0xae4   : > { %vm6994_vm3 = vcmp.eq.s32.totalorder %v3295_v42, 1 }
 0xae6   : > { %v5529_v36 = vpop.trf.xlu0 }
 0xae7   : > { %v5533_v37 = vunpack.i.h.bf16 %v5529_v36  ;;  %v5530_v39 = vunpack.i.l.bf16 %v5529_v36 }
 0xae9   : > { %v1667_v40 = vpack.c.bf16 %v5533_v37, %v5533_v37  ;;  %3089 = vxpose.xlu0.b32.end [4/4] (short) (narrow) %v5530_v39, 16 }
 0xaeb   : > { %1699 = vst.msk [vmem:[#allocation4 + $0x2c] sm:$0xf] %vm1426_vm10, %v1667_v40 }
 0xaee   : > { %v5534_v41 = vpop.trf.xlu0 }
 0xaef   : > { %v5538_v43 = vunpack.i.h.bf16 %v5534_v41  ;;  %v5535_v45 = vunpack.i.l.bf16 %v5534_v41 }
 0xaf1   : > { %v1668_v46 = vpack.c.bf16 %v5538_v43, %v5538_v43  ;;  %3118 = vxpose.xlu1.b32.start [1/4] (short) (narrow) %v5535_v45, 16 }
 0xaf2   : > { %v5067_v13 = vld [vmem:[#allocation4 + $0x28] sm:$0xff] }
 0xaf3   : > { %1700 = vst.msk [vmem:[#allocation4 + $0x30] sm:$0xf] %vm1426_vm10, %v1668_v46  ;;  %3252 = vmatpush.bf16.msra.mxu0 %v5067_v13 }
 0xaf6   : > { %v5539_v14 = vpop.trf.xlu0 }
 0xaf7   : > { %v5543_v52 = vunpack.i.h.bf16 %v5539_v14  ;;  %v5540_v54 = vunpack.i.l.bf16 %v5539_v14  ;;  %3253 = vmatpush.bf16.msra.mxu0 %v5066_v49 }
 0xaf9   : > { %v1669_v55 = vpack.c.bf16 %v5543_v52, %v5543_v52  ;;  %3119 = vxpose.xlu1.b32.cont [2/4] (short) (narrow) %v5540_v54, 16  ;;  %v1481_v52 = vperm.slane %v6963_v24, 1 }
 0xafb   : > { %1701 = vst.msk [vmem:[#allocation4 + $0x34] sm:$0xf] %vm1426_vm10, %v1669_v55  ;;  %v1588_v54 = vadd.f32 %v6809_v48, %v1481_v52  ;;  %v1590_v55 = vadd.f32 %v6814_v58, %v1481_v52 }
 0xafe   : > { %v5544_v26 = vpop.trf.xlu0 }
 0xaff   : > { %v5548_v57 = vunpack.i.h.bf16 %v5544_v26  ;;  %v5545_v59 = vunpack.i.l.bf16 %v5544_v26 }
 0xb01   : > { %v1670_v60 = vpack.c.bf16 %v5548_v57, %v5548_v57  ;;  %3120 = vxpose.xlu1.b32.cont [3/4] (short) (narrow) %v5545_v59, 16 }
 0xb02   : > { %v5068_v53 = vld [vmem:[#allocation4 + $0x30] sm:$0xff] }
 0xb03   : > { %1702 = vst.msk [vmem:[#allocation4 + $0x38] sm:$0xf] %vm1426_vm10, %v1670_v60 }
 0xb06   : > { %v5549_v17 = vpop.trf.xlu0 }
 0xb07   : > { %v5553_v61 = vunpack.i.h.bf16 %v5549_v17  ;;  %v5550_v1 = vunpack.i.l.bf16 %v5549_v17 }
 0xb09   : > { %v1671_v2 = vpack.c.bf16 %v5553_v61, %v5553_v61  ;;  %3121 = vxpose.xlu1.b32.end [4/4] (short) (narrow) %v5550_v1, 16 }
 0xb0b   : > { %1703 = vst.msk [vmem:[#allocation4 + $0x3c] sm:$0xf] %vm1426_vm10, %v1671_v2 }
 0xb12   : > { %v5069_v3 = vld [vmem:[#allocation4 + $0x38] sm:$0xff] }
 0xb13   : > { %3286 = vmatpush.bf16.msrb.mxu1 %v5069_v3 }
 0xb17   : > { %3287 = vmatpush.bf16.msrb.mxu1 %v5068_v53 }
 0xb2a   : > { %v3038_v62 = vpop.trf.xlu2 }
 0xb2b   : > { %v3150_v5 = vpack.c.bf16 %v3038_v62, %v3038_v62 }
 0xb2d   : > { %v3160_v0 = vunpack.c.l.b16 %v3150_v5 }
 0xb32   : > { %v3039_v6 = vpop.trf.xlu2 }
 0xb33   : > { %v3151_v63 = vpack.c.bf16 %v3039_v6, %v3039_v6 }
 0xb35   : > { %v3161_v7 = vunpack.c.l.b16 %v3151_v63 }
 0xb37   : > { %v3162_v9 = vpack.c.b16 %v3161_v7, %v3160_v0 }
 0xb39   : > { %4767 = vmatmul.msk.bf16.vlgmr.msrb.gmra.mxu0 %vm2161_vm11, %v3162_v9 }
 0xb4a   : > { %v3070_v10 = vpop.trf.xlu2 }
 0xb4b   : > { %v3152_v11 = vpack.c.bf16 %v3070_v10, %v3070_v10 }
 0xb4d   : > { %v3194_v38 = vunpack.c.l.b16 %v3152_v11 }
 0xb52   : > { %v3071_v32 = vpop.trf.xlu2 }
 0xb53   : > { %v3153_v22 = vpack.c.bf16 %v3071_v32, %v3071_v32 }
 0xb55   : > { %v3195_v16 = vunpack.c.l.b16 %v3153_v22 }
 0xb57   : > { %v3196_v20 = vpack.c.b16 %v3195_v16, %v3194_v38 }
 0xb59   : > { %4776 = vmatmul.msk.bf16.vlgmr.msra.gmra.mxu1 %vm2161_vm11, %v3196_v20 }
 0xb75   : > { %v3102_v21 = vpop.trf.xlu0 }
 0xb76   : > { %v3154_v4 = vpack.c.bf16 %v3102_v21, %v3102_v21 }
 0xb78   : > { %v3228_v25 = vunpack.c.l.b16 %v3154_v4 }
 0xb7d   : > { %v3103_v23 = vpop.trf.xlu0 }
 0xb7e   : > { %v3155_v18 = vpack.c.bf16 %v3103_v23, %v3103_v23 }
 0xb80   : > { %v3229_v56 = vunpack.c.l.b16 %v3155_v18 }
 0xb82   : > { %v3230_v27 = vpack.c.b16 %v3229_v56, %v3228_v25 }
 0xb84   : > { %4785 = vmatmul.msk.bf16.vlgmr.msra.gmra.mxu0 %vm2161_vm11, %v3230_v27 }
 0xb95   : > { %v3134_v19 = vpop.trf.xlu1 }
 0xb96   : > { %v3156_v28 = vpack.c.bf16 %v3134_v19, %v3134_v19 }
 0xb98   : > { %v3262_v31 = vunpack.c.l.b16 %v3156_v28 }
 0xb9d   : > { %v3135_v29 = vpop.trf.xlu1 }
 0xb9e   : > { %v3157_v30 = vpack.c.bf16 %v3135_v29, %v3135_v29 }
 0xba0   : > { %v3263_v33 = vunpack.c.l.b16 %v3157_v30 }
 0xba2   : > { %v3264_v34 = vpack.c.b16 %v3263_v33, %v3262_v31 }
 0xba4   : > { %4794 = vmatmul.msk.bf16.vlgmr.msrb.gmra.mxu1 %vm2161_vm11, %v3264_v34 }
 0xbb6   : > { %v3187_v36 = vpop.f32.mrf.mxu0 }
 0xbb7   : > { %v3297_v37 = vsel %vm6994_vm3, %v3187_v36, -1e+09 }
 0xbb8   : > { %v3305_v39 = vsel %vm2293_vm0, %v3297_v37, -inf }
 0xbb9   : > { %3306 = vmax.xlane.f32.xlu2 %v3305_v39 }
 0xbbe   : > { %v3189_v40 = vpop.f32.mrf.mxu0 }
 0xbbf   : > { %v3298_v41 = vsel %vm6994_vm3, %v3189_v40, -1e+09 }
 0xbc0   : > { %v3308_v43 = vsel %vm2293_vm0, %v3298_v41, -inf }
 0xbc1   : > { %3309 = vmax.xlane.f32.xlu1 %v3308_v43 }
 0xbd6   : > { %v3221_v50 = vpop.f32.mrf.mxu1 }
 0xbd7   : > { %v3299_v45 = vsel %vm6994_vm3, %v3221_v50, -1e+09 }
 0xbd8   : > { %v3311_v46 = vsel %vm2293_vm0, %v3299_v45, -inf }
 0xbd9   : > { %3312 = vmax.xlane.f32.xlu2 %v3311_v46 }
 0xbde   : > { %v3223_v13 = vpop.f32.mrf.mxu1 }
 0xbdf   : > { %v3300_v14 = vsel %vm6994_vm3, %v3223_v13, -1e+09 }
 0xbe0   : > { %v3314_v49 = vsel %vm2293_vm0, %v3300_v14, -inf }
 0xbe1   : > { %3315 = vmax.xlane.f32.xlu2 %v3314_v49 }
 0xbfb   : > { %1624 = vxpose.xlu1.b32.start [1/2] (short) %v1588_v54, 128 }
 0xc01   : > { %v3255_v26 = vpop.f32.mrf.mxu0 }
 0xc02   : > { %v3301_v57 = vsel %vm6994_vm3, %v3255_v26, -1e+09 }
 0xc03   : > { %1625 = vxpose.xlu1.b32.end [2/2] (short) %v1590_v55, 128  ;;  %v3317_v59 = vsel %vm2293_vm0, %v3301_v57, -inf }
 0xc04   : > { %3318 = vmax.xlane.f32.xlu0 %v3317_v59 }
 0xc09   : > { %v3257_v60 = vpop.f32.mrf.mxu0 }
 0xc0a   : > { %v3302_v17 = vsel %vm6994_vm3, %v3257_v60, -1e+09 }
 0xc0b   : > { %v3320_v61 = vsel %vm2293_vm0, %v3302_v17, -inf }
 0xc0c   : > { %3321 = vmax.xlane.f32.xlu2 %v3320_v61 }
 0xc21   : > { %v3289_v24 = vpop.f32.mrf.mxu1 }
 0xc22   : > { %v3303_v48 = vsel %vm6994_vm3, %v3289_v24, -1e+09 }
 0xc23   : > { %v3323_v58 = vsel %vm2293_vm0, %v3303_v48, -inf }
 0xc24   : > { %3324 = vmax.xlane.f32.xlu2 %v3323_v58 }
 0xc29   : > { %v3291_v1 = vpop.f32.mrf.mxu1 }
 0xc2a   : > { %v3304_v2 = vsel %vm6994_vm3, %v3291_v1, -1e+09 }
 0xc2b   : > { %v3326_v3 = vsel %vm2293_vm0, %v3304_v2, -inf }
 0xc2c   : > { %3327 = vmax.xlane.f32.xlu2 %v3326_v3  ;;  %v3307_v53 = vpop.xlane.xlu2 %3306 }
 0xc2d   : > { %v3329_v62 = vsub.f32 %v3297_v37, %v3307_v53 }
 0xc2f   : > { %v3337_v5 = vmul.f32 1.442695, %v3329_v62 }
 0xc31   : > { %5675 = vpow2.f32 %v3337_v5 }
 0xc34   : > { %v3310_v6 = vpop.xlane.xlu1 %3309 }
 0xc35   : > { %v3330_v63 = vsub.f32 %v3298_v41, %v3310_v6 }
 0xc37   : > { %v7025_v0 = vpop.eup %5675  ;;  %v3339_v7 = vmul.f32 1.442695, %v3330_v63 }
 0xc38   : > { %v3353_v9 = vsel %vm2293_vm0, %v7025_v0, 0.0 }
 0xc39   : > { %5677 = vpow2.f32 %v3339_v7  ;;  %3354 = vadd.xlane.f32.xlu2 %v3353_v9 }
 0xc3f   : > { %v7029_v10 = vpop.eup %5677 }
 0xc40   : > { %v3356_v11 = vsel %vm2293_vm0, %v7029_v10, 0.0 }
 0xc41   : > { %3357 = vadd.xlane.f32.xlu2 %v3356_v11 }
 0xc4c   : > { %v3313_v32 = vpop.xlane.xlu2 %3312 }
 0xc4d   : > { %v3331_v38 = vsub.f32 %v3299_v45, %v3313_v32 }
 0xc4f   : > { %v3341_v22 = vmul.f32 1.442695, %v3331_v38 }
 0xc51   : > { %5679 = vpow2.f32 %v3341_v22 }
 0xc54   : > { %v3316_v16 = vpop.xlane.xlu2 %3315 }
 0xc55   : > { %v3332_v20 = vsub.f32 %v3300_v14, %v3316_v16 }
 0xc57   : > { %v7033_v21 = vpop.eup %5679  ;;  %v3343_v4 = vmul.f32 1.442695, %v3332_v20 }
 0xc58   : > { %v3359_v23 = vsel %vm2293_vm0, %v7033_v21, 0.0 }
 0xc59   : > { %5681 = vpow2.f32 %v3343_v4  ;;  %3360 = vadd.xlane.f32.xlu2 %v3359_v23 }
 0xc5f   : > { %v7037_v25 = vpop.eup %5681 }
 0xc60   : > { %v3362_v18 = vsel %vm2293_vm0, %v7037_v25, 0.0 }
 0xc61   : > { %3363 = vadd.xlane.f32.xlu2 %v3362_v18 }
 0xc77   : > { %v3319_v56 = vpop.xlane.xlu0 %3318 }
 0xc78   : > { %v3333_v27 = vsub.f32 %v3301_v57, %v3319_v56 }
 0xc7a   : > { %v3345_v19 = vmul.f32 1.442695, %v3333_v27 }
 0xc7c   : > { %5683 = vpow2.f32 %v3345_v19 }
 0xc7f   : > { %v3322_v28 = vpop.xlane.xlu2 %3321 }
 0xc80   : > { %v3334_v29 = vsub.f32 %v3302_v17, %v3322_v28 }
 0xc82   : > { %v7041_v30 = vpop.eup %5683  ;;  %v3347_v31 = vmul.f32 1.442695, %v3334_v29 }
 0xc83   : > { %v3365_v33 = vsel %vm2293_vm0, %v7041_v30, 0.0 }
 0xc84   : > { %5685 = vpow2.f32 %v3347_v31  ;;  %3366 = vadd.xlane.f32.xlu2 %v3365_v33 }
 0xc8a   : > { %v7045_v34 = vpop.eup %5685 }
 0xc8b   : > { %v3368_v47 = vsel %vm2293_vm0, %v7045_v34, 0.0 }
 0xc8c   : > { %3369 = vadd.xlane.f32.xlu2 %v3368_v47 }
 0xc97   : > { %v3325_v35 = vpop.xlane.xlu2 %3324 }
 0xc98   : > { %v3335_v42 = vsub.f32 %v3303_v48, %v3325_v35 }
 0xc9a   : > { %v3349_v44 = vmul.f32 1.442695, %v3335_v42 }
 0xc9c   : > { %5687 = vpow2.f32 %v3349_v44 }
 0xc9f   : > { %v1640_v36 = vpop.trf.xlu1  ;;  %v3328_v37 = vpop.xlane.xlu2 %3327 }
 0xca0   : > { %v1672_v39 = vpack.c.bf16 %v1640_v36, %v1640_v36  ;;  %v3336_v40 = vsub.f32 %v3304_v2, %v3328_v37 }
 0xca2   : > { %v7049_v41 = vpop.eup %5687  ;;  %1704 = vst.msk [vmem:[#allocation5] sm:$0xf] %vm1426_vm10, %v1672_v39  ;;  %v3351_v43 = vmul.f32 1.442695, %v3336_v40 }
 0xca3   : > { %v3371_v50 = vsel %vm2293_vm0, %v7049_v41, 0.0 }
 0xca4   : > { %5689 = vpow2.f32 %v3351_v43  ;;  %3372 = vadd.xlane.f32.xlu2 %v3371_v50 }
 0xca7   : > { %v1641_v45 = vpop.trf.xlu1 }
 0xca8   : > { %v1673_v46 = vpack.c.bf16 %v1641_v45, %v1641_v45 }
 0xcaa   : > { %v7054_v13 = vpop.eup %5689  ;;  %1705 = vst.msk [vmem:[#allocation5 + $0x4] sm:$0xf] %vm1426_vm10, %v1673_v46 }
 0xcab   : > { %v3374_v14 = vsel %vm2293_vm0, %v7054_v13, 0.0 }
 0xcac   : > { %3375 = vadd.xlane.f32.xlu2 %v3374_v14  ;;  %v3355_v49 = vpop.xlane.xlu2 %3354 }
 0xcaf   : > { %v1642_v52 = vpop.trf.xlu1 }
 0xcb0   : > { %v1674_v54 = vpack.c.bf16 %v1642_v52, %v1642_v52 }
 0xcb1   : > { %v5070_v3 = vld [vmem:[#allocation5] sm:$0xff] }
 0xcb2   : > { %1706 = vst.msk [vmem:[#allocation5 + $0x8] sm:$0xf] %vm1426_vm10, %v1674_v54  ;;  %v3420_v6 = vsel %vm2293_vm0, %v5070_v3, 0 }
 0xcb4   : > { %v3358_v57 = vpop.xlane.xlu2 %3357 }
 0xcb5   : > { %5691 = vrcp.f32 %v3358_v57 }
 0xcb6   : > { %5693 = vrcp.f32 %v3355_v49 }
 0xcb7   : > { %v1643_v55 = vpop.trf.xlu1 }
 0xcb8   : > { %v1675_v26 = vpack.c.bf16 %v1643_v55, %v1643_v55 }
 0xcba   : > { %1707 = vst.msk [vmem:[#allocation5 + $0xc] sm:$0xf] %vm1426_vm10, %v1675_v26 }
 0xcbb   : > { %v5692_v61 = vpop.eup %5691 }
 0xcbc   : > { %v5694_v48 = vpop.eup %5693  ;;  %v3386_v58 = vmul.f32 %v5692_v61, %v7029_v10 }
 0xcbd   : > { %v3385_v1 = vmul.f32 %v5694_v48, %v7025_v0 }
 0xcbe   : > { %v3394_v62 = vpack.c.bf16 %v3386_v58, %v3386_v58 }
 0xcbf   : > { %v1644_v59 = vpop.trf.xlu1  ;;  %v3393_v5 = vpack.c.bf16 %v3385_v1, %v3385_v1 }
 0xcc0   : > { %v1676_v60 = vpack.c.bf16 %v1644_v59, %v1644_v59  ;;  %v3404_v63 = vunpack.c.l.b16 %v3394_v62 }
 0xcc1   : > { %v5071_v17 = vld [vmem:[#allocation5 + $0x8] sm:$0xff]  ;;  %v3403_v7 = vunpack.c.l.b16 %v3393_v5 }
 0xcc2   : > { %1708 = vst.msk [vmem:[#allocation5 + $0x10] sm:$0xf] %vm1426_vm10, %v1676_v60  ;;  %v3423_v24 = vsel %vm2293_vm0, %v5071_v17, 0 }
 0xcc3   : > { %3431 = vmatpush.bf16.xpose.msrb.mxu2 %v3423_v24  ;;  %v3405_v38 = vpack.c.b16 %v3404_v63, %v3403_v7 }
 0xcc7   : > { %v1645_v2 = vpop.trf.xlu1 }
 0xcc8   : > { %v1677_v53 = vpack.c.bf16 %v1645_v2, %v1645_v2 }
 0xcca   : > { %1709 = vst.msk [vmem:[#allocation5 + $0x14] sm:$0xf] %vm1426_vm10, %v1677_v53 }
 0xccb   : > { %3432 = vmatpush.bf16.xpose.msrb.mxu2 %v3420_v6 }
 0xccc   : > { %v3361_v9 = vpop.xlane.xlu2 %3360 }
 0xccf   : > { %v1646_v11 = vpop.trf.xlu1 }
 0xcd0   : > { %v1678_v32 = vpack.c.bf16 %v1646_v11, %v1646_v11 }
 0xcd1   : > { %v5072_v29 = vld [vmem:[#allocation5 + $0x10] sm:$0xff] }
 0xcd2   : > { %1710 = vst.msk [vmem:[#allocation5 + $0x18] sm:$0xf] %vm1426_vm10, %v1678_v32  ;;  %4803 = vmatmul.msk.bf16.vlgmr.msrb.gmra.mxu2 %vm2293_vm0, %v3405_v38  ;;  %v3458_v35 = vsel %vm2293_vm0, %v5072_v29, 0 }
 0xcd4   : > { %v3364_v22 = vpop.xlane.xlu2 %3363 }
 0xcd5   : > { %5695 = vrcp.f32 %v3364_v22 }
 0xcd6   : > { %5697 = vrcp.f32 %v3361_v9 }
 0xcd7   : > { %v1647_v0 = vpop.trf.xlu1 }
 0xcd8   : > { %v1679_v10 = vpack.c.bf16 %v1647_v0, %v1647_v0 }
 0xcda   : > { %1711 = vst.msk [vmem:[#allocation5 + $0x1c] sm:$0xf] %vm1426_vm10, %v1679_v10 }
 0xcdb   : > { %v5696_v23 = vpop.eup %5695 }
 0xcdc   : > { %v5698_v56 = vpop.eup %5697  ;;  %v3388_v27 = vmul.f32 %v5696_v23, %v7037_v25 }
 0xcdd   : > { %v3387_v19 = vmul.f32 %v5698_v56, %v7033_v21 }
 0xcde   : > { %v3396_v33 = vpack.c.bf16 %v3388_v27, %v3388_v27 }
 0xcdf   : > { %v1648_v16 = vpop.trf.xlu1  ;;  %v3395_v47 = vpack.c.bf16 %v3387_v19, %v3387_v19 }
 0xce0   : > { %v1680_v20 = vpack.c.bf16 %v1648_v16, %v1648_v16  ;;  %v3442_v42 = vunpack.c.l.b16 %v3396_v33 }
 0xce1   : > { %v5073_v4 = vld [vmem:[#allocation5 + $0x18] sm:$0xff]  ;;  %v3441_v44 = vunpack.c.l.b16 %v3395_v47 }
 0xce2   : > { %1712 = vst.msk [vmem:[#allocation5 + $0x20] sm:$0xf] %vm1426_vm10, %v1680_v20  ;;  %v3461_v18 = vsel %vm2293_vm0, %v5073_v4, 0 }
 0xce3   : > { %3469 = vmatpush.bf16.xpose.msrb.mxu3 %v3461_v18  ;;  %v3443_v39 = vpack.c.b16 %v3442_v42, %v3441_v44 }
 0xce7   : > { %v1649_v28 = vpop.trf.xlu1 }
 0xce8   : > { %v1681_v31 = vpack.c.bf16 %v1649_v28, %v1649_v28 }
 0xcea   : > { %1713 = vst.msk [vmem:[#allocation5 + $0x24] sm:$0xf] %vm1426_vm10, %v1681_v31 }
 0xceb   : > { %3470 = vmatpush.bf16.xpose.msrb.mxu3 %v3458_v35 }
 0xcef   : > { %v1650_v36 = vpop.trf.xlu1 }
 0xcf0   : > { %v1682_v37 = vpack.c.bf16 %v1650_v36, %v1650_v36 }
 0xcf1   : > { %v5074_v57 = vld [vmem:[#allocation5 + $0x20] sm:$0xff] }
 0xcf2   : > { %1714 = vst.msk [vmem:[#allocation5 + $0x28] sm:$0xf] %vm1426_vm10, %v1682_v37  ;;  %4812 = vmatmul.msk.bf16.vlgmr.msrb.gmra.mxu3 %vm2293_vm0, %v3443_v39  ;;  %v3496_v61 = vsel %vm2293_vm0, %v5074_v57, 0  ;;  %v5092_v57 = vld [vmem:[#allocation24 + $0x30] sm:$0xff] }
 0xcf7   : > { %v1651_v21 = vpop.trf.xlu1  ;;  %v3367_v25 = vpop.xlane.xlu2 %3366 }
 0xcf8   : > { %v1683_v40 = vpack.c.bf16 %v1651_v21, %v1651_v21  ;;  %5699 = vrcp.f32 %v3367_v25 }
 0xcfa   : > { %1715 = vst.msk [vmem:[#allocation5 + $0x2c] sm:$0xf] %vm1426_vm10, %v1683_v40 }
 0xcfe   : > { %v5700_v49 = vpop.eup %5699 }
 0xcff   : > { %v1652_v43 = vpop.trf.xlu1  ;;  %v3370_v50 = vpop.xlane.xlu2 %3369  ;;  %v3389_v54 = vmul.f32 %v5700_v49, %v7041_v30 }
 0xd00   : > { %v1684_v45 = vpack.c.bf16 %v1652_v43, %v1652_v43  ;;  %5701 = vrcp.f32 %v3370_v50 }
 0xd01   : > { %v5075_v46 = vld [vmem:[#allocation5 + $0x28] sm:$0xff]  ;;  %v3397_v17 = vpack.c.bf16 %v3389_v54, %v3389_v54 }
 0xd02   : > { %1716 = vst.msk [vmem:[#allocation5 + $0x30] sm:$0xf] %vm1426_vm10, %v1684_v45  ;;  %v3499_v14 = vsel %vm2293_vm0, %v5075_v46, 0 }
 0xd03   : > { %3507 = vmatpush.bf16.xpose.msrb.mxu0 %v3499_v14  ;;  %v3479_v48 = vunpack.c.l.b16 %v3397_v17  ;;  %v5090_v17 = vld [vmem:[#allocation24 + $0x20] sm:$0xff] }
 0xd06   : > { %v5702_v52 = vpop.eup %5701 }
 0xd07   : > { %v3390_v55 = vmul.f32 %v5702_v52, %v7045_v34  ;;  %v1653_v26 = vpop.trf.xlu1 }
 0xd08   : > { %v1685_v59 = vpack.c.bf16 %v1653_v26, %v1653_v26  ;;  %v5093_v26 = vld [vmem:[#allocation24 + $0x38] sm:$0xff] }
 0xd09   : > { %v3398_v60 = vpack.c.bf16 %v3390_v55, %v3390_v55  ;;  %3765 = vmatpush.bf16.msra.mxu2 %v5093_v26  ;;  %v4881_v26 = vld [vmem:[#allocation26 + $0x20] sm:$0xf] }
 0xd0a   : > { %1717 = vst.msk [vmem:[#allocation5 + $0x34] sm:$0xf] %vm1426_vm10, %v1685_v59 }
 0xd0b   : > { %3508 = vmatpush.bf16.xpose.msrb.mxu0 %v3496_v61  ;;  %v3480_v24 = vunpack.c.l.b16 %v3398_v60  ;;  %v5091_v60 = vld [vmem:[#allocation24 + $0x28] sm:$0xff] }
 0xd0d   : > { %v3481_v2 = vpack.c.b16 %v3480_v24, %v3479_v48  ;;  %3766 = vmatpush.bf16.msra.mxu2 %v5092_v57  ;;  %v5089_v24 = vld [vmem:[#allocation24 + $0x18] sm:$0xff]  ;;  %v5088_v48 = vld [vmem:[#allocation24 + $0x10] sm:$0xff]  ;;  %v5099_v57 = vld [vmem:[#allocation26 + $0x24] sm:$0xf0] }
 0xd0f   : > { %v1654_v58 = vpop.trf.xlu1 }
 0xd10   : > { %v1686_v1 = vpack.c.bf16 %v1654_v58, %v1654_v58 }
 0xd11   : > { %v5076_v11 = vld [vmem:[#allocation5 + $0x30] sm:$0xff]  ;;  %3767 = vmatpush.bf16.msra.mxu2 %v5091_v60 }
 0xd12   : > { %1718 = vst.msk [vmem:[#allocation5 + $0x38] sm:$0xf] %vm1426_vm10, %v1686_v1  ;;  %4821 = vmatmul.msk.bf16.vlgmr.msrb.gmra.mxu0 %vm2293_vm0, %v3481_v2  ;;  %v3534_v0 = vsel %vm2293_vm0, %v5076_v11, 0  ;;  %v5087_v2 = vld [vmem:[#allocation24 + $0x8] sm:$0xff] }
 0xd15   : > { %3768 = vmatpush.bf16.msra.mxu2 %v5090_v17  ;;  %v5098_v17 = vld [vmem:[#allocation26 + $0x24] sm:$0xf] }
 0xd17   : > { %v1655_v30 = vpop.trf.xlu1  ;;  %v3373_v34 = vpop.xlane.xlu2 %3372 }
 0xd18   : > { %v1687_v3 = vpack.c.bf16 %v1655_v30, %v1655_v30  ;;  %5703 = vrcp.f32 %v3373_v34  ;;  %v5086_v30 = vld [vmem:[#allocation24] sm:$0xff] }
 0xd19   : > { %3769 = vmatpush.bf16.msra.mxu2 %v5089_v24 }
 0xd1a   : > { %1719 = vst.msk [vmem:[#allocation5 + $0x3c] sm:$0xf] %vm1426_vm10, %v1687_v3 }
 0xd1d   : > { %3770 = vmatpush.bf16.msra.mxu2 %v5088_v48  ;;  %v4882_v48 = vor.u32 %v5099_v57, %v4881_v26 }
 0xd1e   : > { %v5704_v6 = vpop.eup %5703 }
 0xd1f   : > { %v3376_v53 = vpop.xlane.xlu2 %3375  ;;  %v3391_v7 = vmul.f32 %v5704_v6, %v7049_v41 }
 0xd20   : > { %5705 = vrcp.f32 %v3376_v53 }
 0xd21   : > { %v5077_v62 = vld [vmem:[#allocation5 + $0x38] sm:$0xff]  ;;  %v3399_v38 = vpack.c.bf16 %v3391_v7, %v3391_v7  ;;  %3771 = vmatpush.bf16.msra.mxu2 %v5087_v2 }
 0xd22   : > { %v3537_v5 = vsel %vm2293_vm0, %v5077_v62, 0  ;;  %v5611_v62 = vld [vmem:[%s7303_s19] ss:$0 sm:$0xff]  ;;  %v4873_v2 = vld [vmem:[#allocation26 + $0x10] sm:$0xf]  ;;  %s6151_s19 = sshra.s32 %s4188_s29, 4  ;;  %s6152_s19 = int_to_ptr.hbm [resolvable:$true] %s6151_s19 }
 0xd23   : > { %3545 = vmatpush.bf16.xpose.msra.mxu1 %v3537_v5  ;;  %v3517_v22 = vunpack.c.l.b16 %v3399_v38  ;;  %s6153_s13 = scalar_lea.hbm %s6152_s19, 16  ;;  %p6158_p8 = scmp.lt.s32.totalorder %s6152_s19, %s7308_s25 }
 0xd24   : > { %p6154_p3 = scmp.ne.s32.totalorder %s6152_s19, %s6153_s13 }
 0xd25   : > { %3772 = vmatpush.bf16.msra.mxu2 %v5086_v30  ;;  %v5097_v30 = vld [vmem:[#allocation26 + $0x14] sm:$0xf0] }
 0xd26   : > { %v5706_v63 = vpop.eup %5705  ;;  %p6155_p4 = pnand %p6154_p3, %p6513_p5 }
 0xd27   : > { %v3392_v9 = vmul.f32 %v5706_v63, %v7054_v13 }
 0xd28   : > { %p6156_p6 = pneg %p6155_p4 }
 0xd29   : > { %v3400_v32 = vpack.c.bf16 %v3392_v9, %v3392_v9 }
 0xd2b   : > { %3546 = vmatpush.bf16.xpose.msra.mxu1 %v3534_v0  ;;  %v3518_v10 = vunpack.c.l.b16 %v3400_v32 }
 0xd2d   : > { %v3519_v16 = vpack.c.b16 %v3518_v10, %v3517_v22 }
 0xd32   : > { %4830 = vmatmul.msk.bf16.vlgmr.msra.gmra.mxu1 %vm2293_vm0, %v3519_v16 }
 0xd55   : > { %v3434_v20 = vpop.f32.mrf.mxu2 }
 0xd5d   : > { %v3436_v18 = vpop.f32.mrf.mxu2 }
 0xd75   : > { %v3472_v4 = vpop.f32.mrf.mxu3 }
 0xd76   : > { %v5554_v23 = vpack.i.bf16 %v3472_v4, %v3434_v20  ;;  %v4921_v20 = vld [vmem:[#allocation26 + $0x70] sm:$0xf]  ;;  %v5109_v4 = vld [vmem:[#allocation26 + $0x74] sm:$0xf0] }
 0xd78   : > { %5555 = vxpose.xlu2.b32.start [1/2] (short) (narrow) %v5554_v23, 32  ;;  %v5108_v23 = vld [vmem:[#allocation26 + $0x74] sm:$0xf] }
 0xd7d   : > { %v3474_v56 = vpop.f32.mrf.mxu3 }
 0xd7e   : > { %v5556_v41 = vpack.i.bf16 %v3474_v56, %v3436_v18  ;;  %v4922_v18 = vor.u32 %v5109_v4, %v4921_v20  ;;  %v4923_v56 = vld [vmem:[#allocation26 + $0x78] sm:$0xf0] }
 0xd80   : > { %5557 = vxpose.xlu2.b32.end [2/2] (short) (narrow) %v5556_v41, 32  ;;  %v4926_v41 = vor.u32 %v5108_v23, %v4923_v56  ;;  %3970 = vmatpush.bf16.msra.mxu3 %v4922_v18 }
 0xd82   : > { %3984 = vmatpush.bf16.msra.mxu0 %v4926_v41 }
 0xd8f   : > { %v3510_v13 = vpop.f32.mrf.mxu0 }
 0xd97   : > { %v3512_v28 = vpop.f32.mrf.mxu0 }
 0xdaf   : > { %v3548_v27 = vpop.f32.mrf.mxu1 }
 0xdb0   : > { %v5578_v19 = vpack.i.bf16 %v3548_v27, %v3510_v13  ;;  %v4913_v13 = vld [vmem:[#allocation26 + $0x60] sm:$0xf]  ;;  %v5107_v27 = vld [vmem:[#allocation26 + $0x64] sm:$0xf0] }
 0xdb2   : > { %5579 = vxpose.xlu1.b32.start [1/2] (short) (narrow) %v5578_v19, 32  ;;  %v5106_v19 = vld [vmem:[#allocation26 + $0x64] sm:$0xf] }
 0xdb7   : > { %v3550_v29 = vpop.f32.mrf.mxu1 }
 0xdb8   : > { %v5580_v31 = vpack.i.bf16 %v3550_v29, %v3512_v28  ;;  %v4914_v28 = vor.u32 %v5107_v27, %v4913_v13 }
 0xdba   : > { %5581 = vxpose.xlu1.b32.end [2/2] (short) (narrow) %v5580_v31, 32  ;;  %3971 = vmatpush.bf16.msra.mxu3 %v4914_v28  ;;  %v5117_v28 = vld [vmem:[#allocation27 + $0x38] sm:$0xff] }
 0xdbb   : > { %4132 = vmatpush.bf16.msrb.mxu1 %v5117_v28 }
 0xe11   : > { %v5558_v33 = vpop.trf.xlu2 }
 0xe12   : > { %v5559_v47 = vunpack.i.l.bf16 %v5558_v33  ;;  %v5562_v21 = vunpack.i.h.bf16 %v5558_v33  ;;  %v4905_v33 = vld [vmem:[#allocation26 + $0x50] sm:$0xf] }
 0xe14   : > { %3681 = vxpose.xlu0.b32.start [1/16] (narrow) %v5559_v47, 16  ;;  %v5105_v47 = vld [vmem:[#allocation26 + $0x54] sm:$0xf0] }
 0xe19   : > { %v5563_v35 = vpop.trf.xlu2 }
 0xe1a   : > { %v5564_v42 = vunpack.i.l.bf16 %v5563_v35  ;;  %v5567_v25 = vunpack.i.h.bf16 %v5563_v35  ;;  %v5104_v35 = vld [vmem:[#allocation26 + $0x54] sm:$0xf] }
 0xe1c   : > { %3682 = vxpose.xlu0.b32.cont [2/16] (narrow) %v5564_v42, 16 }
 0xe21   : > { %v5568_v44 = vpop.trf.xlu2 }
 0xe22   : > { %v5569_v36 = vunpack.i.l.bf16 %v5568_v44  ;;  %v5572_v40 = vunpack.i.h.bf16 %v5568_v44  ;;  %v4906_v44 = vor.u32 %v5105_v47, %v4905_v33 }
 0xe24   : > { %3683 = vxpose.xlu0.b32.cont [3/16] (narrow) %v5569_v36, 16  ;;  %v4907_v36 = vld [vmem:[#allocation26 + $0x58] sm:$0xf0]  ;;  %3972 = vmatpush.bf16.msra.mxu3 %v4906_v44  ;;  %v5123_v44 = vld [vmem:[#allocation27 + $0x68] sm:$0xff] }
 0xe29   : > { %v5573_v37 = vpop.trf.xlu2 }
 0xe2a   : > { %v5574_v39 = vunpack.i.l.bf16 %v5573_v37  ;;  %v5577_v43 = vunpack.i.h.bf16 %v5573_v37  ;;  %v4910_v37 = vor.u32 %v5104_v35, %v4907_v36  ;;  %v5115_v36 = vld [vmem:[#allocation27 + $0x28] sm:$0xff] }
 0xe2c   : > { %3684 = vxpose.xlu0.b32.cont [4/16] (narrow) %v5574_v39, 16  ;;  %v4897_v39 = vld [vmem:[#allocation26 + $0x40] sm:$0xf] }
 0xe34   : > { %3685 = vxpose.xlu0.b32.cont [5/16] (narrow) %v5562_v21, 16  ;;  %v5103_v21 = vld [vmem:[#allocation26 + $0x44] sm:$0xf0] }
 0xe3c   : > { %3686 = vxpose.xlu0.b32.cont [6/16] (narrow) %v5567_v25, 16  ;;  %v5102_v25 = vld [vmem:[#allocation26 + $0x44] sm:$0xf] }
 0xe44   : > { %3687 = vxpose.xlu0.b32.cont [7/16] (narrow) %v5572_v40, 16  ;;  %v4899_v40 = vld [vmem:[#allocation26 + $0x48] sm:$0xf0] }
 0xe4c   : > { %3688 = vxpose.xlu0.b32.cont [8/16] (narrow) %v5577_v43, 16  ;;  %v4898_v43 = vor.u32 %v5103_v21, %v4897_v39 }
 0xe4e   : > { %3973 = vmatpush.bf16.msra.mxu3 %v4898_v43 }
 0xe56   : > { %v5582_v50 = vpop.trf.xlu1 }
 0xe57   : > { %v5583_v45 = vunpack.i.l.bf16 %v5582_v50  ;;  %v5586_v59 = vunpack.i.h.bf16 %v5582_v50  ;;  %v4902_v50 = vor.u32 %v5102_v25, %v4899_v40  ;;  %v5122_v40 = vld [vmem:[#allocation27 + $0x60] sm:$0xff] }
 0xe59   : > { %3689 = vxpose.xlu0.b32.cont [9/16] (narrow) %v5583_v45, 16  ;;  %v4889_v45 = vld [vmem:[#allocation26 + $0x30] sm:$0xf] }
 0xe5e   : > { %v5587_v46 = vpop.trf.xlu1 }
 0xe5f   : > { %v5588_v14 = vunpack.i.l.bf16 %v5587_v46  ;;  %v5591_v61 = vunpack.i.h.bf16 %v5587_v46  ;;  %v5101_v46 = vld [vmem:[#allocation26 + $0x34] sm:$0xf0] }
 0xe61   : > { %3690 = vxpose.xlu0.b32.cont [10/16] (narrow) %v5588_v14, 16  ;;  %v5100_v14 = vld [vmem:[#allocation26 + $0x34] sm:$0xf] }
 0xe66   : > { %v5592_v49 = vpop.trf.xlu1 }
 0xe67   : > { %v5593_v52 = vunpack.i.l.bf16 %v5592_v49  ;;  %v5596_v58 = vunpack.i.h.bf16 %v5592_v49  ;;  %v4891_v49 = vld [vmem:[#allocation26 + $0x38] sm:$0xf0] }
 0xe69   : > { %3691 = vxpose.xlu0.b32.cont [11/16] (narrow) %v5593_v52, 16  ;;  %v4890_v52 = vor.u32 %v5101_v46, %v4889_v45 }
 0xe6b   : > { %3974 = vmatpush.bf16.msra.mxu3 %v4890_v52  ;;  %v5612_v52 = vld [vmem:[%s7304_s2] ss:$0 sm:$0xff]  ;;  %s6157_s2 = scalar_lea.hbm %s7308_s25, 32 }
 0xe6c   : > { %p6159_p10 = scmp.lt.s32.totalorder %s6157_s2, %s6153_s13 }
 0xe6e   : > { %v5597_v54 = vpop.trf.xlu1  ;;  %p6160_p11 = por %p6159_p10, %p6158_p8 }
 0xe6f   : > { %v5598_v55 = vunpack.i.l.bf16 %v5597_v54  ;;  %v5601_v1 = vunpack.i.h.bf16 %v5597_v54  ;;  %3975 = vmatpush.bf16.msra.mxu3 %v4882_v48 }
 0xe70   : > { %p6161_p12 = pnand %p6160_p11, %p6156_p6 }
 0xe71   : > { %3692 = vxpose.xlu0.b32.cont [12/16] (narrow) %v5598_v55, 16  ;;  %v4894_v55 = vor.u32 %v5100_v14, %v4891_v49 }
 0xe79   : > { %3693 = vxpose.xlu0.b32.cont [13/16] (narrow) %v5586_v59, 16 }
 0xe81   : > { %3694 = vxpose.xlu0.b32.cont [14/16] (narrow) %v5591_v61, 16  ;;  %v4883_v61 = vld [vmem:[#allocation26 + $0x28] sm:$0xf0] }
 0xe89   : > { %3695 = vxpose.xlu0.b32.cont [15/16] (narrow) %v5596_v58, 16 }
 0xe91   : > { %3696 = vxpose.xlu0.b32.end [16/16] (narrow) %v5601_v1, 16  ;;  %v4886_v1 = vor.u32 %v5098_v17, %v4883_v61 }
 0xebd   : > { %v3697_v34 = vpop.trf.xlu0 }
 0xec5   : > { %v3698_v3 = vpop.trf.xlu0 }
 0xec6   : > { %v3713_v53 = vpack.c.bf16 %v3698_v3, %v3697_v34  ;;  %v5096_v34 = vld [vmem:[#allocation26 + $0x14] sm:$0xf]  ;;  %v4875_v3 = vld [vmem:[#allocation26 + $0x18] sm:$0xf0] }
 0xec8   : > { %3773 = vmatmul.bf16.vlgmr.msra.gmra.mxu2 %v3713_v53 }
 0xf4b   : > { %v3774_v5 = vpop.f32.mrf.mxu2 }
 0xf4c   : > { %v3775_v6 = vadd.f32 %v5611_v62, %v3774_v5 }
 0xf4e   : > { %v7097_v63 = vadd.f32 %v3775_v6, %v6928_v12  ;;  %v4865_v6 = vld [vmem:[#allocation26] sm:$0xf] }
 0xf50   : > { %3783 = vadd.xlane.f32.xlu2 %v7097_v63 }
 0xf53   : > { %v3776_v7 = vpop.f32.mrf.mxu2 }
 0xf54   : > { %v3777_v9 = vadd.f32 %v5611_v62, %v3776_v7  ;;  %v4874_v62 = vor.u32 %v5097_v30, %v4873_v2  ;;  %v5095_v7 = vld [vmem:[#allocation26 + $0x4] sm:$0xf0]  ;;  %v5613_v30 = vld [vmem:[%s7305_s9] ss:$0 sm:$0xff] }
 0xf56   : > { %v7101_v11 = vadd.f32 %v3777_v9, %v6932_v15  ;;  %3976 = vmatpush.bf16.msra.mxu3 %v4874_v62 }
 0xf58   : > { %3785 = vadd.xlane.f32.xlu1 %v7101_v11 }
 0xfc3   : > { %v3784_v32 = vpop.xlane.xlu2 %3783 }
 0xfc4   : > { %v3787_v38 = vmul.f32 %v3784_v32, %v6664_v8  ;;  %v5094_v32 = vld [vmem:[#allocation26 + $0x4] sm:$0xf] }
 0xfc6   : > { %v7106_v0 = vsub.f32 %v7097_v63, %v3787_v38  ;;  %v4867_v38 = vld [vmem:[#allocation26 + $0x8] sm:$0xf0] }
 0xfc7   : > { %v4870_v4 = vor.u32 %v5094_v32, %v4867_v38  ;;  %v5118_v32 = vld [vmem:[#allocation27 + $0x40] sm:$0xff]  ;;  %v5111_v38 = vld [vmem:[#allocation27 + $0x8] sm:$0xff] }
 0xfc8   : > { %v3791_v10 = vmul.f32 %v7106_v0, %v7106_v0  ;;  %v3858_v61 = vmul.f32 %v5612_v52, %v7106_v0  ;;  %v5121_v0 = vld [vmem:[#allocation27 + $0x58] sm:$0xff] }
 0xfca   : > { %3793 = vadd.xlane.f32.xlu2 %v3791_v10 }
 0xfcb   : > { %v3786_v12 = vpop.xlane.xlu1 %3785 }
 0xfcc   : > { %v3788_v22 = vmul.f32 %v3786_v12, %v6664_v8  ;;  %v4915_v8 = vld [vmem:[#allocation26 + $0x68] sm:$0xf0] }
 0xfcd   : > { %v4918_v29 = vor.u32 %v5106_v19, %v4915_v8  ;;  %v5125_v19 = vld [vmem:[#allocation27 + $0x78] sm:$0xff] }
 0xfce   : > { %v7112_v16 = vsub.f32 %v7101_v11, %v3788_v22  ;;  %v4866_v22 = vor.u32 %v5095_v7, %v4865_v6  ;;  %4146 = vmatpush.bf16.msrb.mxu2 %v5125_v19  ;;  %v5120_v6 = vld [vmem:[#allocation27 + $0x50] sm:$0xff]  ;;  %v5119_v7 = vld [vmem:[#allocation27 + $0x48] sm:$0xff] }
 0xfcf   : > { %3985 = vmatpush.bf16.msra.mxu0 %v4918_v29  ;;  %v5124_v29 = vld [vmem:[#allocation27 + $0x70] sm:$0xff] }
 0xfd0   : > { %v3792_v15 = vmul.f32 %v7112_v16, %v7112_v16  ;;  %3977 = vmatpush.bf16.msra.mxu3 %v4866_v22 }
 0xfd2   : > { %3795 = vadd.xlane.f32.xlu0 %v3792_v15  ;;  %4147 = vmatpush.bf16.msrb.mxu2 %v5124_v29 }
 0xfd3   : > { %3986 = vmatpush.bf16.msra.mxu0 %v4910_v37 }
 0xfd6   : > { %4148 = vmatpush.bf16.msrb.mxu2 %v5123_v44  ;;  %v5614_v44 = vld [vmem:[%s7307_s21] ss:$0 sm:$0xff] }
 0xfd7   : > { %3987 = vmatpush.bf16.msra.mxu0 %v4902_v50 }
 0xfda   : > { %4149 = vmatpush.bf16.msrb.mxu2 %v5122_v40 }
 0xfdb   : > { %3988 = vmatpush.bf16.msra.mxu0 %v4894_v55 }
 0xfde   : > { %4150 = vmatpush.bf16.msrb.mxu2 %v5121_v0 }
 0xfdf   : > { %3989 = vmatpush.bf16.msra.mxu0 %v4886_v1 }
 0xfe2   : > { %4151 = vmatpush.bf16.msrb.mxu2 %v5120_v6 }
 0xfe6   : > { %4152 = vmatpush.bf16.msrb.mxu2 %v5119_v7 }
 0xfea   : > { %4153 = vmatpush.bf16.msrb.mxu2 %v5118_v32 }
0x103d   : > { %v3794_v31 = vpop.xlane.xlu2 %3793 }
0x103e   : > { %v7117_v42 = vmul.f32 %v3794_v31, %v6686_v51  ;;  %v5116_v31 = vld [vmem:[#allocation27 + $0x30] sm:$0xff] }
0x103f   : > { %4133 = vmatpush.bf16.msrb.mxu1 %v5116_v31 }
0x1040   : > { %5707 = vrsqrt.f32 %v7117_v42  ;;  %vm3806_vm10 = vcmp.eq.f32.partialorder %v7117_v42, inf  ;;  %v3809_v23 = vand.u32 2147483648, %v7117_v42  ;;  %vm3808_vm11 = vcmp.eq.f32.partialorder %v7117_v42, 0.0 }
0x1043   : > { %4134 = vmatpush.bf16.msrb.mxu1 %v5115_v36 }
0x1045   : > { %v3796_v54 = vpop.xlane.xlu0 %3795 }
0x1046   : > { %v5708_v59 = vpop.eup %5707  ;;  %v3798_v60 = vmul.f32 %v3796_v54, %v6686_v51  ;;  %v4878_v51 = vor.u32 %v5096_v34, %v4875_v3 }
0x1047   : > { %v3800_v24 = vmul.f32 %v5708_v59, %v7117_v42 }
0x1048   : > { %5709 = vrsqrt.f32 %v3798_v60  ;;  %3990 = vmatpush.bf16.msra.mxu0 %v4878_v51  ;;  %vm3818_vm0 = vcmp.eq.f32.partialorder %v3798_v60, inf  ;;  %v3821_v47 = vand.u32 2147483648, %v3798_v60  ;;  %vm3820_vm4 = vcmp.eq.f32.partialorder %v3798_v60, 0.0  ;;  %v5114_v51 = vld [vmem:[#allocation27 + $0x20] sm:$0xff] }
0x1049   : > { %v3801_v58 = vmul.f32 %v5708_v59, %v3800_v24  ;;  %4135 = vmatpush.bf16.msrb.mxu1 %v5114_v51 }
0x104b   : > { %v3802_v53 = vmul.f32 0.5, %v3801_v58  ;;  %v3859_v58 = vmul.f32 %v5612_v52, %v7112_v16  ;;  %v5113_v16 = vld [vmem:[#allocation27 + $0x18] sm:$0xff] }
0x104c   : > { %3991 = vmatpush.bf16.msra.mxu0 %v4870_v4 }
0x104d   : > { %v3803_v5 = vsub.f32 1.5, %v3802_v53  ;;  %4136 = vmatpush.bf16.msrb.mxu1 %v5113_v16 }
0x104e   : > { %v5710_v9 = vpop.eup %5709 }
0x104f   : > { %v3804_v10 = vmul.f32 %v5708_v59, %v3803_v5  ;;  %v3812_v12 = vmul.f32 %v5710_v9, %v3798_v60 }
0x1051   : > { %v3805_v15 = vmul.f32 %v3804_v10, %v7117_v42  ;;  %v3813_v20 = vmul.f32 %v5710_v9, %v3812_v12  ;;  %v5110_v10 = vld [vmem:[#allocation27] sm:$0xff]  ;;  %v3884_v12 = vld [vmem:[%s7306_s0] sm:$0x3] }
0x1053   : > { %v3807_v18 = vsel %vm3806_vm10, %v7117_v42, %v3805_v15  ;;  %v3814_v56 = vmul.f32 0.5, %v3813_v20  ;;  %v3887_v15 = vperm.slane %v3884_v12, 1 }
0x1054   : > { %v3810_v41 = vsel %vm3808_vm11, %v3809_v23, %v3807_v18  ;;  %v3886_v18 = vperm.slane %v3884_v12, 0 }
0x1055   : > { %v3823_v13 = vadd.f32 1e-06, %v3810_v41  ;;  %v3815_v27 = vsub.f32 1.5, %v3814_v56 }
0x1057   : > { %5711 = vrcp.f32 %v3823_v13  ;;  %v3816_v8 = vmul.f32 %v5710_v9, %v3815_v27  ;;  %v3836_v46 = vand.u32 2147483648, %v3823_v13  ;;  %vm3830_vm6 = vweird.f32 %v3823_v13  ;;  %v5112_v9 = vld [vmem:[#allocation27 + $0x10] sm:$0xff] }
0x1058   : > { %v3834_v14 = vand.u32 2147483647, %v3823_v13  ;;  %4137 = vmatpush.bf16.msrb.mxu1 %v5112_v9 }
0x1059   : > { %v3817_v33 = vmul.f32 %v3816_v8, %v3798_v60  ;;  %v3837_v26 = vor.u32 1.1754944e-38, %v3836_v46 }
0x105a   : > { %vm3835_vm8 = vcmp.eq.f32.partialorder %v3834_v14, 8.507059e+37 }
0x105b   : > { %v3819_v35 = vsel %vm3818_vm0, %v3798_v60, %v3817_v33 }
0x105c   : > { %v3822_v42 = vsel %vm3820_vm4, %v3821_v47, %v3819_v35  ;;  %4138 = vmatpush.bf16.msrb.mxu1 %v5111_v38 }
0x105d   : > { %v5712_v37 = vpop.eup %5711  ;;  %v3824_v39 = vadd.f32 1e-06, %v3822_v42 }
0x105e   : > { %v3826_v21 = vmul.f32 %v5712_v37, %v3823_v13  ;;  %vm3831_vm5 = vweird.f32 %v5712_v37 }
0x105f   : > { %5713 = vrcp.f32 %v3824_v39  ;;  %vm3832_vm7 = vmor %vm3830_vm6, %vm3831_vm5  ;;  %v3851_v57 = vand.u32 2147483648, %v3824_v39  ;;  %v3849_v60 = vand.u32 2147483647, %v3824_v39  ;;  %vm3845_vm12 = vweird.f32 %v3824_v39 }
0x1060   : > { %v3827_v25 = vsub.f32 1.0, %v3826_v21  ;;  %4139 = vmatpush.bf16.msrb.mxu1 %v5110_v10 }
0x1061   : > { %v3852_v48 = vor.u32 1.1754944e-38, %v3851_v57  ;;  %vm3850_vm14 = vcmp.eq.f32.partialorder %v3849_v60, 8.507059e+37 }
0x1062   : > { %v3828_v43 = vmul.f32 %v5712_v37, %v3827_v25 }
0x1064   : > { %v3829_v50 = vadd.f32 %v5712_v37, %v3828_v43 }
0x1065   : > { %v5714_v45 = vpop.eup %5713 }
0x1066   : > { %v3841_v49 = vmul.f32 %v5714_v45, %v3824_v39  ;;  %v3833_v54 = vsel %vm3832_vm7, %v5712_v37, %v3829_v50  ;;  %vm3846_vm9 = vweird.f32 %v5714_v45 }
0x1067   : > { %v3838_v17 = vsel %vm3835_vm8, %v3837_v26, %v3833_v54  ;;  %vm3847_vm13 = vmor %vm3845_vm12, %vm3846_vm9 }
0x1068   : > { %v3842_v55 = vsub.f32 1.0, %v3841_v49  ;;  %v3860_v2 = vmul.f32 %v3858_v61, %v3838_v17 }
0x106a   : > { %v3843_v59 = vmul.f32 %v5714_v45, %v3842_v55  ;;  %v3865_v53 = vadd.f32 %v5613_v30, %v3860_v2 }
0x106c   : > { %v3844_v24 = vadd.f32 %v5714_v45, %v3843_v59 }
0x106e   : > { %v3848_v1 = vsel %vm3847_vm13, %v5714_v45, %v3844_v24 }
0x106f   : > { %v3853_v34 = vsel %vm3850_vm14, %v3852_v48, %v3848_v1 }
0x1070   : > { %v3861_v3 = vmul.f32 %v3859_v58, %v3853_v34 }
0x1072   : > { %v3866_v62 = vadd.f32 %v5613_v30, %v3861_v3 }
0x1074   : > { %v3867_v5 = vpack.c.bf16 %v3866_v62, %v3865_v53 }
0x1076   : > { %3978 = vmatmul.bf16.vlgmr.msra.gmra.mxu3 %v3867_v5  ;;  %3992 = vmatmul.bf16.vlgmr.msra.gmra.mxu0 %v3867_v5 }
0x10f3   : > { %v3993_v22 = vpop.f32.mrf.mxu0 }
0x10f4   : > { %v3994_v4 = vadd.f32 %v3993_v22, %v3887_v15 }
0x10f6   : > { %v3999_v41 = vmax.f32 %v3994_v4, 0.0 }
0x10f9   : > { %v3979_v20 = vpop.f32.mrf.mxu3 }
0x10fa   : > { %v3980_v27 = vadd.f32 %v3979_v20, %v3886_v18 }
0x10fb   : > { %v3995_v23 = vpop.f32.mrf.mxu0 }
0x10fc   : > { %v3996_v56 = vadd.f32 %v3995_v23, %v3887_v15  ;;  %v3998_v29 = vmax.f32 %v3980_v27, 0.0 }
0x10fe   : > { %v4001_v13 = vmax.f32 %v3996_v56, 0.0 }
0x1100   : > { %v4003_v19 = vpack.c.bf16 %v4001_v13, %v3999_v41 }
0x1101   : > { %v3981_v28 = vpop.f32.mrf.mxu3 }
0x1102   : > { %v3982_v8 = vadd.f32 %v3981_v28, %v3886_v18  ;;  %4154 = vmatmul.bf16.vlgmr.msrb.gmra.mxu2 %v4003_v19 }
0x1104   : > { %v4000_v31 = vmax.f32 %v3982_v8, 0.0 }
0x1106   : > { %v4002_v33 = vpack.c.bf16 %v4000_v31, %v3998_v29 }
0x1108   : > { %4140 = vmatmul.bf16.vlgmr.msrb.gmra.mxu1 %v4002_v33 }
0x1185   : > { %v4141_v47 = vpop.f32.mrf.mxu1  ;;  %v4155_v35 = vpop.f32.mrf.mxu2 }
0x1186   : > { %v4156_v42 = vadd.f32 %v4155_v35, %v4141_v47 }
0x1188   : > { %v4160_v36 = vadd.f32 %v4156_v42, %v7097_v63 }
0x118a   : > { %v4166_v37 = vadd.f32 %v5614_v44, %v4160_v36 }
0x118c   : > { %4168 = vst [vmem:[%s1086_s20] sm:$0xff] %v4166_v37 }
0x118d   : > { %v4143_v39 = vpop.f32.mrf.mxu1  ;;  %v4157_v21 = vpop.f32.mrf.mxu2 }
0x118e   : > { %v4158_v25 = vadd.f32 %v4157_v21, %v4143_v39 }
0x1190   : > { %v4161_v40 = vadd.f32 %v4158_v25, %v7101_v11 }
0x1192   : > { %v4167_v63 = vadd.f32 %v5614_v44, %v4161_v40 }
0x1194   : > { %4169 = vst [vmem:[%s1086_s20 + $0x8] sm:$0xff] %v4167_v63 }
0x1195   : > { %6164 = shalt.err (!%p6161_p12)
}
0x1196   : > { %s6267_s15 = smov 128   ;;  %s6268_s9 = smov 8  }
0x1197   : > { %5177 = dma.vmem_to_hbm [thread:$0]  (%p6513_p5), %s4186_s6, 256, %s4188_s29, %s4171_s28, %s6267_s15, %s6267_s15, %s6268_s9  }
0x1198 PF: > { %s7310_s27 = sld [smem:[#allocation39_spill]] }
0x1199   : > { %s7312_s0 = sld [smem:[#allocation42_spill]] }
0x119e   : > { %s4202_s26 = sand.u32 1, %s7310_s27  }
0x119f   : > { %p7313_p13 = scmp.ge.s32.totalorder %s7312_s0, 2  ;;  %s4203_s10 = scalar_lea.sflag [#allocation8], %s4202_s26 }
0x11a1   : > { %p5224_p0 = pnand %p7313_p13, %p6521_p9 }
0x11a3   : > { %p5225_p2 = pneg %p5224_p0 }
0x11a5   : > { %6222 = dma.done.wait (%p5225_p2), %s4203_s10, 256  }
0x11a6   : > { %6224 = vsyncadd (%p5225_p2), %s4203_s10, 4294967040  ;;  %s51_s4 = sadd.s32 1, %s7312_s0   ;;  %s7314_s21 = sld [smem:[#allocation40_spill]] }
0x11a7   : > { %p48_p7 = scmp.ge.s32.totalorder %s51_s4, 4   ;;  %s7315_s7 = sld [smem:[#allocation45_spill]] }
0x11a8   : > { %s7316_s18 = sld [smem:[#allocation43_spill]]  ;;  %s7317_s27 = smov %s6231_s3 }
0x11a9   : > { %s7319_s28 = smov %s6243_s8 }
0x11aa   :  { %50 = sbr.rel (!%p48_p7) target bundleno = 38 (0x26), region = 245 }
0x11ac   : > { %s7318_s3 = smov %s7314_s21 }
0x11ae   : > { %s7320_s8 = smov %s7316_s18 }
0x11af   :  { %4209 = vsyncpa [#allocation7], 1 }
0x11b0   :  { %4211 = vsyncpa [#allocation7 + $0x1], 1 }
0x11b1   :  { %4212 = vsyncpa [#allocation10], 1 }
0x11b2   :  { %4214 = vsyncpa [#allocation10 + $0x1], 1 }
0x11b3   :  { %4215 = vsyncpa [#allocation13], 1 }
0x11b4   :  { %4216 = vsyncpa [#allocation16], 1 }
0x11b5   :  { %4217 = vsyncpa [#allocation19], 1 }
0x11b6   :  { %4218 = vsyncpa [#allocation22], 1 }
0x11b7   :  { %4219 = vsyncpa [#allocation25], 1 }
0x11b8   :  { %4220 = vsyncpa [#allocation28], 1 }
0x11b9   :  { %4221 = vsyncpa [#allocation8], 1 }
0x11ba   :  { %4223 = vsyncpa [#allocation8 + $0x1], 1 }

</bundles_post_ra>
